<compile_context>
chip_gen: v5e
topology: v5e:2x2
jax: 0.10.0
libtpu: 0.0.40
codegen_flags: <defaults>
</compile_context>

<pallas_src>
import functools
import math

import jax
import jax.numpy as jnp
from jax import lax
from jax.experimental import pallas as pl
from jax.experimental.pallas import tpu as pltpu


# ----------------------------------------------------------------------------
# Fused forward kernel: embed + PE + all encoder layers + pool + fc_out.
# ----------------------------------------------------------------------------
def fused_forward_kernel(*refs, batch, seq, n_heads, num_layers, eps):
    x_ref, w_emb_ref, b_emb_ref, pe_ref = refs[:4]
    layer_refs = refs[4:4 + 12 * num_layers]
    w_out_ref, b_out_ref, o_ref = refs[4 + 12 * num_layers:]

    B, S = batch, seq
    M = B * S
    D = w_emb_ref.shape[1]
    hd = D // n_heads
    scale = 1.0 / math.sqrt(hd)

    # ---- Input embedding + positional encoding (broadcast over batch) ----
    h = jnp.dot(x_ref[...], w_emb_ref[...],
                preferred_element_type=jnp.float32) + b_emb_ref[...]
    h = h.reshape(B, S, D) + pe_ref[...][None]
    h = h.reshape(M, D)

    for l in range(num_layers):
        (wqkv, bqkv, wo, bo, g1, be1,
         w1, b1, w2, b2, g2, be2) = layer_refs[12 * l:12 * (l + 1)]

        # ---- Multi-head self-attention: packed QKV projection ----
        qkv = jnp.dot(h, wqkv[...], preferred_element_type=jnp.float32) + bqkv[...]
        qkv = qkv.reshape(B, S, 3 * D)
        q = qkv[:, :, 0:D]          # 128-lane-aligned slices
        k = qkv[:, :, D:2 * D]
        v = qkv[:, :, 2 * D:3 * D]
        wo_full = wo[...]

        # Static loop over heads; fold the head-concat into the output
        # projection:  concat_h(ctx_h) @ W_o  ==  sum_h ctx_h @ W_o[h*hd:(h+1)*hd, :]
        attn = jnp.zeros((M, D), jnp.float32)
        for hh in range(n_heads):
            sl = slice(hh * hd, (hh + 1) * hd)
            s = jnp.einsum("bqd,bkd->bqk", q[:, :, sl], k[:, :, sl],
                           preferred_element_type=jnp.float32) * scale
            s = s - jnp.max(s, axis=-1, keepdims=True)
            p = jnp.exp(s)
            p = p * pl.reciprocal(jnp.sum(p, axis=-1, keepdims=True), approx=True)
            ctx = jnp.einsum("bqk,bkd->bqd", p, v[:, :, sl],
                             preferred_element_type=jnp.float32)          # (B,S,hd)
            attn = attn + jnp.dot(ctx.reshape(M, hd), wo_full[sl, :],
                                  preferred_element_type=jnp.float32)    # (M,D)
        attn = attn + bo[...]

        # ---- Residual + LayerNorm 1 (post-norm, PyTorch norm_first=False) ----
        h1 = h + attn
        mu = jnp.mean(h1, axis=-1, keepdims=True)
        var = jnp.mean((h1 - mu) ** 2, axis=-1, keepdims=True)
        h1 = (h1 - mu) * lax.rsqrt(var + eps) * g1[...] + be1[...]

        # ---- Feed-forward: Linear -> ReLU -> Linear ----
        ff = jnp.dot(h1, w1[...], preferred_element_type=jnp.float32) + b1[...]
        ff = jnp.maximum(ff, 0.0)
        ff = jnp.dot(ff, w2[...], preferred_element_type=jnp.float32) + b2[...]

        # ---- Residual + LayerNorm 2 ----
        h2 = h1 + ff
        mu2 = jnp.mean(h2, axis=-1, keepdims=True)
        var2 = jnp.mean((h2 - mu2) ** 2, axis=-1, keepdims=True)
        h = (h2 - mu2) * lax.rsqrt(var2 + eps) * g2[...] + be2[...]

    # ---- Mean pool over sequence (AdaptiveAvgPool1d(1)) + fc_out (padded) ----
    pooled = jnp.mean(h.reshape(B, S, D), axis=1)               # (B, D)
    o_ref[...] = jnp.dot(pooled, w_out_ref[...],
                         preferred_element_type=jnp.float32) + b_out_ref[...]


# ----------------------------------------------------------------------------
# Wrapper: one pallas_call for the whole model.
# ----------------------------------------------------------------------------
def cross_price_transformer(params, x, *, n_heads):
    B, S, In = x.shape
    num_layers = len(params["layers"])
    out_dim = params["w_out"].shape[1]
    padded_out = int(pl.cdiv(out_dim, 128)) * 128

    # Lane-pad the output projection so the final store is lane-dense.
    w_out_p = jnp.pad(params["w_out"], ((0, 0), (0, padded_out - out_dim)))
    b_out_p = jnp.pad(params["b_out"], ((0, 0), (0, padded_out - out_dim)))

    args = [x.reshape(B * S, In), params["w_emb"], params["b_emb"],
            params["pe"][:S]]
    for lp in params["layers"]:
        args += [lp["wqkv"], lp["bqkv"], lp["wo"], lp["bo"], lp["g1"], lp["be1"],
                 lp["w1"], lp["b1"], lp["w2"], lp["b2"], lp["g2"], lp["be2"]]
    args += [w_out_p, b_out_p]

    kernel = functools.partial(
        fused_forward_kernel, batch=B, seq=S, n_heads=n_heads,
        num_layers=num_layers, eps=1e-5)

    out_padded = pl.pallas_call(
        kernel,
        out_shape=jax.ShapeDtypeStruct((B, padded_out), jnp.float32),
        compiler_params=pltpu.CompilerParams(vmem_limit_bytes=32 * 1024 * 1024),
    )(*args)

    out = out_padded[:, :out_dim]
    return out.reshape(-1, params["future_seq_len"], params["target_dim"])


# ----------------------------------------------------------------------------
# Deterministic parameter init + positional encoding.
# ----------------------------------------------------------------------------
def make_positional_encoding(max_len, d_model):
    position = jnp.arange(max_len, dtype=jnp.float32)[:, None]
    div_term = jnp.exp(
        jnp.arange(0, d_model, 2, dtype=jnp.float32) * (-math.log(10000.0) / d_model)
    )
    pe = jnp.zeros((max_len, d_model), jnp.float32)
    pe = pe.at[:, 0::2].set(jnp.sin(position * div_term))
    pe = pe.at[:, 1::2].set(jnp.cos(position * div_term))
    return pe


def init_params(key, *, input_dim, d_model, num_layers, dim_ff,
                future_seq_len, target_dim, max_len):
    keys = iter(jax.random.split(key, 4 + 8 * num_layers))

    def w(shape, scale=0.05):
        return jax.random.normal(next(keys), shape, jnp.float32) * scale

    params = {
        "w_emb": w((input_dim, d_model)),
        "b_emb": jnp.zeros((1, d_model), jnp.float32),
        "pe": make_positional_encoding(max_len, d_model),
        "w_out": w((d_model, future_seq_len * target_dim)),
        "b_out": jnp.zeros((1, future_seq_len * target_dim), jnp.float32),
        "future_seq_len": future_seq_len,
        "target_dim": target_dim,
        "layers": [],
    }
    for _ in range(num_layers):
        params["layers"].append({
            "wqkv": w((d_model, 3 * d_model)), "bqkv": w((1, 3 * d_model)),
            "wo": w((d_model, d_model)), "bo": w((1, d_model)),
            "g1": jnp.ones((1, d_model), jnp.float32),
            "be1": jnp.zeros((1, d_model), jnp.float32),
            "w1": w((d_model, dim_ff)), "b1": w((1, dim_ff)),
            "w2": w((dim_ff, d_model)), "b2": w((1, d_model)),
            "g2": jnp.ones((1, d_model), jnp.float32),
            "be2": jnp.zeros((1, d_model), jnp.float32),
        })
    return params


# ----------------------------------------------------------------------------
# Pure-JAX reference (same math as nn.TransformerEncoderLayer, eval mode).
# ----------------------------------------------------------------------------
def _layernorm(x, g, b, eps=1e-5):
    mu = jnp.mean(x, axis=-1, keepdims=True)
    var = jnp.mean((x - mu) ** 2, axis=-1, keepdims=True)
    return (x - mu) / jnp.sqrt(var + eps) * g + b


def reference_forward(params, x, *, n_heads):
    B, S, In = x.shape
    D = params["w_emb"].shape[1]
    hd = D // n_heads
    h = x.reshape(B * S, In) @ params["w_emb"] + params["b_emb"]
    h = h.reshape(B, S, D) + params["pe"][:S][None]
    for lp in params["layers"]:
        qkv = h @ lp["wqkv"] + lp["bqkv"]
        q, k, v = qkv[..., :D], qkv[..., D:2 * D], qkv[..., 2 * D:]
        split = lambda t: t.reshape(B, S, n_heads, hd).transpose(0, 2, 1, 3)
        s = jnp.einsum("bhqd,bhkd->bhqk", split(q), split(k)) / math.sqrt(hd)
        p = jax.nn.softmax(s, axis=-1)
        a = jnp.einsum("bhqk,bhkd->bhqd", p, split(v)).transpose(0, 2, 1, 3)
        a = a.reshape(B, S, D) @ lp["wo"] + lp["bo"]
        h1 = _layernorm(h + a, lp["g1"], lp["be1"])
        ff = jnp.maximum(h1 @ lp["w1"] + lp["b1"], 0.0) @ lp["w2"] + lp["b2"]
        h = _layernorm(h1 + ff, lp["g2"], lp["be2"])
    pooled = h.mean(axis=1)
    out = pooled @ params["w_out"] + params["b_out"]
    return out.reshape(-1, params["future_seq_len"], params["target_dim"])


# ----------------------------------------------------------------------------
if __name__ == "__main__":
    # Small shapes consistent with the module's forward.
    B, S, input_dim = 2, 8, 16
    d_model, n_heads, num_layers, dim_ff = 128, 8, 2, 256
    future_seq_len, target_dim, max_len = 5, 30, 64

    key = jax.random.PRNGKey(0)
    pkey, xkey = jax.random.split(key)
    params = init_params(
        pkey, input_dim=input_dim, d_model=d_model, num_layers=num_layers,
        dim_ff=dim_ff, future_seq_len=future_seq_len, target_dim=target_dim,
        max_len=max_len,
    )
    x = jax.random.normal(xkey, (B, S, input_dim), jnp.float32)

    out = cross_price_transformer(params, x, n_heads=n_heads)
    out = jax.block_until_ready(out)

    ref = reference_forward(params, x, n_heads=n_heads)
    assert out.shape == (B, future_seq_len, target_dim), out.shape
    # Tolerance accounts for the EUP approximate reciprocal in the softmax.
    assert jnp.allclose(out, ref, rtol=5e-3, atol=5e-3), (
        float(jnp.max(jnp.abs(out - ref)))
    )
    print("KERNEL_OK")
</pallas_src>

<mosaic_0001>
module attributes {stable_mosaic.version = 11 : i64} {
  func.func @fused_forward_kernel(%arg0: memref<16x16xf32, #tpu.memory_space<vmem>>, %arg1: memref<16x128xf32, #tpu.memory_space<vmem>>, %arg2: memref<1x128xf32, #tpu.memory_space<vmem>>, %arg3: memref<8x128xf32, #tpu.memory_space<vmem>>, %arg4: memref<128x384xf32, #tpu.memory_space<vmem>>, %arg5: memref<1x384xf32, #tpu.memory_space<vmem>>, %arg6: memref<128x128xf32, #tpu.memory_space<vmem>>, %arg7: memref<1x128xf32, #tpu.memory_space<vmem>>, %arg8: memref<1x128xf32, #tpu.memory_space<vmem>>, %arg9: memref<1x128xf32, #tpu.memory_space<vmem>>, %arg10: memref<128x256xf32, #tpu.memory_space<vmem>>, %arg11: memref<1x256xf32, #tpu.memory_space<vmem>>, %arg12: memref<256x128xf32, #tpu.memory_space<vmem>>, %arg13: memref<1x128xf32, #tpu.memory_space<vmem>>, %arg14: memref<1x128xf32, #tpu.memory_space<vmem>>, %arg15: memref<1x128xf32, #tpu.memory_space<vmem>>, %arg16: memref<128x384xf32, #tpu.memory_space<vmem>>, %arg17: memref<1x384xf32, #tpu.memory_space<vmem>>, %arg18: memref<128x128xf32, #tpu.memory_space<vmem>>, %arg19: memref<1x128xf32, #tpu.memory_space<vmem>>, %arg20: memref<1x128xf32, #tpu.memory_space<vmem>>, %arg21: memref<1x128xf32, #tpu.memory_space<vmem>>, %arg22: memref<128x256xf32, #tpu.memory_space<vmem>>, %arg23: memref<1x256xf32, #tpu.memory_space<vmem>>, %arg24: memref<256x128xf32, #tpu.memory_space<vmem>>, %arg25: memref<1x128xf32, #tpu.memory_space<vmem>>, %arg26: memref<1x128xf32, #tpu.memory_space<vmem>>, %arg27: memref<1x128xf32, #tpu.memory_space<vmem>>, %arg28: memref<128x256xf32, #tpu.memory_space<vmem>>, %arg29: memref<1x256xf32, #tpu.memory_space<vmem>>, %arg30: memref<2x256xf32, #tpu.memory_space<vmem>>) attributes {dimension_semantics = [], scalar_prefetch = 0 : i64, scratch_operands = 0 : i64, tpu.core_type = #tpu.core_type<tc>} {
    %c0 = arith.constant 0 : index
    %c0_0 = arith.constant 0 : index
    %0 = vector.load %arg0[%c0, %c0_0] : memref<16x16xf32, #tpu.memory_space<vmem>>, vector<16x16xf32>
    %c0_1 = arith.constant 0 : index
    %c0_2 = arith.constant 0 : index
    %1 = vector.load %arg1[%c0_1, %c0_2] : memref<16x128xf32, #tpu.memory_space<vmem>>, vector<16x128xf32>
    %cst = arith.constant dense<0.000000e+00> : vector<16x128xf32>
    %2 = tpu.matmul %0, %1, %cst {dimension_numbers = #tpu.dot_dimension_numbers<[1], [0], [0], [1], [0, 0, 1, 1], [], []>} : vector<16x16xf32>, vector<16x128xf32>, vector<16x128xf32> -> vector<16x128xf32>
    %c0_3 = arith.constant 0 : index
    %c0_4 = arith.constant 0 : index
    %3 = vector.load %arg2[%c0_3, %c0_4] : memref<1x128xf32, #tpu.memory_space<vmem>>, vector<1x128xf32>
    %4 = vector.broadcast %3 : vector<1x128xf32> to vector<16x128xf32>
    %5 = arith.addf %2, %4 : vector<16x128xf32>
    %6 = vector.shape_cast %5 : vector<16x128xf32> to vector<2x8x128xf32>
    %c0_5 = arith.constant 0 : index
    %c0_6 = arith.constant 0 : index
    %7 = vector.load %arg3[%c0_5, %c0_6] : memref<8x128xf32, #tpu.memory_space<vmem>>, vector<8x128xf32>
    %8 = vector.shape_cast %7 : vector<8x128xf32> to vector<1x8x128xf32>
    %9 = vector.broadcast %8 : vector<1x8x128xf32> to vector<2x8x128xf32>
    %10 = arith.addf %6, %9 : vector<2x8x128xf32>
    %11 = vector.shape_cast %10 : vector<2x8x128xf32> to vector<16x128xf32>
    %c0_7 = arith.constant 0 : index
    %c0_8 = arith.constant 0 : index
    %12 = vector.load %arg4[%c0_7, %c0_8] : memref<128x384xf32, #tpu.memory_space<vmem>>, vector<128x384xf32>
    %cst_9 = arith.constant dense<0.000000e+00> : vector<16x384xf32>
    %13 = tpu.matmul %11, %12, %cst_9 {dimension_numbers = #tpu.dot_dimension_numbers<[1], [0], [0], [1], [0, 0, 1, 1], [], []>} : vector<16x128xf32>, vector<128x384xf32>, vector<16x384xf32> -> vector<16x384xf32>
    %c0_10 = arith.constant 0 : index
    %c0_11 = arith.constant 0 : index
    %14 = vector.load %arg5[%c0_10, %c0_11] : memref<1x384xf32, #tpu.memory_space<vmem>>, vector<1x384xf32>
    %15 = vector.broadcast %14 : vector<1x384xf32> to vector<16x384xf32>
    %16 = arith.addf %13, %15 : vector<16x384xf32>
    %17 = vector.shape_cast %16 : vector<16x384xf32> to vector<2x8x384xf32>
    %18 = vector.extract_strided_slice %17 {offsets = [0, 0, 0], sizes = [2, 8, 128], strides = [1, 1, 1]} : vector<2x8x384xf32> to vector<2x8x128xf32>
    %19 = vector.extract_strided_slice %17 {offsets = [0, 0, 128], sizes = [2, 8, 128], strides = [1, 1, 1]} : vector<2x8x384xf32> to vector<2x8x128xf32>
    %20 = vector.extract_strided_slice %17 {offsets = [0, 0, 256], sizes = [2, 8, 128], strides = [1, 1, 1]} : vector<2x8x384xf32> to vector<2x8x128xf32>
    %c0_12 = arith.constant 0 : index
    %c0_13 = arith.constant 0 : index
    %21 = vector.load %arg6[%c0_12, %c0_13] : memref<128x128xf32, #tpu.memory_space<vmem>>, vector<128x128xf32>
    %cst_14 = arith.constant 0.000000e+00 : f32
    %22 = vector.broadcast %cst_14 : f32 to vector<16x128xf32>
    %23 = vector.extract_strided_slice %18 {offsets = [0, 0, 0], sizes = [2, 8, 16], strides = [1, 1, 1]} : vector<2x8x128xf32> to vector<2x8x16xf32>
    %24 = vector.extract_strided_slice %19 {offsets = [0, 0, 0], sizes = [2, 8, 16], strides = [1, 1, 1]} : vector<2x8x128xf32> to vector<2x8x16xf32>
    "tpu.trace_start"() <{level = 10 : i32, message = "bqd,bkd->bqk"}> : () -> ()
    %cst_15 = arith.constant dense<0.000000e+00> : vector<2x8x8xf32>
    %25 = tpu.matmul %23, %24, %cst_15 {dimension_numbers = #tpu.dot_dimension_numbers<[2], [2], [1], [1], [0, 0, 0, 1, 1, 1], [0], [0]>} : vector<2x8x16xf32>, vector<2x8x16xf32>, vector<2x8x8xf32> -> vector<2x8x8xf32>
    "tpu.trace_stop"() : () -> ()
    %cst_16 = arith.constant 2.500000e-01 : f32
    %26 = vector.broadcast %cst_16 : f32 to vector<2x8x8xf32>
    %27 = arith.mulf %25, %26 : vector<2x8x8xf32>
    %cst_17 = arith.constant dense<0xFF800000> : vector<2x8xf32>
    %28 = vector.multi_reduction <maximumf>, %27, %cst_17 [2] : vector<2x8x8xf32> to vector<2x8xf32>
    %29 = vector.shape_cast %28 : vector<2x8xf32> to vector<2x8x1xf32>
    %30 = vector.broadcast %29 : vector<2x8x1xf32> to vector<2x8x8xf32>
    %31 = arith.subf %27, %30 : vector<2x8x8xf32>
    %32 = math.exp %31 : vector<2x8x8xf32>
    %cst_18 = arith.constant dense<0.000000e+00> : vector<2x8xf32>
    %33 = vector.multi_reduction <add>, %32, %cst_18 [2] : vector<2x8x8xf32> to vector<2x8xf32>
    %34 = vector.shape_cast %33 : vector<2x8xf32> to vector<2x8x1xf32>
    %35 = tpu.reciprocal %34 {approx = true} : vector<2x8x1xf32> -> vector<2x8x1xf32>
    %36 = vector.broadcast %35 : vector<2x8x1xf32> to vector<2x8x8xf32>
    %37 = arith.mulf %32, %36 : vector<2x8x8xf32>
    %38 = vector.extract_strided_slice %20 {offsets = [0, 0, 0], sizes = [2, 8, 16], strides = [1, 1, 1]} : vector<2x8x128xf32> to vector<2x8x16xf32>
    "tpu.trace_start"() <{level = 10 : i32, message = "bqk,bkd->bqd"}> : () -> ()
    %cst_19 = arith.constant dense<0.000000e+00> : vector<2x8x16xf32>
    %39 = tpu.matmul %37, %38, %cst_19 {dimension_numbers = #tpu.dot_dimension_numbers<[2], [1], [1], [2], [0, 0, 0, 1, 1, 2], [0], [0]>} : vector<2x8x8xf32>, vector<2x8x16xf32>, vector<2x8x16xf32> -> vector<2x8x16xf32>
    "tpu.trace_stop"() : () -> ()
    %40 = vector.shape_cast %39 : vector<2x8x16xf32> to vector<16x16xf32>
    %41 = vector.extract_strided_slice %21 {offsets = [0, 0], sizes = [16, 128], strides = [1, 1]} : vector<128x128xf32> to vector<16x128xf32>
    %cst_20 = arith.constant dense<0.000000e+00> : vector<16x128xf32>
    %42 = tpu.matmul %40, %41, %cst_20 {dimension_numbers = #tpu.dot_dimension_numbers<[1], [0], [0], [1], [0, 0, 1, 1], [], []>} : vector<16x16xf32>, vector<16x128xf32>, vector<16x128xf32> -> vector<16x128xf32>
    %43 = arith.addf %22, %42 : vector<16x128xf32>
    %44 = vector.extract_strided_slice %18 {offsets = [0, 0, 16], sizes = [2, 8, 16], strides = [1, 1, 1]} : vector<2x8x128xf32> to vector<2x8x16xf32>
    %45 = vector.extract_strided_slice %19 {offsets = [0, 0, 16], sizes = [2, 8, 16], strides = [1, 1, 1]} : vector<2x8x128xf32> to vector<2x8x16xf32>
    "tpu.trace_start"() <{level = 10 : i32, message = "bqd,bkd->bqk"}> : () -> ()
    %cst_21 = arith.constant dense<0.000000e+00> : vector<2x8x8xf32>
    %46 = tpu.matmul %44, %45, %cst_21 {dimension_numbers = #tpu.dot_dimension_numbers<[2], [2], [1], [1], [0, 0, 0, 1, 1, 1], [0], [0]>} : vector<2x8x16xf32>, vector<2x8x16xf32>, vector<2x8x8xf32> -> vector<2x8x8xf32>
    "tpu.trace_stop"() : () -> ()
    %cst_22 = arith.constant 2.500000e-01 : f32
    %47 = vector.broadcast %cst_22 : f32 to vector<2x8x8xf32>
    %48 = arith.mulf %46, %47 : vector<2x8x8xf32>
    %cst_23 = arith.constant dense<0xFF800000> : vector<2x8xf32>
    %49 = vector.multi_reduction <maximumf>, %48, %cst_23 [2] : vector<2x8x8xf32> to vector<2x8xf32>
    %50 = vector.shape_cast %49 : vector<2x8xf32> to vector<2x8x1xf32>
    %51 = vector.broadcast %50 : vector<2x8x1xf32> to vector<2x8x8xf32>
    %52 = arith.subf %48, %51 : vector<2x8x8xf32>
    %53 = math.exp %52 : vector<2x8x8xf32>
    %cst_24 = arith.constant dense<0.000000e+00> : vector<2x8xf32>
    %54 = vector.multi_reduction <add>, %53, %cst_24 [2] : vector<2x8x8xf32> to vector<2x8xf32>
    %55 = vector.shape_cast %54 : vector<2x8xf32> to vector<2x8x1xf32>
    %56 = tpu.reciprocal %55 {approx = true} : vector<2x8x1xf32> -> vector<2x8x1xf32>
    %57 = vector.broadcast %56 : vector<2x8x1xf32> to vector<2x8x8xf32>
    %58 = arith.mulf %53, %57 : vector<2x8x8xf32>
    %59 = vector.extract_strided_slice %20 {offsets = [0, 0, 16], sizes = [2, 8, 16], strides = [1, 1, 1]} : vector<2x8x128xf32> to vector<2x8x16xf32>
    "tpu.trace_start"() <{level = 10 : i32, message = "bqk,bkd->bqd"}> : () -> ()
    %cst_25 = arith.constant dense<0.000000e+00> : vector<2x8x16xf32>
    %60 = tpu.matmul %58, %59, %cst_25 {dimension_numbers = #tpu.dot_dimension_numbers<[2], [1], [1], [2], [0, 0, 0, 1, 1, 2], [0], [0]>} : vector<2x8x8xf32>, vector<2x8x16xf32>, vector<2x8x16xf32> -> vector<2x8x16xf32>
    "tpu.trace_stop"() : () -> ()
    %61 = vector.shape_cast %60 : vector<2x8x16xf32> to vector<16x16xf32>
    %62 = vector.extract_strided_slice %21 {offsets = [16, 0], sizes = [16, 128], strides = [1, 1]} : vector<128x128xf32> to vector<16x128xf32>
    %cst_26 = arith.constant dense<0.000000e+00> : vector<16x128xf32>
    %63 = tpu.matmul %61, %62, %cst_26 {dimension_numbers = #tpu.dot_dimension_numbers<[1], [0], [0], [1], [0, 0, 1, 1], [], []>} : vector<16x16xf32>, vector<16x128xf32>, vector<16x128xf32> -> vector<16x128xf32>
    %64 = arith.addf %43, %63 : vector<16x128xf32>
    %65 = vector.extract_strided_slice %18 {offsets = [0, 0, 32], sizes = [2, 8, 16], strides = [1, 1, 1]} : vector<2x8x128xf32> to vector<2x8x16xf32>
    %66 = vector.extract_strided_slice %19 {offsets = [0, 0, 32], sizes = [2, 8, 16], strides = [1, 1, 1]} : vector<2x8x128xf32> to vector<2x8x16xf32>
    "tpu.trace_start"() <{level = 10 : i32, message = "bqd,bkd->bqk"}> : () -> ()
    %cst_27 = arith.constant dense<0.000000e+00> : vector<2x8x8xf32>
    %67 = tpu.matmul %65, %66, %cst_27 {dimension_numbers = #tpu.dot_dimension_numbers<[2], [2], [1], [1], [0, 0, 0, 1, 1, 1], [0], [0]>} : vector<2x8x16xf32>, vector<2x8x16xf32>, vector<2x8x8xf32> -> vector<2x8x8xf32>
    "tpu.trace_stop"() : () -> ()
    %cst_28 = arith.constant 2.500000e-01 : f32
    %68 = vector.broadcast %cst_28 : f32 to vector<2x8x8xf32>
    %69 = arith.mulf %67, %68 : vector<2x8x8xf32>
    %cst_29 = arith.constant dense<0xFF800000> : vector<2x8xf32>
    %70 = vector.multi_reduction <maximumf>, %69, %cst_29 [2] : vector<2x8x8xf32> to vector<2x8xf32>
    %71 = vector.shape_cast %70 : vector<2x8xf32> to vector<2x8x1xf32>
    %72 = vector.broadcast %71 : vector<2x8x1xf32> to vector<2x8x8xf32>
    %73 = arith.subf %69, %72 : vector<2x8x8xf32>
    %74 = math.exp %73 : vector<2x8x8xf32>
    %cst_30 = arith.constant dense<0.000000e+00> : vector<2x8xf32>
    %75 = vector.multi_reduction <add>, %74, %cst_30 [2] : vector<2x8x8xf32> to vector<2x8xf32>
    %76 = vector.shape_cast %75 : vector<2x8xf32> to vector<2x8x1xf32>
    %77 = tpu.reciprocal %76 {approx = true} : vector<2x8x1xf32> -> vector<2x8x1xf32>
    %78 = vector.broadcast %77 : vector<2x8x1xf32> to vector<2x8x8xf32>
    %79 = arith.mulf %74, %78 : vector<2x8x8xf32>
    %80 = vector.extract_strided_slice %20 {offsets = [0, 0, 32], sizes = [2, 8, 16], strides = [1, 1, 1]} : vector<2x8x128xf32> to vector<2x8x16xf32>
    "tpu.trace_start"() <{level = 10 : i32, message = "bqk,bkd->bqd"}> : () -> ()
    %cst_31 = arith.constant dense<0.000000e+00> : vector<2x8x16xf32>
    %81 = tpu.matmul %79, %80, %cst_31 {dimension_numbers = #tpu.dot_dimension_numbers<[2], [1], [1], [2], [0, 0, 0, 1, 1, 2], [0], [0]>} : vector<2x8x8xf32>, vector<2x8x16xf32>, vector<2x8x16xf32> -> vector<2x8x16xf32>
    "tpu.trace_stop"() : () -> ()
    %82 = vector.shape_cast %81 : vector<2x8x16xf32> to vector<16x16xf32>
    %83 = vector.extract_strided_slice %21 {offsets = [32, 0], sizes = [16, 128], strides = [1, 1]} : vector<128x128xf32> to vector<16x128xf32>
    %cst_32 = arith.constant dense<0.000000e+00> : vector<16x128xf32>
    %84 = tpu.matmul %82, %83, %cst_32 {dimension_numbers = #tpu.dot_dimension_numbers<[1], [0], [0], [1], [0, 0, 1, 1], [], []>} : vector<16x16xf32>, vector<16x128xf32>, vector<16x128xf32> -> vector<16x128xf32>
    %85 = arith.addf %64, %84 : vector<16x128xf32>
    %86 = vector.extract_strided_slice %18 {offsets = [0, 0, 48], sizes = [2, 8, 16], strides = [1, 1, 1]} : vector<2x8x128xf32> to vector<2x8x16xf32>
    %87 = vector.extract_strided_slice %19 {offsets = [0, 0, 48], sizes = [2, 8, 16], strides = [1, 1, 1]} : vector<2x8x128xf32> to vector<2x8x16xf32>
    "tpu.trace_start"() <{level = 10 : i32, message = "bqd,bkd->bqk"}> : () -> ()
    %cst_33 = arith.constant dense<0.000000e+00> : vector<2x8x8xf32>
    %88 = tpu.matmul %86, %87, %cst_33 {dimension_numbers = #tpu.dot_dimension_numbers<[2], [2], [1], [1], [0, 0, 0, 1, 1, 1], [0], [0]>} : vector<2x8x16xf32>, vector<2x8x16xf32>, vector<2x8x8xf32> -> vector<2x8x8xf32>
    "tpu.trace_stop"() : () -> ()
    %cst_34 = arith.constant 2.500000e-01 : f32
    %89 = vector.broadcast %cst_34 : f32 to vector<2x8x8xf32>
    %90 = arith.mulf %88, %89 : vector<2x8x8xf32>
    %cst_35 = arith.constant dense<0xFF800000> : vector<2x8xf32>
    %91 = vector.multi_reduction <maximumf>, %90, %cst_35 [2] : vector<2x8x8xf32> to vector<2x8xf32>
    %92 = vector.shape_cast %91 : vector<2x8xf32> to vector<2x8x1xf32>
    %93 = vector.broadcast %92 : vector<2x8x1xf32> to vector<2x8x8xf32>
    %94 = arith.subf %90, %93 : vector<2x8x8xf32>
    %95 = math.exp %94 : vector<2x8x8xf32>
    %cst_36 = arith.constant dense<0.000000e+00> : vector<2x8xf32>
    %96 = vector.multi_reduction <add>, %95, %cst_36 [2] : vector<2x8x8xf32> to vector<2x8xf32>
    %97 = vector.shape_cast %96 : vector<2x8xf32> to vector<2x8x1xf32>
    %98 = tpu.reciprocal %97 {approx = true} : vector<2x8x1xf32> -> vector<2x8x1xf32>
    %99 = vector.broadcast %98 : vector<2x8x1xf32> to vector<2x8x8xf32>
    %100 = arith.mulf %95, %99 : vector<2x8x8xf32>
    %101 = vector.extract_strided_slice %20 {offsets = [0, 0, 48], sizes = [2, 8, 16], strides = [1, 1, 1]} : vector<2x8x128xf32> to vector<2x8x16xf32>
    "tpu.trace_start"() <{level = 10 : i32, message = "bqk,bkd->bqd"}> : () -> ()
    %cst_37 = arith.constant dense<0.000000e+00> : vector<2x8x16xf32>
    %102 = tpu.matmul %100, %101, %cst_37 {dimension_numbers = #tpu.dot_dimension_numbers<[2], [1], [1], [2], [0, 0, 0, 1, 1, 2], [0], [0]>} : vector<2x8x8xf32>, vector<2x8x16xf32>, vector<2x8x16xf32> -> vector<2x8x16xf32>
    "tpu.trace_stop"() : () -> ()
    %103 = vector.shape_cast %102 : vector<2x8x16xf32> to vector<16x16xf32>
    %104 = vector.extract_strided_slice %21 {offsets = [48, 0], sizes = [16, 128], strides = [1, 1]} : vector<128x128xf32> to vector<16x128xf32>
    %cst_38 = arith.constant dense<0.000000e+00> : vector<16x128xf32>
    %105 = tpu.matmul %103, %104, %cst_38 {dimension_numbers = #tpu.dot_dimension_numbers<[1], [0], [0], [1], [0, 0, 1, 1], [], []>} : vector<16x16xf32>, vector<16x128xf32>, vector<16x128xf32> -> vector<16x128xf32>
    %106 = arith.addf %85, %105 : vector<16x128xf32>
    %107 = vector.extract_strided_slice %18 {offsets = [0, 0, 64], sizes = [2, 8, 16], strides = [1, 1, 1]} : vector<2x8x128xf32> to vector<2x8x16xf32>
    %108 = vector.extract_strided_slice %19 {offsets = [0, 0, 64], sizes = [2, 8, 16], strides = [1, 1, 1]} : vector<2x8x128xf32> to vector<2x8x16xf32>
    "tpu.trace_start"() <{level = 10 : i32, message = "bqd,bkd->bqk"}> : () -> ()
    %cst_39 = arith.constant dense<0.000000e+00> : vector<2x8x8xf32>
    %109 = tpu.matmul %107, %108, %cst_39 {dimension_numbers = #tpu.dot_dimension_numbers<[2], [2], [1], [1], [0, 0, 0, 1, 1, 1], [0], [0]>} : vector<2x8x16xf32>, vector<2x8x16xf32>, vector<2x8x8xf32> -> vector<2x8x8xf32>
    "tpu.trace_stop"() : () -> ()
    %cst_40 = arith.constant 2.500000e-01 : f32
    %110 = vector.broadcast %cst_40 : f32 to vector<2x8x8xf32>
    %111 = arith.mulf %109, %110 : vector<2x8x8xf32>
    %cst_41 = arith.constant dense<0xFF800000> : vector<2x8xf32>
    %112 = vector.multi_reduction <maximumf>, %111, %cst_41 [2] : vector<2x8x8xf32> to vector<2x8xf32>
    %113 = vector.shape_cast %112 : vector<2x8xf32> to vector<2x8x1xf32>
    %114 = vector.broadcast %113 : vector<2x8x1xf32> to vector<2x8x8xf32>
    %115 = arith.subf %111, %114 : vector<2x8x8xf32>
    %116 = math.exp %115 : vector<2x8x8xf32>
    %cst_42 = arith.constant dense<0.000000e+00> : vector<2x8xf32>
    %117 = vector.multi_reduction <add>, %116, %cst_42 [2] : vector<2x8x8xf32> to vector<2x8xf32>
    %118 = vector.shape_cast %117 : vector<2x8xf32> to vector<2x8x1xf32>
    %119 = tpu.reciprocal %118 {approx = true} : vector<2x8x1xf32> -> vector<2x8x1xf32>
    %120 = vector.broadcast %119 : vector<2x8x1xf32> to vector<2x8x8xf32>
    %121 = arith.mulf %116, %120 : vector<2x8x8xf32>
    %122 = vector.extract_strided_slice %20 {offsets = [0, 0, 64], sizes = [2, 8, 16], strides = [1, 1, 1]} : vector<2x8x128xf32> to vector<2x8x16xf32>
    "tpu.trace_start"() <{level = 10 : i32, message = "bqk,bkd->bqd"}> : () -> ()
    %cst_43 = arith.constant dense<0.000000e+00> : vector<2x8x16xf32>
    %123 = tpu.matmul %121, %122, %cst_43 {dimension_numbers = #tpu.dot_dimension_numbers<[2], [1], [1], [2], [0, 0, 0, 1, 1, 2], [0], [0]>} : vector<2x8x8xf32>, vector<2x8x16xf32>, vector<2x8x16xf32> -> vector<2x8x16xf32>
    "tpu.trace_stop"() : () -> ()
    %124 = vector.shape_cast %123 : vector<2x8x16xf32> to vector<16x16xf32>
    %125 = vector.extract_strided_slice %21 {offsets = [64, 0], sizes = [16, 128], strides = [1, 1]} : vector<128x128xf32> to vector<16x128xf32>
    %cst_44 = arith.constant dense<0.000000e+00> : vector<16x128xf32>
    %126 = tpu.matmul %124, %125, %cst_44 {dimension_numbers = #tpu.dot_dimension_numbers<[1], [0], [0], [1], [0, 0, 1, 1], [], []>} : vector<16x16xf32>, vector<16x128xf32>, vector<16x128xf32> -> vector<16x128xf32>
    %127 = arith.addf %106, %126 : vector<16x128xf32>
    %128 = vector.extract_strided_slice %18 {offsets = [0, 0, 80], sizes = [2, 8, 16], strides = [1, 1, 1]} : vector<2x8x128xf32> to vector<2x8x16xf32>
    %129 = vector.extract_strided_slice %19 {offsets = [0, 0, 80], sizes = [2, 8, 16], strides = [1, 1, 1]} : vector<2x8x128xf32> to vector<2x8x16xf32>
    "tpu.trace_start"() <{level = 10 : i32, message = "bqd,bkd->bqk"}> : () -> ()
    %cst_45 = arith.constant dense<0.000000e+00> : vector<2x8x8xf32>
    %130 = tpu.matmul %128, %129, %cst_45 {dimension_numbers = #tpu.dot_dimension_numbers<[2], [2], [1], [1], [0, 0, 0, 1, 1, 1], [0], [0]>} : vector<2x8x16xf32>, vector<2x8x16xf32>, vector<2x8x8xf32> -> vector<2x8x8xf32>
    "tpu.trace_stop"() : () -> ()
    %cst_46 = arith.constant 2.500000e-01 : f32
    %131 = vector.broadcast %cst_46 : f32 to vector<2x8x8xf32>
    %132 = arith.mulf %130, %131 : vector<2x8x8xf32>
    %cst_47 = arith.constant dense<0xFF800000> : vector<2x8xf32>
    %133 = vector.multi_reduction <maximumf>, %132, %cst_47 [2] : vector<2x8x8xf32> to vector<2x8xf32>
    %134 = vector.shape_cast %133 : vector<2x8xf32> to vector<2x8x1xf32>
    %135 = vector.broadcast %134 : vector<2x8x1xf32> to vector<2x8x8xf32>
    %136 = arith.subf %132, %135 : vector<2x8x8xf32>
    %137 = math.exp %136 : vector<2x8x8xf32>
    %cst_48 = arith.constant dense<0.000000e+00> : vector<2x8xf32>
    %138 = vector.multi_reduction <add>, %137, %cst_48 [2] : vector<2x8x8xf32> to vector<2x8xf32>
    %139 = vector.shape_cast %138 : vector<2x8xf32> to vector<2x8x1xf32>
    %140 = tpu.reciprocal %139 {approx = true} : vector<2x8x1xf32> -> vector<2x8x1xf32>
    %141 = vector.broadcast %140 : vector<2x8x1xf32> to vector<2x8x8xf32>
    %142 = arith.mulf %137, %141 : vector<2x8x8xf32>
    %143 = vector.extract_strided_slice %20 {offsets = [0, 0, 80], sizes = [2, 8, 16], strides = [1, 1, 1]} : vector<2x8x128xf32> to vector<2x8x16xf32>
    "tpu.trace_start"() <{level = 10 : i32, message = "bqk,bkd->bqd"}> : () -> ()
    %cst_49 = arith.constant dense<0.000000e+00> : vector<2x8x16xf32>
    %144 = tpu.matmul %142, %143, %cst_49 {dimension_numbers = #tpu.dot_dimension_numbers<[2], [1], [1], [2], [0, 0, 0, 1, 1, 2], [0], [0]>} : vector<2x8x8xf32>, vector<2x8x16xf32>, vector<2x8x16xf32> -> vector<2x8x16xf32>
    "tpu.trace_stop"() : () -> ()
    %145 = vector.shape_cast %144 : vector<2x8x16xf32> to vector<16x16xf32>
    %146 = vector.extract_strided_slice %21 {offsets = [80, 0], sizes = [16, 128], strides = [1, 1]} : vector<128x128xf32> to vector<16x128xf32>
    %cst_50 = arith.constant dense<0.000000e+00> : vector<16x128xf32>
    %147 = tpu.matmul %145, %146, %cst_50 {dimension_numbers = #tpu.dot_dimension_numbers<[1], [0], [0], [1], [0, 0, 1, 1], [], []>} : vector<16x16xf32>, vector<16x128xf32>, vector<16x128xf32> -> vector<16x128xf32>
    %148 = arith.addf %127, %147 : vector<16x128xf32>
    %149 = vector.extract_strided_slice %18 {offsets = [0, 0, 96], sizes = [2, 8, 16], strides = [1, 1, 1]} : vector<2x8x128xf32> to vector<2x8x16xf32>
    %150 = vector.extract_strided_slice %19 {offsets = [0, 0, 96], sizes = [2, 8, 16], strides = [1, 1, 1]} : vector<2x8x128xf32> to vector<2x8x16xf32>
    "tpu.trace_start"() <{level = 10 : i32, message = "bqd,bkd->bqk"}> : () -> ()
    %cst_51 = arith.constant dense<0.000000e+00> : vector<2x8x8xf32>
    %151 = tpu.matmul %149, %150, %cst_51 {dimension_numbers = #tpu.dot_dimension_numbers<[2], [2], [1], [1], [0, 0, 0, 1, 1, 1], [0], [0]>} : vector<2x8x16xf32>, vector<2x8x16xf32>, vector<2x8x8xf32> -> vector<2x8x8xf32>
    "tpu.trace_stop"() : () -> ()
    %cst_52 = arith.constant 2.500000e-01 : f32
    %152 = vector.broadcast %cst_52 : f32 to vector<2x8x8xf32>
    %153 = arith.mulf %151, %152 : vector<2x8x8xf32>
    %cst_53 = arith.constant dense<0xFF800000> : vector<2x8xf32>
    %154 = vector.multi_reduction <maximumf>, %153, %cst_53 [2] : vector<2x8x8xf32> to vector<2x8xf32>
    %155 = vector.shape_cast %154 : vector<2x8xf32> to vector<2x8x1xf32>
    %156 = vector.broadcast %155 : vector<2x8x1xf32> to vector<2x8x8xf32>
    %157 = arith.subf %153, %156 : vector<2x8x8xf32>
    %158 = math.exp %157 : vector<2x8x8xf32>
    %cst_54 = arith.constant dense<0.000000e+00> : vector<2x8xf32>
    %159 = vector.multi_reduction <add>, %158, %cst_54 [2] : vector<2x8x8xf32> to vector<2x8xf32>
    %160 = vector.shape_cast %159 : vector<2x8xf32> to vector<2x8x1xf32>
    %161 = tpu.reciprocal %160 {approx = true} : vector<2x8x1xf32> -> vector<2x8x1xf32>
    %162 = vector.broadcast %161 : vector<2x8x1xf32> to vector<2x8x8xf32>
    %163 = arith.mulf %158, %162 : vector<2x8x8xf32>
    %164 = vector.extract_strided_slice %20 {offsets = [0, 0, 96], sizes = [2, 8, 16], strides = [1, 1, 1]} : vector<2x8x128xf32> to vector<2x8x16xf32>
    "tpu.trace_start"() <{level = 10 : i32, message = "bqk,bkd->bqd"}> : () -> ()
    %cst_55 = arith.constant dense<0.000000e+00> : vector<2x8x16xf32>
    %165 = tpu.matmul %163, %164, %cst_55 {dimension_numbers = #tpu.dot_dimension_numbers<[2], [1], [1], [2], [0, 0, 0, 1, 1, 2], [0], [0]>} : vector<2x8x8xf32>, vector<2x8x16xf32>, vector<2x8x16xf32> -> vector<2x8x16xf32>
    "tpu.trace_stop"() : () -> ()
    %166 = vector.shape_cast %165 : vector<2x8x16xf32> to vector<16x16xf32>
    %167 = vector.extract_strided_slice %21 {offsets = [96, 0], sizes = [16, 128], strides = [1, 1]} : vector<128x128xf32> to vector<16x128xf32>
    %cst_56 = arith.constant dense<0.000000e+00> : vector<16x128xf32>
    %168 = tpu.matmul %166, %167, %cst_56 {dimension_numbers = #tpu.dot_dimension_numbers<[1], [0], [0], [1], [0, 0, 1, 1], [], []>} : vector<16x16xf32>, vector<16x128xf32>, vector<16x128xf32> -> vector<16x128xf32>
    %169 = arith.addf %148, %168 : vector<16x128xf32>
    %170 = vector.extract_strided_slice %18 {offsets = [0, 0, 112], sizes = [2, 8, 16], strides = [1, 1, 1]} : vector<2x8x128xf32> to vector<2x8x16xf32>
    %171 = vector.extract_strided_slice %19 {offsets = [0, 0, 112], sizes = [2, 8, 16], strides = [1, 1, 1]} : vector<2x8x128xf32> to vector<2x8x16xf32>
    "tpu.trace_start"() <{level = 10 : i32, message = "bqd,bkd->bqk"}> : () -> ()
    %cst_57 = arith.constant dense<0.000000e+00> : vector<2x8x8xf32>
    %172 = tpu.matmul %170, %171, %cst_57 {dimension_numbers = #tpu.dot_dimension_numbers<[2], [2], [1], [1], [0, 0, 0, 1, 1, 1], [0], [0]>} : vector<2x8x16xf32>, vector<2x8x16xf32>, vector<2x8x8xf32> -> vector<2x8x8xf32>
    "tpu.trace_stop"() : () -> ()
    %cst_58 = arith.constant 2.500000e-01 : f32
    %173 = vector.broadcast %cst_58 : f32 to vector<2x8x8xf32>
    %174 = arith.mulf %172, %173 : vector<2x8x8xf32>
    %cst_59 = arith.constant dense<0xFF800000> : vector<2x8xf32>
    %175 = vector.multi_reduction <maximumf>, %174, %cst_59 [2] : vector<2x8x8xf32> to vector<2x8xf32>
    %176 = vector.shape_cast %175 : vector<2x8xf32> to vector<2x8x1xf32>
    %177 = vector.broadcast %176 : vector<2x8x1xf32> to vector<2x8x8xf32>
    %178 = arith.subf %174, %177 : vector<2x8x8xf32>
    %179 = math.exp %178 : vector<2x8x8xf32>
    %cst_60 = arith.constant dense<0.000000e+00> : vector<2x8xf32>
    %180 = vector.multi_reduction <add>, %179, %cst_60 [2] : vector<2x8x8xf32> to vector<2x8xf32>
    %181 = vector.shape_cast %180 : vector<2x8xf32> to vector<2x8x1xf32>
    %182 = tpu.reciprocal %181 {approx = true} : vector<2x8x1xf32> -> vector<2x8x1xf32>
    %183 = vector.broadcast %182 : vector<2x8x1xf32> to vector<2x8x8xf32>
    %184 = arith.mulf %179, %183 : vector<2x8x8xf32>
    %185 = vector.extract_strided_slice %20 {offsets = [0, 0, 112], sizes = [2, 8, 16], strides = [1, 1, 1]} : vector<2x8x128xf32> to vector<2x8x16xf32>
    "tpu.trace_start"() <{level = 10 : i32, message = "bqk,bkd->bqd"}> : () -> ()
    %cst_61 = arith.constant dense<0.000000e+00> : vector<2x8x16xf32>
    %186 = tpu.matmul %184, %185, %cst_61 {dimension_numbers = #tpu.dot_dimension_numbers<[2], [1], [1], [2], [0, 0, 0, 1, 1, 2], [0], [0]>} : vector<2x8x8xf32>, vector<2x8x16xf32>, vector<2x8x16xf32> -> vector<2x8x16xf32>
    "tpu.trace_stop"() : () -> ()
    %187 = vector.shape_cast %186 : vector<2x8x16xf32> to vector<16x16xf32>
    %188 = vector.extract_strided_slice %21 {offsets = [112, 0], sizes = [16, 128], strides = [1, 1]} : vector<128x128xf32> to vector<16x128xf32>
    %cst_62 = arith.constant dense<0.000000e+00> : vector<16x128xf32>
    %189 = tpu.matmul %187, %188, %cst_62 {dimension_numbers = #tpu.dot_dimension_numbers<[1], [0], [0], [1], [0, 0, 1, 1], [], []>} : vector<16x16xf32>, vector<16x128xf32>, vector<16x128xf32> -> vector<16x128xf32>
    %190 = arith.addf %169, %189 : vector<16x128xf32>
    %c0_63 = arith.constant 0 : index
    %c0_64 = arith.constant 0 : index
    %191 = vector.load %arg7[%c0_63, %c0_64] : memref<1x128xf32, #tpu.memory_space<vmem>>, vector<1x128xf32>
    %192 = vector.broadcast %191 : vector<1x128xf32> to vector<16x128xf32>
    %193 = arith.addf %190, %192 : vector<16x128xf32>
    %194 = arith.addf %11, %193 : vector<16x128xf32>
    %cst_65 = arith.constant dense<0.000000e+00> : vector<16xf32>
    %195 = vector.multi_reduction <add>, %194, %cst_65 [1] : vector<16x128xf32> to vector<16xf32>
    %196 = vector.shape_cast %195 : vector<16xf32> to vector<16x1xf32>
    %cst_66 = arith.constant 1.280000e+02 : f32
    %197 = vector.broadcast %cst_66 : f32 to vector<16x1xf32>
    %198 = arith.divf %196, %197 : vector<16x1xf32>
    %199 = vector.broadcast %198 : vector<16x1xf32> to vector<16x128xf32>
    %200 = arith.subf %194, %199 : vector<16x128xf32>
    %201 = arith.mulf %200, %200 : vector<16x128xf32>
    %cst_67 = arith.constant dense<0.000000e+00> : vector<16xf32>
    %202 = vector.multi_reduction <add>, %201, %cst_67 [1] : vector<16x128xf32> to vector<16xf32>
    %203 = vector.shape_cast %202 : vector<16xf32> to vector<16x1xf32>
    %cst_68 = arith.constant 1.280000e+02 : f32
    %204 = vector.broadcast %cst_68 : f32 to vector<16x1xf32>
    %205 = arith.divf %203, %204 : vector<16x1xf32>
    %206 = vector.broadcast %198 : vector<16x1xf32> to vector<16x128xf32>
    %207 = arith.subf %194, %206 : vector<16x128xf32>
    %cst_69 = arith.constant 9.99999974E-6 : f32
    %208 = vector.broadcast %cst_69 : f32 to vector<16x1xf32>
    %209 = arith.addf %205, %208 : vector<16x1xf32>
    %210 = math.rsqrt %209 : vector<16x1xf32>
    %211 = vector.broadcast %210 : vector<16x1xf32> to vector<16x128xf32>
    %212 = arith.mulf %207, %211 : vector<16x128xf32>
    %c0_70 = arith.constant 0 : index
    %c0_71 = arith.constant 0 : index
    %213 = vector.load %arg8[%c0_70, %c0_71] : memref<1x128xf32, #tpu.memory_space<vmem>>, vector<1x128xf32>
    %214 = vector.broadcast %213 : vector<1x128xf32> to vector<16x128xf32>
    %215 = arith.mulf %212, %214 : vector<16x128xf32>
    %c0_72 = arith.constant 0 : index
    %c0_73 = arith.constant 0 : index
    %216 = vector.load %arg9[%c0_72, %c0_73] : memref<1x128xf32, #tpu.memory_space<vmem>>, vector<1x128xf32>
    %217 = vector.broadcast %216 : vector<1x128xf32> to vector<16x128xf32>
    %218 = arith.addf %215, %217 : vector<16x128xf32>
    %c0_74 = arith.constant 0 : index
    %c0_75 = arith.constant 0 : index
    %219 = vector.load %arg10[%c0_74, %c0_75] : memref<128x256xf32, #tpu.memory_space<vmem>>, vector<128x256xf32>
    %cst_76 = arith.constant dense<0.000000e+00> : vector<16x256xf32>
    %220 = tpu.matmul %218, %219, %cst_76 {dimension_numbers = #tpu.dot_dimension_numbers<[1], [0], [0], [1], [0, 0, 1, 1], [], []>} : vector<16x128xf32>, vector<128x256xf32>, vector<16x256xf32> -> vector<16x256xf32>
    %c0_77 = arith.constant 0 : index
    %c0_78 = arith.constant 0 : index
    %221 = vector.load %arg11[%c0_77, %c0_78] : memref<1x256xf32, #tpu.memory_space<vmem>>, vector<1x256xf32>
    %222 = vector.broadcast %221 : vector<1x256xf32> to vector<16x256xf32>
    %223 = arith.addf %220, %222 : vector<16x256xf32>
    %cst_79 = arith.constant 0.000000e+00 : f32
    %224 = vector.broadcast %cst_79 : f32 to vector<16x256xf32>
    %225 = arith.maximumf %223, %224 : vector<16x256xf32>
    %c0_80 = arith.constant 0 : index
    %c0_81 = arith.constant 0 : index
    %226 = vector.load %arg12[%c0_80, %c0_81] : memref<256x128xf32, #tpu.memory_space<vmem>>, vector<256x128xf32>
    %cst_82 = arith.constant dense<0.000000e+00> : vector<16x128xf32>
    %227 = tpu.matmul %225, %226, %cst_82 {dimension_numbers = #tpu.dot_dimension_numbers<[1], [0], [0], [1], [0, 0, 1, 1], [], []>} : vector<16x256xf32>, vector<256x128xf32>, vector<16x128xf32> -> vector<16x128xf32>
    %c0_83 = arith.constant 0 : index
    %c0_84 = arith.constant 0 : index
    %228 = vector.load %arg13[%c0_83, %c0_84] : memref<1x128xf32, #tpu.memory_space<vmem>>, vector<1x128xf32>
    %229 = vector.broadcast %228 : vector<1x128xf32> to vector<16x128xf32>
    %230 = arith.addf %227, %229 : vector<16x128xf32>
    %231 = arith.addf %218, %230 : vector<16x128xf32>
    %cst_85 = arith.constant dense<0.000000e+00> : vector<16xf32>
    %232 = vector.multi_reduction <add>, %231, %cst_85 [1] : vector<16x128xf32> to vector<16xf32>
    %233 = vector.shape_cast %232 : vector<16xf32> to vector<16x1xf32>
    %cst_86 = arith.constant 1.280000e+02 : f32
    %234 = vector.broadcast %cst_86 : f32 to vector<16x1xf32>
    %235 = arith.divf %233, %234 : vector<16x1xf32>
    %236 = vector.broadcast %235 : vector<16x1xf32> to vector<16x128xf32>
    %237 = arith.subf %231, %236 : vector<16x128xf32>
    %238 = arith.mulf %237, %237 : vector<16x128xf32>
    %cst_87 = arith.constant dense<0.000000e+00> : vector<16xf32>
    %239 = vector.multi_reduction <add>, %238, %cst_87 [1] : vector<16x128xf32> to vector<16xf32>
    %240 = vector.shape_cast %239 : vector<16xf32> to vector<16x1xf32>
    %cst_88 = arith.constant 1.280000e+02 : f32
    %241 = vector.broadcast %cst_88 : f32 to vector<16x1xf32>
    %242 = arith.divf %240, %241 : vector<16x1xf32>
    %243 = vector.broadcast %235 : vector<16x1xf32> to vector<16x128xf32>
    %244 = arith.subf %231, %243 : vector<16x128xf32>
    %cst_89 = arith.constant 9.99999974E-6 : f32
    %245 = vector.broadcast %cst_89 : f32 to vector<16x1xf32>
    %246 = arith.addf %242, %245 : vector<16x1xf32>
    %247 = math.rsqrt %246 : vector<16x1xf32>
    %248 = vector.broadcast %247 : vector<16x1xf32> to vector<16x128xf32>
    %249 = arith.mulf %244, %248 : vector<16x128xf32>
    %c0_90 = arith.constant 0 : index
    %c0_91 = arith.constant 0 : index
    %250 = vector.load %arg14[%c0_90, %c0_91] : memref<1x128xf32, #tpu.memory_space<vmem>>, vector<1x128xf32>
    %251 = vector.broadcast %250 : vector<1x128xf32> to vector<16x128xf32>
    %252 = arith.mulf %249, %251 : vector<16x128xf32>
    %c0_92 = arith.constant 0 : index
    %c0_93 = arith.constant 0 : index
    %253 = vector.load %arg15[%c0_92, %c0_93] : memref<1x128xf32, #tpu.memory_space<vmem>>, vector<1x128xf32>
    %254 = vector.broadcast %253 : vector<1x128xf32> to vector<16x128xf32>
    %255 = arith.addf %252, %254 : vector<16x128xf32>
    %c0_94 = arith.constant 0 : index
    %c0_95 = arith.constant 0 : index
    %256 = vector.load %arg16[%c0_94, %c0_95] : memref<128x384xf32, #tpu.memory_space<vmem>>, vector<128x384xf32>
    %cst_96 = arith.constant dense<0.000000e+00> : vector<16x384xf32>
    %257 = tpu.matmul %255, %256, %cst_96 {dimension_numbers = #tpu.dot_dimension_numbers<[1], [0], [0], [1], [0, 0, 1, 1], [], []>} : vector<16x128xf32>, vector<128x384xf32>, vector<16x384xf32> -> vector<16x384xf32>
    %c0_97 = arith.constant 0 : index
    %c0_98 = arith.constant 0 : index
    %258 = vector.load %arg17[%c0_97, %c0_98] : memref<1x384xf32, #tpu.memory_space<vmem>>, vector<1x384xf32>
    %259 = vector.broadcast %258 : vector<1x384xf32> to vector<16x384xf32>
    %260 = arith.addf %257, %259 : vector<16x384xf32>
    %261 = vector.shape_cast %260 : vector<16x384xf32> to vector<2x8x384xf32>
    %262 = vector.extract_strided_slice %261 {offsets = [0, 0, 0], sizes = [2, 8, 128], strides = [1, 1, 1]} : vector<2x8x384xf32> to vector<2x8x128xf32>
    %263 = vector.extract_strided_slice %261 {offsets = [0, 0, 128], sizes = [2, 8, 128], strides = [1, 1, 1]} : vector<2x8x384xf32> to vector<2x8x128xf32>
    %264 = vector.extract_strided_slice %261 {offsets = [0, 0, 256], sizes = [2, 8, 128], strides = [1, 1, 1]} : vector<2x8x384xf32> to vector<2x8x128xf32>
    %c0_99 = arith.constant 0 : index
    %c0_100 = arith.constant 0 : index
    %265 = vector.load %arg18[%c0_99, %c0_100] : memref<128x128xf32, #tpu.memory_space<vmem>>, vector<128x128xf32>
    %cst_101 = arith.constant 0.000000e+00 : f32
    %266 = vector.broadcast %cst_101 : f32 to vector<16x128xf32>
    %267 = vector.extract_strided_slice %262 {offsets = [0, 0, 0], sizes = [2, 8, 16], strides = [1, 1, 1]} : vector<2x8x128xf32> to vector<2x8x16xf32>
    %268 = vector.extract_strided_slice %263 {offsets = [0, 0, 0], sizes = [2, 8, 16], strides = [1, 1, 1]} : vector<2x8x128xf32> to vector<2x8x16xf32>
    "tpu.trace_start"() <{level = 10 : i32, message = "bqd,bkd->bqk"}> : () -> ()
    %cst_102 = arith.constant dense<0.000000e+00> : vector<2x8x8xf32>
    %269 = tpu.matmul %267, %268, %cst_102 {dimension_numbers = #tpu.dot_dimension_numbers<[2], [2], [1], [1], [0, 0, 0, 1, 1, 1], [0], [0]>} : vector<2x8x16xf32>, vector<2x8x16xf32>, vector<2x8x8xf32> -> vector<2x8x8xf32>
    "tpu.trace_stop"() : () -> ()
    %cst_103 = arith.constant 2.500000e-01 : f32
    %270 = vector.broadcast %cst_103 : f32 to vector<2x8x8xf32>
    %271 = arith.mulf %269, %270 : vector<2x8x8xf32>
    %cst_104 = arith.constant dense<0xFF800000> : vector<2x8xf32>
    %272 = vector.multi_reduction <maximumf>, %271, %cst_104 [2] : vector<2x8x8xf32> to vector<2x8xf32>
    %273 = vector.shape_cast %272 : vector<2x8xf32> to vector<2x8x1xf32>
    %274 = vector.broadcast %273 : vector<2x8x1xf32> to vector<2x8x8xf32>
    %275 = arith.subf %271, %274 : vector<2x8x8xf32>
    %276 = math.exp %275 : vector<2x8x8xf32>
    %cst_105 = arith.constant dense<0.000000e+00> : vector<2x8xf32>
    %277 = vector.multi_reduction <add>, %276, %cst_105 [2] : vector<2x8x8xf32> to vector<2x8xf32>
    %278 = vector.shape_cast %277 : vector<2x8xf32> to vector<2x8x1xf32>
    %279 = tpu.reciprocal %278 {approx = true} : vector<2x8x1xf32> -> vector<2x8x1xf32>
    %280 = vector.broadcast %279 : vector<2x8x1xf32> to vector<2x8x8xf32>
    %281 = arith.mulf %276, %280 : vector<2x8x8xf32>
    %282 = vector.extract_strided_slice %264 {offsets = [0, 0, 0], sizes = [2, 8, 16], strides = [1, 1, 1]} : vector<2x8x128xf32> to vector<2x8x16xf32>
    "tpu.trace_start"() <{level = 10 : i32, message = "bqk,bkd->bqd"}> : () -> ()
    %cst_106 = arith.constant dense<0.000000e+00> : vector<2x8x16xf32>
    %283 = tpu.matmul %281, %282, %cst_106 {dimension_numbers = #tpu.dot_dimension_numbers<[2], [1], [1], [2], [0, 0, 0, 1, 1, 2], [0], [0]>} : vector<2x8x8xf32>, vector<2x8x16xf32>, vector<2x8x16xf32> -> vector<2x8x16xf32>
    "tpu.trace_stop"() : () -> ()
    %284 = vector.shape_cast %283 : vector<2x8x16xf32> to vector<16x16xf32>
    %285 = vector.extract_strided_slice %265 {offsets = [0, 0], sizes = [16, 128], strides = [1, 1]} : vector<128x128xf32> to vector<16x128xf32>
    %cst_107 = arith.constant dense<0.000000e+00> : vector<16x128xf32>
    %286 = tpu.matmul %284, %285, %cst_107 {dimension_numbers = #tpu.dot_dimension_numbers<[1], [0], [0], [1], [0, 0, 1, 1], [], []>} : vector<16x16xf32>, vector<16x128xf32>, vector<16x128xf32> -> vector<16x128xf32>
    %287 = arith.addf %266, %286 : vector<16x128xf32>
    %288 = vector.extract_strided_slice %262 {offsets = [0, 0, 16], sizes = [2, 8, 16], strides = [1, 1, 1]} : vector<2x8x128xf32> to vector<2x8x16xf32>
    %289 = vector.extract_strided_slice %263 {offsets = [0, 0, 16], sizes = [2, 8, 16], strides = [1, 1, 1]} : vector<2x8x128xf32> to vector<2x8x16xf32>
    "tpu.trace_start"() <{level = 10 : i32, message = "bqd,bkd->bqk"}> : () -> ()
    %cst_108 = arith.constant dense<0.000000e+00> : vector<2x8x8xf32>
    %290 = tpu.matmul %288, %289, %cst_108 {dimension_numbers = #tpu.dot_dimension_numbers<[2], [2], [1], [1], [0, 0, 0, 1, 1, 1], [0], [0]>} : vector<2x8x16xf32>, vector<2x8x16xf32>, vector<2x8x8xf32> -> vector<2x8x8xf32>
    "tpu.trace_stop"() : () -> ()
    %cst_109 = arith.constant 2.500000e-01 : f32
    %291 = vector.broadcast %cst_109 : f32 to vector<2x8x8xf32>
    %292 = arith.mulf %290, %291 : vector<2x8x8xf32>
    %cst_110 = arith.constant dense<0xFF800000> : vector<2x8xf32>
    %293 = vector.multi_reduction <maximumf>, %292, %cst_110 [2] : vector<2x8x8xf32> to vector<2x8xf32>
    %294 = vector.shape_cast %293 : vector<2x8xf32> to vector<2x8x1xf32>
    %295 = vector.broadcast %294 : vector<2x8x1xf32> to vector<2x8x8xf32>
    %296 = arith.subf %292, %295 : vector<2x8x8xf32>
    %297 = math.exp %296 : vector<2x8x8xf32>
    %cst_111 = arith.constant dense<0.000000e+00> : vector<2x8xf32>
    %298 = vector.multi_reduction <add>, %297, %cst_111 [2] : vector<2x8x8xf32> to vector<2x8xf32>
    %299 = vector.shape_cast %298 : vector<2x8xf32> to vector<2x8x1xf32>
    %300 = tpu.reciprocal %299 {approx = true} : vector<2x8x1xf32> -> vector<2x8x1xf32>
    %301 = vector.broadcast %300 : vector<2x8x1xf32> to vector<2x8x8xf32>
    %302 = arith.mulf %297, %301 : vector<2x8x8xf32>
    %303 = vector.extract_strided_slice %264 {offsets = [0, 0, 16], sizes = [2, 8, 16], strides = [1, 1, 1]} : vector<2x8x128xf32> to vector<2x8x16xf32>
    "tpu.trace_start"() <{level = 10 : i32, message = "bqk,bkd->bqd"}> : () -> ()
    %cst_112 = arith.constant dense<0.000000e+00> : vector<2x8x16xf32>
    %304 = tpu.matmul %302, %303, %cst_112 {dimension_numbers = #tpu.dot_dimension_numbers<[2], [1], [1], [2], [0, 0, 0, 1, 1, 2], [0], [0]>} : vector<2x8x8xf32>, vector<2x8x16xf32>, vector<2x8x16xf32> -> vector<2x8x16xf32>
    "tpu.trace_stop"() : () -> ()
    %305 = vector.shape_cast %304 : vector<2x8x16xf32> to vector<16x16xf32>
    %306 = vector.extract_strided_slice %265 {offsets = [16, 0], sizes = [16, 128], strides = [1, 1]} : vector<128x128xf32> to vector<16x128xf32>
    %cst_113 = arith.constant dense<0.000000e+00> : vector<16x128xf32>
    %307 = tpu.matmul %305, %306, %cst_113 {dimension_numbers = #tpu.dot_dimension_numbers<[1], [0], [0], [1], [0, 0, 1, 1], [], []>} : vector<16x16xf32>, vector<16x128xf32>, vector<16x128xf32> -> vector<16x128xf32>
    %308 = arith.addf %287, %307 : vector<16x128xf32>
    %309 = vector.extract_strided_slice %262 {offsets = [0, 0, 32], sizes = [2, 8, 16], strides = [1, 1, 1]} : vector<2x8x128xf32> to vector<2x8x16xf32>
    %310 = vector.extract_strided_slice %263 {offsets = [0, 0, 32], sizes = [2, 8, 16], strides = [1, 1, 1]} : vector<2x8x128xf32> to vector<2x8x16xf32>
    "tpu.trace_start"() <{level = 10 : i32, message = "bqd,bkd->bqk"}> : () -> ()
    %cst_114 = arith.constant dense<0.000000e+00> : vector<2x8x8xf32>
    %311 = tpu.matmul %309, %310, %cst_114 {dimension_numbers = #tpu.dot_dimension_numbers<[2], [2], [1], [1], [0, 0, 0, 1, 1, 1], [0], [0]>} : vector<2x8x16xf32>, vector<2x8x16xf32>, vector<2x8x8xf32> -> vector<2x8x8xf32>
    "tpu.trace_stop"() : () -> ()
    %cst_115 = arith.constant 2.500000e-01 : f32
    %312 = vector.broadcast %cst_115 : f32 to vector<2x8x8xf32>
    %313 = arith.mulf %311, %312 : vector<2x8x8xf32>
    %cst_116 = arith.constant dense<0xFF800000> : vector<2x8xf32>
    %314 = vector.multi_reduction <maximumf>, %313, %cst_116 [2] : vector<2x8x8xf32> to vector<2x8xf32>
    %315 = vector.shape_cast %314 : vector<2x8xf32> to vector<2x8x1xf32>
    %316 = vector.broadcast %315 : vector<2x8x1xf32> to vector<2x8x8xf32>
    %317 = arith.subf %313, %316 : vector<2x8x8xf32>
    %318 = math.exp %317 : vector<2x8x8xf32>
    %cst_117 = arith.constant dense<0.000000e+00> : vector<2x8xf32>
    %319 = vector.multi_reduction <add>, %318, %cst_117 [2] : vector<2x8x8xf32> to vector<2x8xf32>
    %320 = vector.shape_cast %319 : vector<2x8xf32> to vector<2x8x1xf32>
    %321 = tpu.reciprocal %320 {approx = true} : vector<2x8x1xf32> -> vector<2x8x1xf32>
    %322 = vector.broadcast %321 : vector<2x8x1xf32> to vector<2x8x8xf32>
    %323 = arith.mulf %318, %322 : vector<2x8x8xf32>
    %324 = vector.extract_strided_slice %264 {offsets = [0, 0, 32], sizes = [2, 8, 16], strides = [1, 1, 1]} : vector<2x8x128xf32> to vector<2x8x16xf32>
    "tpu.trace_start"() <{level = 10 : i32, message = "bqk,bkd->bqd"}> : () -> ()
    %cst_118 = arith.constant dense<0.000000e+00> : vector<2x8x16xf32>
    %325 = tpu.matmul %323, %324, %cst_118 {dimension_numbers = #tpu.dot_dimension_numbers<[2], [1], [1], [2], [0, 0, 0, 1, 1, 2], [0], [0]>} : vector<2x8x8xf32>, vector<2x8x16xf32>, vector<2x8x16xf32> -> vector<2x8x16xf32>
    "tpu.trace_stop"() : () -> ()
    %326 = vector.shape_cast %325 : vector<2x8x16xf32> to vector<16x16xf32>
    %327 = vector.extract_strided_slice %265 {offsets = [32, 0], sizes = [16, 128], strides = [1, 1]} : vector<128x128xf32> to vector<16x128xf32>
    %cst_119 = arith.constant dense<0.000000e+00> : vector<16x128xf32>
    %328 = tpu.matmul %326, %327, %cst_119 {dimension_numbers = #tpu.dot_dimension_numbers<[1], [0], [0], [1], [0, 0, 1, 1], [], []>} : vector<16x16xf32>, vector<16x128xf32>, vector<16x128xf32> -> vector<16x128xf32>
    %329 = arith.addf %308, %328 : vector<16x128xf32>
    %330 = vector.extract_strided_slice %262 {offsets = [0, 0, 48], sizes = [2, 8, 16], strides = [1, 1, 1]} : vector<2x8x128xf32> to vector<2x8x16xf32>
    %331 = vector.extract_strided_slice %263 {offsets = [0, 0, 48], sizes = [2, 8, 16], strides = [1, 1, 1]} : vector<2x8x128xf32> to vector<2x8x16xf32>
    "tpu.trace_start"() <{level = 10 : i32, message = "bqd,bkd->bqk"}> : () -> ()
    %cst_120 = arith.constant dense<0.000000e+00> : vector<2x8x8xf32>
    %332 = tpu.matmul %330, %331, %cst_120 {dimension_numbers = #tpu.dot_dimension_numbers<[2], [2], [1], [1], [0, 0, 0, 1, 1, 1], [0], [0]>} : vector<2x8x16xf32>, vector<2x8x16xf32>, vector<2x8x8xf32> -> vector<2x8x8xf32>
    "tpu.trace_stop"() : () -> ()
    %cst_121 = arith.constant 2.500000e-01 : f32
    %333 = vector.broadcast %cst_121 : f32 to vector<2x8x8xf32>
    %334 = arith.mulf %332, %333 : vector<2x8x8xf32>
    %cst_122 = arith.constant dense<0xFF800000> : vector<2x8xf32>
    %335 = vector.multi_reduction <maximumf>, %334, %cst_122 [2] : vector<2x8x8xf32> to vector<2x8xf32>
    %336 = vector.shape_cast %335 : vector<2x8xf32> to vector<2x8x1xf32>
    %337 = vector.broadcast %336 : vector<2x8x1xf32> to vector<2x8x8xf32>
    %338 = arith.subf %334, %337 : vector<2x8x8xf32>
    %339 = math.exp %338 : vector<2x8x8xf32>
    %cst_123 = arith.constant dense<0.000000e+00> : vector<2x8xf32>
    %340 = vector.multi_reduction <add>, %339, %cst_123 [2] : vector<2x8x8xf32> to vector<2x8xf32>
    %341 = vector.shape_cast %340 : vector<2x8xf32> to vector<2x8x1xf32>
    %342 = tpu.reciprocal %341 {approx = true} : vector<2x8x1xf32> -> vector<2x8x1xf32>
    %343 = vector.broadcast %342 : vector<2x8x1xf32> to vector<2x8x8xf32>
    %344 = arith.mulf %339, %343 : vector<2x8x8xf32>
    %345 = vector.extract_strided_slice %264 {offsets = [0, 0, 48], sizes = [2, 8, 16], strides = [1, 1, 1]} : vector<2x8x128xf32> to vector<2x8x16xf32>
    "tpu.trace_start"() <{level = 10 : i32, message = "bqk,bkd->bqd"}> : () -> ()
    %cst_124 = arith.constant dense<0.000000e+00> : vector<2x8x16xf32>
    %346 = tpu.matmul %344, %345, %cst_124 {dimension_numbers = #tpu.dot_dimension_numbers<[2], [1], [1], [2], [0, 0, 0, 1, 1, 2], [0], [0]>} : vector<2x8x8xf32>, vector<2x8x16xf32>, vector<2x8x16xf32> -> vector<2x8x16xf32>
    "tpu.trace_stop"() : () -> ()
    %347 = vector.shape_cast %346 : vector<2x8x16xf32> to vector<16x16xf32>
    %348 = vector.extract_strided_slice %265 {offsets = [48, 0], sizes = [16, 128], strides = [1, 1]} : vector<128x128xf32> to vector<16x128xf32>
    %cst_125 = arith.constant dense<0.000000e+00> : vector<16x128xf32>
    %349 = tpu.matmul %347, %348, %cst_125 {dimension_numbers = #tpu.dot_dimension_numbers<[1], [0], [0], [1], [0, 0, 1, 1], [], []>} : vector<16x16xf32>, vector<16x128xf32>, vector<16x128xf32> -> vector<16x128xf32>
    %350 = arith.addf %329, %349 : vector<16x128xf32>
    %351 = vector.extract_strided_slice %262 {offsets = [0, 0, 64], sizes = [2, 8, 16], strides = [1, 1, 1]} : vector<2x8x128xf32> to vector<2x8x16xf32>
    %352 = vector.extract_strided_slice %263 {offsets = [0, 0, 64], sizes = [2, 8, 16], strides = [1, 1, 1]} : vector<2x8x128xf32> to vector<2x8x16xf32>
    "tpu.trace_start"() <{level = 10 : i32, message = "bqd,bkd->bqk"}> : () -> ()
    %cst_126 = arith.constant dense<0.000000e+00> : vector<2x8x8xf32>
    %353 = tpu.matmul %351, %352, %cst_126 {dimension_numbers = #tpu.dot_dimension_numbers<[2], [2], [1], [1], [0, 0, 0, 1, 1, 1], [0], [0]>} : vector<2x8x16xf32>, vector<2x8x16xf32>, vector<2x8x8xf32> -> vector<2x8x8xf32>
    "tpu.trace_stop"() : () -> ()
    %cst_127 = arith.constant 2.500000e-01 : f32
    %354 = vector.broadcast %cst_127 : f32 to vector<2x8x8xf32>
    %355 = arith.mulf %353, %354 : vector<2x8x8xf32>
    %cst_128 = arith.constant dense<0xFF800000> : vector<2x8xf32>
    %356 = vector.multi_reduction <maximumf>, %355, %cst_128 [2] : vector<2x8x8xf32> to vector<2x8xf32>
    %357 = vector.shape_cast %356 : vector<2x8xf32> to vector<2x8x1xf32>
    %358 = vector.broadcast %357 : vector<2x8x1xf32> to vector<2x8x8xf32>
    %359 = arith.subf %355, %358 : vector<2x8x8xf32>
    %360 = math.exp %359 : vector<2x8x8xf32>
    %cst_129 = arith.constant dense<0.000000e+00> : vector<2x8xf32>
    %361 = vector.multi_reduction <add>, %360, %cst_129 [2] : vector<2x8x8xf32> to vector<2x8xf32>
    %362 = vector.shape_cast %361 : vector<2x8xf32> to vector<2x8x1xf32>
    %363 = tpu.reciprocal %362 {approx = true} : vector<2x8x1xf32> -> vector<2x8x1xf32>
    %364 = vector.broadcast %363 : vector<2x8x1xf32> to vector<2x8x8xf32>
    %365 = arith.mulf %360, %364 : vector<2x8x8xf32>
    %366 = vector.extract_strided_slice %264 {offsets = [0, 0, 64], sizes = [2, 8, 16], strides = [1, 1, 1]} : vector<2x8x128xf32> to vector<2x8x16xf32>
    "tpu.trace_start"() <{level = 10 : i32, message = "bqk,bkd->bqd"}> : () -> ()
    %cst_130 = arith.constant dense<0.000000e+00> : vector<2x8x16xf32>
    %367 = tpu.matmul %365, %366, %cst_130 {dimension_numbers = #tpu.dot_dimension_numbers<[2], [1], [1], [2], [0, 0, 0, 1, 1, 2], [0], [0]>} : vector<2x8x8xf32>, vector<2x8x16xf32>, vector<2x8x16xf32> -> vector<2x8x16xf32>
    "tpu.trace_stop"() : () -> ()
    %368 = vector.shape_cast %367 : vector<2x8x16xf32> to vector<16x16xf32>
    %369 = vector.extract_strided_slice %265 {offsets = [64, 0], sizes = [16, 128], strides = [1, 1]} : vector<128x128xf32> to vector<16x128xf32>
    %cst_131 = arith.constant dense<0.000000e+00> : vector<16x128xf32>
    %370 = tpu.matmul %368, %369, %cst_131 {dimension_numbers = #tpu.dot_dimension_numbers<[1], [0], [0], [1], [0, 0, 1, 1], [], []>} : vector<16x16xf32>, vector<16x128xf32>, vector<16x128xf32> -> vector<16x128xf32>
    %371 = arith.addf %350, %370 : vector<16x128xf32>
    %372 = vector.extract_strided_slice %262 {offsets = [0, 0, 80], sizes = [2, 8, 16], strides = [1, 1, 1]} : vector<2x8x128xf32> to vector<2x8x16xf32>
    %373 = vector.extract_strided_slice %263 {offsets = [0, 0, 80], sizes = [2, 8, 16], strides = [1, 1, 1]} : vector<2x8x128xf32> to vector<2x8x16xf32>
    "tpu.trace_start"() <{level = 10 : i32, message = "bqd,bkd->bqk"}> : () -> ()
    %cst_132 = arith.constant dense<0.000000e+00> : vector<2x8x8xf32>
    %374 = tpu.matmul %372, %373, %cst_132 {dimension_numbers = #tpu.dot_dimension_numbers<[2], [2], [1], [1], [0, 0, 0, 1, 1, 1], [0], [0]>} : vector<2x8x16xf32>, vector<2x8x16xf32>, vector<2x8x8xf32> -> vector<2x8x8xf32>
    "tpu.trace_stop"() : () -> ()
    %cst_133 = arith.constant 2.500000e-01 : f32
    %375 = vector.broadcast %cst_133 : f32 to vector<2x8x8xf32>
    %376 = arith.mulf %374, %375 : vector<2x8x8xf32>
    %cst_134 = arith.constant dense<0xFF800000> : vector<2x8xf32>
    %377 = vector.multi_reduction <maximumf>, %376, %cst_134 [2] : vector<2x8x8xf32> to vector<2x8xf32>
    %378 = vector.shape_cast %377 : vector<2x8xf32> to vector<2x8x1xf32>
    %379 = vector.broadcast %378 : vector<2x8x1xf32> to vector<2x8x8xf32>
    %380 = arith.subf %376, %379 : vector<2x8x8xf32>
    %381 = math.exp %380 : vector<2x8x8xf32>
    %cst_135 = arith.constant dense<0.000000e+00> : vector<2x8xf32>
    %382 = vector.multi_reduction <add>, %381, %cst_135 [2] : vector<2x8x8xf32> to vector<2x8xf32>
    %383 = vector.shape_cast %382 : vector<2x8xf32> to vector<2x8x1xf32>
    %384 = tpu.reciprocal %383 {approx = true} : vector<2x8x1xf32> -> vector<2x8x1xf32>
    %385 = vector.broadcast %384 : vector<2x8x1xf32> to vector<2x8x8xf32>
    %386 = arith.mulf %381, %385 : vector<2x8x8xf32>
    %387 = vector.extract_strided_slice %264 {offsets = [0, 0, 80], sizes = [2, 8, 16], strides = [1, 1, 1]} : vector<2x8x128xf32> to vector<2x8x16xf32>
    "tpu.trace_start"() <{level = 10 : i32, message = "bqk,bkd->bqd"}> : () -> ()
    %cst_136 = arith.constant dense<0.000000e+00> : vector<2x8x16xf32>
    %388 = tpu.matmul %386, %387, %cst_136 {dimension_numbers = #tpu.dot_dimension_numbers<[2], [1], [1], [2], [0, 0, 0, 1, 1, 2], [0], [0]>} : vector<2x8x8xf32>, vector<2x8x16xf32>, vector<2x8x16xf32> -> vector<2x8x16xf32>
    "tpu.trace_stop"() : () -> ()
    %389 = vector.shape_cast %388 : vector<2x8x16xf32> to vector<16x16xf32>
    %390 = vector.extract_strided_slice %265 {offsets = [80, 0], sizes = [16, 128], strides = [1, 1]} : vector<128x128xf32> to vector<16x128xf32>
    %cst_137 = arith.constant dense<0.000000e+00> : vector<16x128xf32>
    %391 = tpu.matmul %389, %390, %cst_137 {dimension_numbers = #tpu.dot_dimension_numbers<[1], [0], [0], [1], [0, 0, 1, 1], [], []>} : vector<16x16xf32>, vector<16x128xf32>, vector<16x128xf32> -> vector<16x128xf32>
    %392 = arith.addf %371, %391 : vector<16x128xf32>
    %393 = vector.extract_strided_slice %262 {offsets = [0, 0, 96], sizes = [2, 8, 16], strides = [1, 1, 1]} : vector<2x8x128xf32> to vector<2x8x16xf32>
    %394 = vector.extract_strided_slice %263 {offsets = [0, 0, 96], sizes = [2, 8, 16], strides = [1, 1, 1]} : vector<2x8x128xf32> to vector<2x8x16xf32>
    "tpu.trace_start"() <{level = 10 : i32, message = "bqd,bkd->bqk"}> : () -> ()
    %cst_138 = arith.constant dense<0.000000e+00> : vector<2x8x8xf32>
    %395 = tpu.matmul %393, %394, %cst_138 {dimension_numbers = #tpu.dot_dimension_numbers<[2], [2], [1], [1], [0, 0, 0, 1, 1, 1], [0], [0]>} : vector<2x8x16xf32>, vector<2x8x16xf32>, vector<2x8x8xf32> -> vector<2x8x8xf32>
    "tpu.trace_stop"() : () -> ()
    %cst_139 = arith.constant 2.500000e-01 : f32
    %396 = vector.broadcast %cst_139 : f32 to vector<2x8x8xf32>
    %397 = arith.mulf %395, %396 : vector<2x8x8xf32>
    %cst_140 = arith.constant dense<0xFF800000> : vector<2x8xf32>
    %398 = vector.multi_reduction <maximumf>, %397, %cst_140 [2] : vector<2x8x8xf32> to vector<2x8xf32>
    %399 = vector.shape_cast %398 : vector<2x8xf32> to vector<2x8x1xf32>
    %400 = vector.broadcast %399 : vector<2x8x1xf32> to vector<2x8x8xf32>
    %401 = arith.subf %397, %400 : vector<2x8x8xf32>
    %402 = math.exp %401 : vector<2x8x8xf32>
    %cst_141 = arith.constant dense<0.000000e+00> : vector<2x8xf32>
    %403 = vector.multi_reduction <add>, %402, %cst_141 [2] : vector<2x8x8xf32> to vector<2x8xf32>
    %404 = vector.shape_cast %403 : vector<2x8xf32> to vector<2x8x1xf32>
    %405 = tpu.reciprocal %404 {approx = true} : vector<2x8x1xf32> -> vector<2x8x1xf32>
    %406 = vector.broadcast %405 : vector<2x8x1xf32> to vector<2x8x8xf32>
    %407 = arith.mulf %402, %406 : vector<2x8x8xf32>
    %408 = vector.extract_strided_slice %264 {offsets = [0, 0, 96], sizes = [2, 8, 16], strides = [1, 1, 1]} : vector<2x8x128xf32> to vector<2x8x16xf32>
    "tpu.trace_start"() <{level = 10 : i32, message = "bqk,bkd->bqd"}> : () -> ()
    %cst_142 = arith.constant dense<0.000000e+00> : vector<2x8x16xf32>
    %409 = tpu.matmul %407, %408, %cst_142 {dimension_numbers = #tpu.dot_dimension_numbers<[2], [1], [1], [2], [0, 0, 0, 1, 1, 2], [0], [0]>} : vector<2x8x8xf32>, vector<2x8x16xf32>, vector<2x8x16xf32> -> vector<2x8x16xf32>
    "tpu.trace_stop"() : () -> ()
    %410 = vector.shape_cast %409 : vector<2x8x16xf32> to vector<16x16xf32>
    %411 = vector.extract_strided_slice %265 {offsets = [96, 0], sizes = [16, 128], strides = [1, 1]} : vector<128x128xf32> to vector<16x128xf32>
    %cst_143 = arith.constant dense<0.000000e+00> : vector<16x128xf32>
    %412 = tpu.matmul %410, %411, %cst_143 {dimension_numbers = #tpu.dot_dimension_numbers<[1], [0], [0], [1], [0, 0, 1, 1], [], []>} : vector<16x16xf32>, vector<16x128xf32>, vector<16x128xf32> -> vector<16x128xf32>
    %413 = arith.addf %392, %412 : vector<16x128xf32>
    %414 = vector.extract_strided_slice %262 {offsets = [0, 0, 112], sizes = [2, 8, 16], strides = [1, 1, 1]} : vector<2x8x128xf32> to vector<2x8x16xf32>
    %415 = vector.extract_strided_slice %263 {offsets = [0, 0, 112], sizes = [2, 8, 16], strides = [1, 1, 1]} : vector<2x8x128xf32> to vector<2x8x16xf32>
    "tpu.trace_start"() <{level = 10 : i32, message = "bqd,bkd->bqk"}> : () -> ()
    %cst_144 = arith.constant dense<0.000000e+00> : vector<2x8x8xf32>
    %416 = tpu.matmul %414, %415, %cst_144 {dimension_numbers = #tpu.dot_dimension_numbers<[2], [2], [1], [1], [0, 0, 0, 1, 1, 1], [0], [0]>} : vector<2x8x16xf32>, vector<2x8x16xf32>, vector<2x8x8xf32> -> vector<2x8x8xf32>
    "tpu.trace_stop"() : () -> ()
    %cst_145 = arith.constant 2.500000e-01 : f32
    %417 = vector.broadcast %cst_145 : f32 to vector<2x8x8xf32>
    %418 = arith.mulf %416, %417 : vector<2x8x8xf32>
    %cst_146 = arith.constant dense<0xFF800000> : vector<2x8xf32>
    %419 = vector.multi_reduction <maximumf>, %418, %cst_146 [2] : vector<2x8x8xf32> to vector<2x8xf32>
    %420 = vector.shape_cast %419 : vector<2x8xf32> to vector<2x8x1xf32>
    %421 = vector.broadcast %420 : vector<2x8x1xf32> to vector<2x8x8xf32>
    %422 = arith.subf %418, %421 : vector<2x8x8xf32>
    %423 = math.exp %422 : vector<2x8x8xf32>
    %cst_147 = arith.constant dense<0.000000e+00> : vector<2x8xf32>
    %424 = vector.multi_reduction <add>, %423, %cst_147 [2] : vector<2x8x8xf32> to vector<2x8xf32>
    %425 = vector.shape_cast %424 : vector<2x8xf32> to vector<2x8x1xf32>
    %426 = tpu.reciprocal %425 {approx = true} : vector<2x8x1xf32> -> vector<2x8x1xf32>
    %427 = vector.broadcast %426 : vector<2x8x1xf32> to vector<2x8x8xf32>
    %428 = arith.mulf %423, %427 : vector<2x8x8xf32>
    %429 = vector.extract_strided_slice %264 {offsets = [0, 0, 112], sizes = [2, 8, 16], strides = [1, 1, 1]} : vector<2x8x128xf32> to vector<2x8x16xf32>
    "tpu.trace_start"() <{level = 10 : i32, message = "bqk,bkd->bqd"}> : () -> ()
    %cst_148 = arith.constant dense<0.000000e+00> : vector<2x8x16xf32>
    %430 = tpu.matmul %428, %429, %cst_148 {dimension_numbers = #tpu.dot_dimension_numbers<[2], [1], [1], [2], [0, 0, 0, 1, 1, 2], [0], [0]>} : vector<2x8x8xf32>, vector<2x8x16xf32>, vector<2x8x16xf32> -> vector<2x8x16xf32>
    "tpu.trace_stop"() : () -> ()
    %431 = vector.shape_cast %430 : vector<2x8x16xf32> to vector<16x16xf32>
    %432 = vector.extract_strided_slice %265 {offsets = [112, 0], sizes = [16, 128], strides = [1, 1]} : vector<128x128xf32> to vector<16x128xf32>
    %cst_149 = arith.constant dense<0.000000e+00> : vector<16x128xf32>
    %433 = tpu.matmul %431, %432, %cst_149 {dimension_numbers = #tpu.dot_dimension_numbers<[1], [0], [0], [1], [0, 0, 1, 1], [], []>} : vector<16x16xf32>, vector<16x128xf32>, vector<16x128xf32> -> vector<16x128xf32>
    %434 = arith.addf %413, %433 : vector<16x128xf32>
    %c0_150 = arith.constant 0 : index
    %c0_151 = arith.constant 0 : index
    %435 = vector.load %arg19[%c0_150, %c0_151] : memref<1x128xf32, #tpu.memory_space<vmem>>, vector<1x128xf32>
    %436 = vector.broadcast %435 : vector<1x128xf32> to vector<16x128xf32>
    %437 = arith.addf %434, %436 : vector<16x128xf32>
    %438 = arith.addf %255, %437 : vector<16x128xf32>
    %cst_152 = arith.constant dense<0.000000e+00> : vector<16xf32>
    %439 = vector.multi_reduction <add>, %438, %cst_152 [1] : vector<16x128xf32> to vector<16xf32>
    %440 = vector.shape_cast %439 : vector<16xf32> to vector<16x1xf32>
    %cst_153 = arith.constant 1.280000e+02 : f32
    %441 = vector.broadcast %cst_153 : f32 to vector<16x1xf32>
    %442 = arith.divf %440, %441 : vector<16x1xf32>
    %443 = vector.broadcast %442 : vector<16x1xf32> to vector<16x128xf32>
    %444 = arith.subf %438, %443 : vector<16x128xf32>
    %445 = arith.mulf %444, %444 : vector<16x128xf32>
    %cst_154 = arith.constant dense<0.000000e+00> : vector<16xf32>
    %446 = vector.multi_reduction <add>, %445, %cst_154 [1] : vector<16x128xf32> to vector<16xf32>
    %447 = vector.shape_cast %446 : vector<16xf32> to vector<16x1xf32>
    %cst_155 = arith.constant 1.280000e+02 : f32
    %448 = vector.broadcast %cst_155 : f32 to vector<16x1xf32>
    %449 = arith.divf %447, %448 : vector<16x1xf32>
    %450 = vector.broadcast %442 : vector<16x1xf32> to vector<16x128xf32>
    %451 = arith.subf %438, %450 : vector<16x128xf32>
    %cst_156 = arith.constant 9.99999974E-6 : f32
    %452 = vector.broadcast %cst_156 : f32 to vector<16x1xf32>
    %453 = arith.addf %449, %452 : vector<16x1xf32>
    %454 = math.rsqrt %453 : vector<16x1xf32>
    %455 = vector.broadcast %454 : vector<16x1xf32> to vector<16x128xf32>
    %456 = arith.mulf %451, %455 : vector<16x128xf32>
    %c0_157 = arith.constant 0 : index
    %c0_158 = arith.constant 0 : index
    %457 = vector.load %arg20[%c0_157, %c0_158] : memref<1x128xf32, #tpu.memory_space<vmem>>, vector<1x128xf32>
    %458 = vector.broadcast %457 : vector<1x128xf32> to vector<16x128xf32>
    %459 = arith.mulf %456, %458 : vector<16x128xf32>
    %c0_159 = arith.constant 0 : index
    %c0_160 = arith.constant 0 : index
    %460 = vector.load %arg21[%c0_159, %c0_160] : memref<1x128xf32, #tpu.memory_space<vmem>>, vector<1x128xf32>
    %461 = vector.broadcast %460 : vector<1x128xf32> to vector<16x128xf32>
    %462 = arith.addf %459, %461 : vector<16x128xf32>
    %c0_161 = arith.constant 0 : index
    %c0_162 = arith.constant 0 : index
    %463 = vector.load %arg22[%c0_161, %c0_162] : memref<128x256xf32, #tpu.memory_space<vmem>>, vector<128x256xf32>
    %cst_163 = arith.constant dense<0.000000e+00> : vector<16x256xf32>
    %464 = tpu.matmul %462, %463, %cst_163 {dimension_numbers = #tpu.dot_dimension_numbers<[1], [0], [0], [1], [0, 0, 1, 1], [], []>} : vector<16x128xf32>, vector<128x256xf32>, vector<16x256xf32> -> vector<16x256xf32>
    %c0_164 = arith.constant 0 : index
    %c0_165 = arith.constant 0 : index
    %465 = vector.load %arg23[%c0_164, %c0_165] : memref<1x256xf32, #tpu.memory_space<vmem>>, vector<1x256xf32>
    %466 = vector.broadcast %465 : vector<1x256xf32> to vector<16x256xf32>
    %467 = arith.addf %464, %466 : vector<16x256xf32>
    %cst_166 = arith.constant 0.000000e+00 : f32
    %468 = vector.broadcast %cst_166 : f32 to vector<16x256xf32>
    %469 = arith.maximumf %467, %468 : vector<16x256xf32>
    %c0_167 = arith.constant 0 : index
    %c0_168 = arith.constant 0 : index
    %470 = vector.load %arg24[%c0_167, %c0_168] : memref<256x128xf32, #tpu.memory_space<vmem>>, vector<256x128xf32>
    %cst_169 = arith.constant dense<0.000000e+00> : vector<16x128xf32>
    %471 = tpu.matmul %469, %470, %cst_169 {dimension_numbers = #tpu.dot_dimension_numbers<[1], [0], [0], [1], [0, 0, 1, 1], [], []>} : vector<16x256xf32>, vector<256x128xf32>, vector<16x128xf32> -> vector<16x128xf32>
    %c0_170 = arith.constant 0 : index
    %c0_171 = arith.constant 0 : index
    %472 = vector.load %arg25[%c0_170, %c0_171] : memref<1x128xf32, #tpu.memory_space<vmem>>, vector<1x128xf32>
    %473 = vector.broadcast %472 : vector<1x128xf32> to vector<16x128xf32>
    %474 = arith.addf %471, %473 : vector<16x128xf32>
    %475 = arith.addf %462, %474 : vector<16x128xf32>
    %cst_172 = arith.constant dense<0.000000e+00> : vector<16xf32>
    %476 = vector.multi_reduction <add>, %475, %cst_172 [1] : vector<16x128xf32> to vector<16xf32>
    %477 = vector.shape_cast %476 : vector<16xf32> to vector<16x1xf32>
    %cst_173 = arith.constant 1.280000e+02 : f32
    %478 = vector.broadcast %cst_173 : f32 to vector<16x1xf32>
    %479 = arith.divf %477, %478 : vector<16x1xf32>
    %480 = vector.broadcast %479 : vector<16x1xf32> to vector<16x128xf32>
    %481 = arith.subf %475, %480 : vector<16x128xf32>
    %482 = arith.mulf %481, %481 : vector<16x128xf32>
    %cst_174 = arith.constant dense<0.000000e+00> : vector<16xf32>
    %483 = vector.multi_reduction <add>, %482, %cst_174 [1] : vector<16x128xf32> to vector<16xf32>
    %484 = vector.shape_cast %483 : vector<16xf32> to vector<16x1xf32>
    %cst_175 = arith.constant 1.280000e+02 : f32
    %485 = vector.broadcast %cst_175 : f32 to vector<16x1xf32>
    %486 = arith.divf %484, %485 : vector<16x1xf32>
    %487 = vector.broadcast %479 : vector<16x1xf32> to vector<16x128xf32>
    %488 = arith.subf %475, %487 : vector<16x128xf32>
    %cst_176 = arith.constant 9.99999974E-6 : f32
    %489 = vector.broadcast %cst_176 : f32 to vector<16x1xf32>
    %490 = arith.addf %486, %489 : vector<16x1xf32>
    %491 = math.rsqrt %490 : vector<16x1xf32>
    %492 = vector.broadcast %491 : vector<16x1xf32> to vector<16x128xf32>
    %493 = arith.mulf %488, %492 : vector<16x128xf32>
    %c0_177 = arith.constant 0 : index
    %c0_178 = arith.constant 0 : index
    %494 = vector.load %arg26[%c0_177, %c0_178] : memref<1x128xf32, #tpu.memory_space<vmem>>, vector<1x128xf32>
    %495 = vector.broadcast %494 : vector<1x128xf32> to vector<16x128xf32>
    %496 = arith.mulf %493, %495 : vector<16x128xf32>
    %c0_179 = arith.constant 0 : index
    %c0_180 = arith.constant 0 : index
    %497 = vector.load %arg27[%c0_179, %c0_180] : memref<1x128xf32, #tpu.memory_space<vmem>>, vector<1x128xf32>
    %498 = vector.broadcast %497 : vector<1x128xf32> to vector<16x128xf32>
    %499 = arith.addf %496, %498 : vector<16x128xf32>
    %500 = vector.shape_cast %499 : vector<16x128xf32> to vector<2x8x128xf32>
    %cst_181 = arith.constant dense<0.000000e+00> : vector<2x128xf32>
    %501 = vector.multi_reduction <add>, %500, %cst_181 [1] : vector<2x8x128xf32> to vector<2x128xf32>
    %cst_182 = arith.constant 8.000000e+00 : f32
    %502 = vector.broadcast %cst_182 : f32 to vector<2x128xf32>
    %503 = arith.divf %501, %502 : vector<2x128xf32>
    %c0_183 = arith.constant 0 : index
    %c0_184 = arith.constant 0 : index
    %504 = vector.load %arg28[%c0_183, %c0_184] : memref<128x256xf32, #tpu.memory_space<vmem>>, vector<128x256xf32>
    %cst_185 = arith.constant dense<0.000000e+00> : vector<2x256xf32>
    %505 = tpu.matmul %503, %504, %cst_185 {dimension_numbers = #tpu.dot_dimension_numbers<[1], [0], [0], [1], [0, 0, 1, 1], [], []>} : vector<2x128xf32>, vector<128x256xf32>, vector<2x256xf32> -> vector<2x256xf32>
    %c0_186 = arith.constant 0 : index
    %c0_187 = arith.constant 0 : index
    %506 = vector.load %arg29[%c0_186, %c0_187] : memref<1x256xf32, #tpu.memory_space<vmem>>, vector<1x256xf32>
    %507 = vector.broadcast %506 : vector<1x256xf32> to vector<2x256xf32>
    %508 = arith.addf %505, %507 : vector<2x256xf32>
    %c0_188 = arith.constant 0 : index
    %c0_189 = arith.constant 0 : index
    %509 = vector.load %arg30[%c0_188, %c0_189] : memref<2x256xf32, #tpu.memory_space<vmem>>, vector<2x256xf32>
    tpu.vector_store %arg30[%c0_188, %c0_189], %508 {strides = array<i32>} : memref<2x256xf32, #tpu.memory_space<vmem>>, vector<2x256xf32>,
    return
  }
}

</mosaic_0001>

<bundles_post_ra>
// kernel: tpu_custom_call.1
= control target key start
LH: loop header
LB: loop body
LE: loop exit
PB: predicated region body
PF: predicated region fallthrough
CT: control target
= control target key end

     0   :  { %s4843_s6 = smov 1   ;;  %s4844_s10 = smov 2   ;;  %s5764_s0 = inlined_call_operand.smem [shape: u32[31], index: -1, kind: input, shape index: {}] }
   0x1   :  { %s4913_s5 = sld [smem:[%s5764_s0]]   ;;  %s4845_s14 = smov 3  }
   0x2   :  { %s4918_s9 = sld [smem:[%s5764_s0 + %s4843_s6]]   ;;  %s4846_s18 = smov 4  }
   0x3   :  { %s4923_s13 = sld [smem:[%s5764_s0 + %s4844_s10]]   ;;  %s4847_s22 = smov 5  }
   0x4   :  { %s4928_s17 = sld [smem:[%s5764_s0 + %s4845_s14]]   ;;  %s4848_s26 = smov 6  }
   0x5   :  { %s4933_s21 = sld [smem:[%s5764_s0 + %s4846_s18]]   ;;  %s4849_s30 = smov 7  }
   0x6   :  { %s4938_s25 = sld [smem:[%s5764_s0 + %s4847_s22]]   ;;  %s4850_s4 = smov 8  }
   0x7   :  { %s4943_s29 = sld [smem:[%s5764_s0 + %s4848_s26]]   ;;  %s4851_s10 = smov 9  }
   0x8   :  { %s4948_s3 = sld [smem:[%s5764_s0 + %s4849_s30]]   ;;  %s4852_s15 = smov 10  }
   0x9   :  { %s4953_s8 = sld [smem:[%s5764_s0 + %s4850_s4]]   ;;  %s4853_s20 = smov 11  }
   0xa   :  { %s4958_s14 = sld [smem:[%s5764_s0 + %s4851_s10]]   ;;  %s4854_s26 = smov 12  }
   0xb   :  { %s4963_s19 = sld [smem:[%s5764_s0 + %s4852_s15]]   ;;  %s4855_s1 = smov 13  }
   0xc   :  { %5767 = sst [smem:[#allocation40_spill]] %s4938_s25  ;;  %s4856_s7 = smov 14  }
   0xd   :  { %s4968_s24 = sld [smem:[%s5764_s0 + %s4853_s20]]   ;;  %s4857_s15 = smov 15  }
   0xe   :  { %s4973_s30 = sld [smem:[%s5764_s0 + %s4854_s26]]   ;;  %s4858_s22 = smov 16  }
   0xf   :  { %s4978_s6 = sld [smem:[%s5764_s0 + %s4855_s1]]   ;;  %s4859_s28 = smov 17  }
  0x10   :  { %s4983_s12 = sld [smem:[%s5764_s0 + %s4856_s7]]   ;;  %s4860_s7 = smov 18  }
  0x11   :  { %s4988_s20 = sld [smem:[%s5764_s0 + %s4857_s15]]   ;;  %s4861_s15 = smov 19  }
  0x12   :  { %s4993_s27 = sld [smem:[%s5764_s0 + %s4858_s22]]   ;;  %s4862_s22 = smov 20  }
  0x13   :  { %5768 = sst [smem:[#allocation41_spill]] %s4968_s24 }
  0x14   :  { %s4998_s4 = sld [smem:[%s5764_s0 + %s4859_s28]]   ;;  %s4863_s28 = smov 21  }
  0x15   :  { %s5013_s24 = sld [smem:[%s5764_s0 + %s4862_s22]]   ;;  %s4866_s22 = smov 24  }
  0x16   :  { %5769 = sst [smem:[#allocation42_spill]] %s4983_s12 }
  0x17   :  { %5770 = sst [smem:[#allocation43_spill]] %s4988_s20 }
  0x18   :  { %5771 = sst [smem:[#allocation44_spill]] %s4993_s27 }
  0x19   :  { %s5003_s12 = sld [smem:[%s5764_s0 + %s4860_s7]]   ;;  %s4864_s7 = smov 22  }
  0x1a   :  { %5772 = sst [smem:[#allocation45_spill]] %s4998_s4 }
  0x1b   :  { %s5008_s20 = sld [smem:[%s5764_s0 + %s4861_s15]]   ;;  %s4865_s15 = smov 23  }
  0x1c   :  { %5774 = sst [smem:[#allocation47_spill]] %s5013_s24 }
  0x1d   :  { %s5018_s4 = sld [smem:[%s5764_s0 + %s4863_s28]]   ;;  %s4867_s28 = smov 25  }
  0x1e   :  { %s5023_s25 = sld [smem:[%s5764_s0 + %s4864_s7]]   ;;  %s4868_s7 = smov 26  }
  0x1f   :  { %s5033_s24 = sld [smem:[%s5764_s0 + %s4866_s22]]   ;;  %s4870_s22 = smov 28  }
  0x20   :  { %s5053_s27 = sld [smem:[%s5764_s0 + %s4870_s22]]  }
  0x21   :  { %5773 = sst [smem:[#allocation46_spill]] %s5008_s20 }
  0x22   :  { %s5028_s20 = sld [smem:[%s5764_s0 + %s4865_s15]]   ;;  %s4869_s15 = smov 27  }
  0x23   :  { %5775 = sst [smem:[#allocation48_spill]] %s5018_s4 }
  0x24   :  { %5776 = sst [smem:[#allocation49_spill]] %s5023_s25 }
  0x25   :  { %s5038_s4 = sld [smem:[%s5764_s0 + %s4867_s28]]   ;;  %s4871_s28 = smov 29  }
  0x26   :  { %s5043_s25 = sld [smem:[%s5764_s0 + %s4868_s7]]   ;;  %s4872_s7 = smov 30  }
  0x28   :  { %5777 = sst [smem:[#allocation50_spill]] %s5028_s20 }
  0x29   :  { %s5048_s20 = sld [smem:[%s5764_s0 + %s4869_s15]]  }
  0x2b   :  { %5778 = sst [smem:[#allocation51_spill]] %s5038_s4 }
  0x2c   :  { %5779 = sst [smem:[#allocation52_spill]] %s5043_s25 }
  0x2d   :  { %s5058_s4 = sld [smem:[%s5764_s0 + %s4871_s28]]  }
  0x2e   :  { %s5063_s25 = sld [smem:[%s5764_s0 + %s4872_s7]]  }
  0x2f   :  { %66 = vsyncpa [#allocation3], 0 }
  0x30   :  { %67 = vsyncpa [#allocation6], 0 }
  0x31   :  { %68 = vsyncpa [#allocation9], 0 }
  0x32   :  { %69 = vsyncpa [#allocation12], 0 }
  0x33   :  { %70 = vsyncpa [#allocation15], 0 }
  0x34   :  { %71 = vsyncpa [#allocation18], 0 }
  0x35   :  { %72 = vsyncpa [#allocation21], 0 }
  0x36   :  { %73 = vsyncpa [#allocation24], 0 }
  0x37   :  { %74 = vsyncpa [#allocation27], 0 }
  0x38   :  { %75 = vsyncpa [#allocation4], 0  ;;  %s93_s15 = sshll.u32 %s4918_s9, 4  ;;  %s4873_s16 = smov [#allocation5]   ;;  %s94_s15 = int_to_ptr.hbm [resolvable:$true] %s93_s15 }
  0x39   :  { %s95_s18 = sshll.u32 %s4873_s16, 4  ;;  %s118_s0 = sshll.u32 %s4928_s17, 4  ;;  %s96_s18 = int_to_ptr.vmem [resolvable:$true] %s95_s18  ;;  %s119_s0 = int_to_ptr.hbm [resolvable:$true] %s118_s0 }
  0x3a   :  { %s4391_s22 = sshra.s32 %s94_s15, 4  ;;  %s4395_s26 = scalar_lea.hbm %s4918_s9, 16  ;;  %s4392_s22 = int_to_ptr.hbm [resolvable:$true] %s4391_s22 }
  0x3b   :  { %s4393_s23 = scalar_lea.hbm %s4392_s22, 16  ;;  %p4396_p1 = scmp.lt.s32.totalorder %s4392_s22, %s4918_s9 }
  0x3c   :  { %p4394_p0 = scmp.ne.s32.totalorder %s4392_s22, %s4393_s23  ;;  %p4397_p2 = scmp.lt.s32.totalorder %s4395_s26, %s4393_s23 }
  0x3e   :  { %p4398_p3 = por %p4397_p2, %p4396_p1 }
  0x40   :  { %p4399_p4 = pnand %p4398_p3, %p4394_p0 }
  0x42   :  { %4402 = shalt.err (!%p4399_p4)
}
  0x43   :  { %s4874_s28 = smov 128   ;;  %s4875_s1 = smov 8  }
  0x44   :  { %101 = dma.hbm_to_vmem [thread:$0]  %s94_s15, 256, %s96_s18, [#allocation6], %s4874_s28, %s4874_s28, %s4875_s1  }
  0x45   :  { %s4876_s2 = smov [#allocation8]   ;;  %s143_s10 = sshll.u32 %s4943_s29, 4  ;;  %s5073_s10 = int_to_ptr.hbm [resolvable:$true] %s143_s10 }
  0x46   :  { %s120_s7 = sshll.u32 %s4876_s2, 4  ;;  %s4415_s9 = sshra.s32 %s119_s0, 4  ;;  %s121_s7 = int_to_ptr.vmem [resolvable:$true] %s120_s7  ;;  %s4416_s9 = int_to_ptr.hbm [resolvable:$true] %s4415_s9 }
  0x47   :  { %s4417_s11 = scalar_lea.hbm %s4416_s9, 8  ;;  %s4419_s16 = scalar_lea.hbm %s4928_s17, 8 }
  0x48   :  { %p4418_p5 = scmp.ne.s32.totalorder %s4416_s9, %s4417_s11  ;;  %p4420_p6 = scmp.lt.s32.totalorder %s4416_s9, %s4928_s17 }
  0x49   :  { %p4421_p7 = scmp.lt.s32.totalorder %s4419_s16, %s4417_s11 }
  0x4b   :  { %p4422_p8 = por %p4421_p7, %p4420_p6 }
  0x4d   :  { %p4423_p9 = pnand %p4422_p8, %p4418_p5 }
  0x4f   :  { %4426 = shalt.err (!%p4423_p9)
}
  0x50   :  { %123 = dma.hbm_to_vmem [thread:$0]  %s119_s0, 128, %s121_s7, [#allocation9]  }
  0x51   :  { %s168_s15 = sshll.u32 %s4953_s8, 4  ;;  %s4877_s18 = smov [#allocation11]   ;;  %s169_s15 = int_to_ptr.hbm [resolvable:$true] %s168_s15 }
  0x52   :  { %s145_s22 = sshll.u32 %s4877_s18, 4  ;;  %s4439_s23 = sshra.s32 %s5073_s10, 4  ;;  %s146_s22 = int_to_ptr.vmem [resolvable:$true] %s145_s22  ;;  %s4440_s23 = int_to_ptr.hbm [resolvable:$true] %s4439_s23 }
  0x53   :  { %s4441_s26 = scalar_lea.hbm %s4440_s23, 128  ;;  %s4443_s2 = scalar_lea.hbm %s4943_s29, 128 }
  0x54   :  { %p4442_p10 = scmp.ne.s32.totalorder %s4440_s23, %s4441_s26  ;;  %p4444_p11 = scmp.lt.s32.totalorder %s4440_s23, %s4943_s29 }
  0x55   :  { %p4445_p12 = scmp.lt.s32.totalorder %s4443_s2, %s4441_s26 }
  0x57   :  { %p4446_p13 = por %p4445_p12, %p4444_p11 }
  0x59   :  { %p4447_p0 = pnand %p4446_p13, %p4442_p10 }
  0x5b   :  { %4450 = shalt.err (!%p4447_p0)
}
  0x5c   :  { %151 = dma.hbm_to_vmem [thread:$0]  %s5073_s10, 2048, %s146_s22, [#allocation12], %s4874_s28, %s4874_s28, %s4875_s1  }
  0x5d   :  { %s4878_s17 = smov [#allocation14]   ;;  %s189_s7 = sshll.u32 %s4963_s19, 4  ;;  %s5086_s7 = int_to_ptr.hbm [resolvable:$true] %s189_s7 }
  0x5e   :  { %s170_s0 = sshll.u32 %s4878_s17, 4  ;;  %s4463_s9 = sshra.s32 %s169_s15, 4  ;;  %s171_s0 = int_to_ptr.vmem [resolvable:$true] %s170_s0  ;;  %s4464_s9 = int_to_ptr.hbm [resolvable:$true] %s4463_s9 }
  0x5f   :  { %s4465_s29 = scalar_lea.hbm %s4464_s9, 1  ;;  %s4467_s11 = scalar_lea.hbm %s4953_s8, 1 }
  0x60   :  { %p4466_p1 = scmp.ne.s32.totalorder %s4464_s9, %s4465_s29  ;;  %p4468_p2 = scmp.lt.s32.totalorder %s4464_s9, %s4953_s8 }
  0x61   :  { %p4469_p3 = scmp.lt.s32.totalorder %s4467_s11, %s4465_s29 }
  0x63   :  { %p4470_p4 = por %p4469_p3, %p4468_p2 }
  0x65   :  { %p4471_p5 = pnand %p4470_p4, %p4466_p1 }
  0x67   :  { %4474 = shalt.err (!%p4471_p5)
}
  0x68   :  { %173 = dma.hbm_to_vmem [thread:$0]  %s169_s15, 16, %s171_s0, [#allocation15]  }
  0x69   :  { %s4879_s10 = smov [#allocation17]   ;;  %s218_s18 = sshll.u32 %s4978_s6, 4  ;;  %s219_s18 = int_to_ptr.hbm [resolvable:$true] %s218_s18 }
  0x6a   :  { %s191_s16 = sshll.u32 %s4879_s10, 4  ;;  %s4487_s22 = sshra.s32 %s5086_s7, 4  ;;  %s192_s16 = int_to_ptr.vmem [resolvable:$true] %s191_s16  ;;  %s4488_s22 = int_to_ptr.hbm [resolvable:$true] %s4487_s22 }
  0x6b   :  { %s4489_s23 = scalar_lea.hbm %s4488_s22, 256  ;;  %s4491_s26 = scalar_lea.hbm %s4963_s19, 256 }
  0x6c   :  { %p4490_p6 = scmp.ne.s32.totalorder %s4488_s22, %s4489_s23  ;;  %p4492_p7 = scmp.lt.s32.totalorder %s4488_s22, %s4963_s19 }
  0x6d   :  { %p4493_p8 = scmp.lt.s32.totalorder %s4491_s26, %s4489_s23 }
  0x6f   :  { %p4494_p9 = por %p4493_p8, %p4492_p7 }
  0x71   :  { %p4495_p10 = pnand %p4494_p9, %p4490_p6 }
  0x73   :  { %4498 = shalt.err (!%p4495_p10)
}
  0x74   :  { %s4880_s8 = smov 256   ;;  %s4881_s15 = smov 16  }
  0x75   :  { %197 = dma.hbm_to_vmem [thread:$0]  %s5086_s7, 4096, %s192_s16, [#allocation18], %s4880_s8, %s4880_s8, %s4881_s15  }
  0x76   :  { %s4882_s2 = smov [#allocation20]   ;;  %s247_s0 = sshll.u32 %s5003_s12, 4  ;;  %s5099_s0 = int_to_ptr.hbm [resolvable:$true] %s247_s0 }
  0x77   :  { %s220_s17 = sshll.u32 %s4882_s2, 4  ;;  %s4511_s19 = sshra.s32 %s219_s18, 4  ;;  %s221_s17 = int_to_ptr.vmem [resolvable:$true] %s220_s17  ;;  %s4512_s19 = int_to_ptr.hbm [resolvable:$true] %s4511_s19 }
  0x78   :  { %s4513_s9 = scalar_lea.hbm %s4512_s19, 1  ;;  %s4515_s29 = scalar_lea.hbm %s4978_s6, 1 }
  0x79   :  { %p4514_p11 = scmp.ne.s32.totalorder %s4512_s19, %s4513_s9  ;;  %p4516_p12 = scmp.lt.s32.totalorder %s4512_s19, %s4978_s6 }
  0x7a   :  { %p4517_p13 = scmp.lt.s32.totalorder %s4515_s29, %s4513_s9 }
  0x7c   :  { %p4518_p0 = por %p4517_p13, %p4516_p12 }
  0x7e   :  { %p4519_p1 = pnand %p4518_p0, %p4514_p11 }
  0x80   :  { %4522 = shalt.err (!%p4519_p1)
}
  0x81   :  { %223 = dma.hbm_to_vmem [thread:$0]  %s219_s18, 16, %s221_s17, [#allocation21]  }
  0x82   :  { %s281_s7 = sshll.u32 %s5033_s24, 4  ;;  %s4883_s11 = smov [#allocation23]   ;;  %s5104_s7 = int_to_ptr.hbm [resolvable:$true] %s281_s7 }
  0x83   :  { %s249_s10 = sshll.u32 %s4883_s11, 4  ;;  %s4535_s16 = sshra.s32 %s5099_s0, 4  ;;  %s250_s10 = int_to_ptr.vmem [resolvable:$true] %s249_s10  ;;  %s4536_s16 = int_to_ptr.hbm [resolvable:$true] %s4535_s16 }
  0x84   :  { %s4537_s22 = scalar_lea.hbm %s4536_s16, 128  ;;  %s4539_s6 = scalar_lea.hbm %s5003_s12, 128 }
  0x85   :  { %p4538_p2 = scmp.ne.s32.totalorder %s4536_s16, %s4537_s22  ;;  %p4540_p3 = scmp.lt.s32.totalorder %s4536_s16, %s5003_s12 }
  0x86   :  { %p4541_p4 = scmp.lt.s32.totalorder %s4539_s6, %s4537_s22 }
  0x88   :  { %p4542_p5 = por %p4541_p4, %p4540_p3 }
  0x8a   :  { %p4543_p6 = pnand %p4542_p5, %p4538_p2 }
  0x8c   :  { %4546 = shalt.err (!%p4543_p6)
}
  0x8d   :  { %255 = dma.hbm_to_vmem [thread:$0]  %s5099_s0, 2048, %s250_s10, [#allocation24], %s4874_s28, %s4874_s28, %s4875_s1  }
  0x8e   :  { %s4884_s18 = smov [#allocation26]   ;;  %s80_s26 = sshll.u32 %s4913_s5, 4  ;;  %s5114_s26 = int_to_ptr.hbm [resolvable:$true] %s80_s26 }
  0x8f   :  { %s283_s23 = sshll.u32 %s4884_s18, 4  ;;  %s4559_s12 = sshra.s32 %s5104_s7, 4  ;;  %s284_s23 = int_to_ptr.vmem [resolvable:$true] %s283_s23  ;;  %s4560_s12 = int_to_ptr.hbm [resolvable:$true] %s4559_s12 }
  0x90   :  { %s4561_s2 = scalar_lea.hbm %s4560_s12, 256  ;;  %s4563_s17 = scalar_lea.hbm %s5033_s24, 256 }
  0x91   :  { %p4562_p7 = scmp.ne.s32.totalorder %s4560_s12, %s4561_s2  ;;  %p4564_p8 = scmp.lt.s32.totalorder %s4560_s12, %s5033_s24 }
  0x92   :  { %p4565_p9 = scmp.lt.s32.totalorder %s4563_s17, %s4561_s2 }
  0x94   :  { %p4566_p10 = por %p4565_p9, %p4564_p8 }
  0x96   :  { %p4567_p11 = pnand %p4566_p10, %p4562_p7 }
  0x98   :  { %4570 = shalt.err (!%p4567_p11)
}
  0x99   :  { %289 = dma.hbm_to_vmem [thread:$0]  %s5104_s7, 4096, %s284_s23, [#allocation27], %s4874_s28, %s4874_s28, %s4875_s1  }
  0x9a   :  { %s107_s0 = sshll.u32 %s4923_s13, 4  ;;  %s4885_s19 = smov [#allocation2]   ;;  %s108_s0 = int_to_ptr.hbm [resolvable:$true] %s107_s0 }
  0x9b   :  { %s82_s9 = sshll.u32 %s4885_s19, 4  ;;  %s4583_s29 = sshra.s32 %s5114_s26, 4  ;;  %s83_s9 = int_to_ptr.vmem [resolvable:$true] %s82_s9  ;;  %s4584_s29 = int_to_ptr.hbm [resolvable:$true] %s4583_s29 }
  0x9c   :  { %s4585_s24 = scalar_lea.hbm %s4584_s29, 16  ;;  %s4587_s11 = scalar_lea.hbm %s4913_s5, 16 }
  0x9d   :  { %p4586_p12 = scmp.ne.s32.totalorder %s4584_s29, %s4585_s24  ;;  %p4588_p13 = scmp.lt.s32.totalorder %s4584_s29, %s4913_s5 }
  0x9e   :  { %p4589_p0 = scmp.lt.s32.totalorder %s4587_s11, %s4585_s24 }
  0xa0   :  { %p4590_p1 = por %p4589_p0, %p4588_p13 }
  0xa2   :  { %p4591_p2 = pnand %p4590_p1, %p4586_p12 }
  0xa4   :  { %4594 = shalt.err (!%p4591_p2)
}
  0xa5   :  { %88 = dma.hbm_to_vmem [thread:$0]  %s5114_s26, 256, %s83_s9, [#allocation3], %s4874_s28, %s4874_s28, %s4875_s1  }
  0xa6   :  { %s4886_s7 = smov [#allocation7]   ;;  %s128_s16 = sshll.u32 %s4933_s21, 4  ;;  %s5132_s16 = int_to_ptr.hbm [resolvable:$true] %s128_s16 }
  0xa7   :  { %s109_s10 = sshll.u32 %s4886_s7, 4  ;;  %s4607_s22 = sshra.s32 %s108_s0, 4  ;;  %s110_s10 = int_to_ptr.vmem [resolvable:$true] %s109_s10  ;;  %s4608_s22 = int_to_ptr.hbm [resolvable:$true] %s4607_s22 }
  0xa8   :  { %s4609_s5 = scalar_lea.hbm %s4608_s22, 1  ;;  %s4611_s6 = scalar_lea.hbm %s4923_s13, 1 }
  0xa9   :  { %p4610_p3 = scmp.ne.s32.totalorder %s4608_s22, %s4609_s5  ;;  %p4612_p4 = scmp.lt.s32.totalorder %s4608_s22, %s4923_s13 }
  0xaa   :  { %p4613_p5 = scmp.lt.s32.totalorder %s4611_s6, %s4609_s5 }
  0xac   :  { %p4614_p6 = por %p4613_p5, %p4612_p4 }
  0xae   :  { %p4615_p7 = pnand %p4614_p6, %p4610_p3 }
  0xb0   :  { %4618 = shalt.err (!%p4615_p7)
}
  0xb1   :  { %112 = dma.hbm_to_vmem [thread:$0]  %s108_s0, 16, %s110_s10, [#allocation6]  }
  0xb2   :  { %s4887_s18 = smov [#allocation10]   ;;  %s157_s26 = sshll.u32 %s4948_s3, 4  ;;  %s158_s26 = int_to_ptr.hbm [resolvable:$true] %s157_s26 }
  0xb3   :  { %s130_s23 = sshll.u32 %s4887_s18, 4  ;;  %s4631_s12 = sshra.s32 %s5132_s16, 4  ;;  %s131_s23 = int_to_ptr.vmem [resolvable:$true] %s130_s23  ;;  %s4632_s12 = int_to_ptr.hbm [resolvable:$true] %s4631_s12 }
  0xb4   :  { %s4633_s2 = scalar_lea.hbm %s4632_s12, 384  ;;  %s4635_s17 = scalar_lea.hbm %s4933_s21, 384 }
  0xb5   :  { %p4634_p8 = scmp.ne.s32.totalorder %s4632_s12, %s4633_s2  ;;  %p4636_p9 = scmp.lt.s32.totalorder %s4632_s12, %s4933_s21 }
  0xb6   :  { %p4637_p10 = scmp.lt.s32.totalorder %s4635_s17, %s4633_s2 }
  0xb8   :  { %p4638_p11 = por %p4637_p10, %p4636_p9 }
  0xba   :  { %p4639_p12 = pnand %p4638_p11, %p4634_p8 }
  0xbc   :  { %4642 = shalt.err (!%p4639_p12)
}
  0xbd   :  { %s4888_s13 = smov 384   ;;  %s4889_s0 = smov 24  }
  0xbe   :  { %136 = dma.hbm_to_vmem [thread:$0]  %s5132_s16, 6144, %s131_s23, [#allocation9], %s4888_s13, %s4888_s13, %s4889_s0  }
  0xbf   :  { %s4890_s19 = smov [#allocation13]   ;;  %s179_s29 = sshll.u32 %s4958_s14, 4  ;;  %s180_s29 = int_to_ptr.hbm [resolvable:$true] %s179_s29 }
  0xc0   :  { %s159_s9 = sshll.u32 %s4890_s19, 4  ;;  %s4655_s21 = sshra.s32 %s158_s26, 4  ;;  %s160_s9 = int_to_ptr.vmem [resolvable:$true] %s159_s9  ;;  %s4656_s21 = int_to_ptr.hbm [resolvable:$true] %s4655_s21 }
  0xc1   :  { %s4657_s24 = scalar_lea.hbm %s4656_s21, 1  ;;  %s4659_s11 = scalar_lea.hbm %s4948_s3, 1 }
  0xc2   :  { %p4658_p13 = scmp.ne.s32.totalorder %s4656_s21, %s4657_s24  ;;  %p4660_p0 = scmp.lt.s32.totalorder %s4656_s21, %s4948_s3 }
  0xc3   :  { %p4661_p1 = scmp.lt.s32.totalorder %s4659_s11, %s4657_s24 }
  0xc5   :  { %p4662_p2 = por %p4661_p1, %p4660_p0 }
  0xc7   :  { %p4663_p3 = pnand %p4662_p2, %p4658_p13 }
  0xc9   :  { %4666 = shalt.err (!%p4663_p3)
}
  0xca   :  { %162 = dma.hbm_to_vmem [thread:$0]  %s158_s26, 16, %s160_s9, [#allocation12]  }
  0xcb   :  { %s204_s7 = sshll.u32 %s4973_s30, 4  ;;  %s4891_s10 = smov [#allocation16]   ;;  %s5148_s7 = int_to_ptr.hbm [resolvable:$true] %s204_s7 }
  0xcc   :  { %s181_s16 = sshll.u32 %s4891_s10, 4  ;;  %s4679_s22 = sshra.s32 %s180_s29, 4  ;;  %s182_s16 = int_to_ptr.vmem [resolvable:$true] %s181_s16  ;;  %s4680_s22 = int_to_ptr.hbm [resolvable:$true] %s4679_s22 }
  0xcd   :  { %s4681_s5 = scalar_lea.hbm %s4680_s22, 1  ;;  %s4683_s6 = scalar_lea.hbm %s4958_s14, 1 }
  0xce   :  { %p4682_p4 = scmp.ne.s32.totalorder %s4680_s22, %s4681_s5  ;;  %p4684_p5 = scmp.lt.s32.totalorder %s4680_s22, %s4958_s14 }
  0xcf   :  { %p4685_p6 = scmp.lt.s32.totalorder %s4683_s6, %s4681_s5 }
  0xd1   :  { %p4686_p7 = por %p4685_p6, %p4684_p5 }
  0xd3   :  { %p4687_p8 = pnand %p4686_p7, %p4682_p4 }
  0xd5   :  { %4690 = shalt.err (!%p4687_p8)
}
  0xd6   :  { %184 = dma.hbm_to_vmem [thread:$0]  %s180_s29, 16, %s182_s16, [#allocation15]  }
  0xd7   :  { %s5780_s3 = sld [smem:[#allocation44_spill]]  ;;  %s4892_s18 = smov [#allocation19]  }
  0xd8   :  { %s206_s23 = sshll.u32 %s4892_s18, 4  ;;  %s4703_s12 = sshra.s32 %s5148_s7, 4  ;;  %s207_s23 = int_to_ptr.vmem [resolvable:$true] %s206_s23  ;;  %s4704_s12 = int_to_ptr.hbm [resolvable:$true] %s4703_s12 }
  0xd9   :  { %s4705_s2 = scalar_lea.hbm %s4704_s12, 256  ;;  %s4707_s14 = scalar_lea.hbm %s4973_s30, 256 }
  0xda   :  { %p4706_p9 = scmp.ne.s32.totalorder %s4704_s12, %s4705_s2  ;;  %p4708_p10 = scmp.lt.s32.totalorder %s4704_s12, %s4973_s30 }
  0xdb   :  { %p4709_p11 = scmp.lt.s32.totalorder %s4707_s14, %s4705_s2 }
  0xdd   :  { %s232_s26 = sshll.u32 %s5780_s3, 4  ;;  %p4710_p12 = por %p4709_p11, %p4708_p10  ;;  %s5153_s26 = int_to_ptr.hbm [resolvable:$true] %s232_s26 }
  0xdf   :  { %p4711_p13 = pnand %p4710_p12, %p4706_p9 }
  0xe1   :  { %4714 = shalt.err (!%p4711_p13)
}
  0xe2   :  { %s5781_s17 = sld [smem:[#allocation49_spill]]  ;;  %s4893_s9 = smov [#allocation22]  }
  0xe3   :  { %212 = dma.hbm_to_vmem [thread:$0]  %s5148_s7, 4096, %s207_s23, [#allocation18], %s4874_s28, %s4874_s28, %s4875_s1  }
  0xe4   :  { %s234_s29 = sshll.u32 %s4893_s9, 4  ;;  %s4727_s30 = sshra.s32 %s5153_s26, 4  ;;  %s235_s29 = int_to_ptr.vmem [resolvable:$true] %s234_s29  ;;  %s4728_s30 = int_to_ptr.hbm [resolvable:$true] %s4727_s30 }
  0xe5   :  { %s4729_s21 = scalar_lea.hbm %s4728_s30, 384  ;;  %s4731_s24 = scalar_lea.hbm %s5780_s3, 384 }
  0xe6   :  { %p4730_p0 = scmp.ne.s32.totalorder %s4728_s30, %s4729_s21  ;;  %p4732_p1 = scmp.lt.s32.totalorder %s4728_s30, %s5780_s3 }
  0xe7   :  { %p4733_p2 = scmp.lt.s32.totalorder %s4731_s24, %s4729_s21 }
  0xe8   :  { %s266_s19 = sshll.u32 %s5781_s17, 4  ;;  %s5163_s19 = int_to_ptr.hbm [resolvable:$true] %s266_s19 }
  0xe9   :  { %p4734_p3 = por %p4733_p2, %p4732_p1 }
  0xeb   :  { %p4735_p4 = pnand %p4734_p3, %p4730_p0 }
  0xed   :  { %4738 = shalt.err (!%p4735_p4)
}
  0xee   :  { %240 = dma.hbm_to_vmem [thread:$0]  %s5153_s26, 6144, %s235_s29, [#allocation21], %s4888_s13, %s4888_s13, %s4889_s0  }
  0xef   :  { %s4894_s28 = smov [#allocation25]   ;;  %s300_s11 = sshll.u32 %s5053_s27, 4  ;;  %s301_s11 = int_to_ptr.hbm [resolvable:$true] %s300_s11 }
  0xf0   :  { %s268_s1 = sshll.u32 %s4894_s28, 4  ;;  %s4751_s7 = sshra.s32 %s5163_s19, 4  ;;  %s269_s1 = int_to_ptr.vmem [resolvable:$true] %s268_s1  ;;  %s4752_s7 = int_to_ptr.hbm [resolvable:$true] %s4751_s7 }
  0xf1   :  { %s4753_s10 = scalar_lea.hbm %s4752_s7, 256  ;;  %s4755_s16 = scalar_lea.hbm %s5781_s17, 256 }
  0xf2   :  { %p4754_p5 = scmp.ne.s32.totalorder %s4752_s7, %s4753_s10  ;;  %p4756_p6 = scmp.lt.s32.totalorder %s4752_s7, %s5781_s17 }
  0xf3   :  { %p4757_p7 = scmp.lt.s32.totalorder %s4755_s16, %s4753_s10 }
  0xf5   :  { %p4758_p8 = por %p4757_p7, %p4756_p6 }
  0xf7   :  { %p4759_p9 = pnand %p4758_p8, %p4754_p5 }
  0xf9   :  { %4762 = shalt.err (!%p4759_p9)
}
  0xfa   :  { %274 = dma.hbm_to_vmem [thread:$0]  %s5163_s19, 4096, %s269_s1, [#allocation24], %s4880_s8, %s4880_s8, %s4881_s15  }
  0xfb   :  { %s4895_s13 = smov [#allocation28]   ;;  %s4775_s22 = sshra.s32 %s301_s11, 4  ;;  %s4776_s22 = int_to_ptr.hbm [resolvable:$true] %s4775_s22 }
  0xfc   :  { %s302_s0 = sshll.u32 %s4895_s13, 4  ;;  %s4777_s5 = scalar_lea.hbm %s4776_s22, 256  ;;  %s303_s0 = int_to_ptr.vmem [resolvable:$true] %s302_s0 }
  0xfd   :  { %p4778_p10 = scmp.ne.s32.totalorder %s4776_s22, %s4777_s5  ;;  %s4779_s6 = scalar_lea.hbm %s5053_s27, 256 }
  0xfe   :  { %p4780_p11 = scmp.lt.s32.totalorder %s4776_s22, %s5053_s27  ;;  %p4781_p12 = scmp.lt.s32.totalorder %s4779_s6, %s4777_s5 }
 0x100   :  { %p4782_p13 = por %p4781_p12, %p4780_p11 }
 0x102   :  { %p4783_p0 = pnand %p4782_p13, %p4778_p10 }
 0x104   :  { %4786 = shalt.err (!%p4783_p0)
}
 0x105   :  { %308 = dma.hbm_to_vmem [thread:$0]  %s301_s11, 4096, %s303_s0, [#allocation27], %s4880_s8, %s4880_s8, %s4881_s15  }
 0x106   :  { %4823 = dma.done.wait [#allocation3], 256  }
 0x107   :  { %4824 = vsyncadd [#allocation3], 4294967040 }
 0x108   :  { %4825 = dma.done.wait [#allocation6], 272  }
 0x109   :  { %4826 = vsyncadd [#allocation6], 4294967024 }
 0x10a   :  { %4827 = dma.done.wait [#allocation9], 6272  }
 0x10b   :  { %4828 = vsyncadd [#allocation9], 4294961024 }
 0x10c   :  { %4829 = dma.done.wait [#allocation12], 2064  }
 0x10d   :  { %4830 = vsyncadd [#allocation12], 4294965232 }
 0x10e   :  { %4831 = dma.done.wait [#allocation15], 32  }
 0x10f   :  { %4832 = vsyncadd [#allocation15], 4294967264 }
 0x110   :  { %4833 = dma.done.wait [#allocation18], 8192  }
 0x111   :  { %4834 = vsyncadd [#allocation18], 4294959104 }
 0x112   :  { %4835 = dma.done.wait [#allocation21], 6160  }
 0x113   :  { %4836 = vsyncadd [#allocation21], 4294961136 }
 0x114   :  { %4837 = dma.done.wait [#allocation24], 6144  }
 0x115   :  { %4838 = vsyncadd [#allocation24], 4294961152 }
 0x116   :  { %4839 = dma.done.wait [#allocation27], 8192  }
 0x117   :  { %4840 = vsyncadd [#allocation27], 4294959104  ;;  %v382_v0 = vld [vmem:[#allocation5 + $0x8] sm:$0xff]  ;;  %v381_v1 = vld [vmem:[#allocation5] sm:$0xff]  ;;  %vm387_vm0 = vcmask 130048   ;;  %s5782_s27 = sld [smem:[#allocation40_spill]] }
 0x118   :  { %408 = vmatpush.msra.mxu0 %v382_v0  ;;  %v379_v2 = vld [vmem:[#allocation2] sm:$0xff]  ;;  %v465_v3 = vld [vmem:[#allocation10 + $0x168] sm:$0xff]  ;;  %v464_v8 = vld [vmem:[#allocation10 + $0x160] sm:$0xff]  ;;  %s4896_s8 = smov 112   ;;  %vm615_vm1 = vcmask 64512   ;;  %s4897_s3 = smov 96  }
 0x119   :  { %v466_v4 = vld [vmem:[#allocation10 + $0x170] sm:$0xff]  ;;  %476 = vmatpush.msra.mxu1 %v465_v3  ;;  %v467_v5 = vld [vmem:[#allocation10 + $0x178] sm:$0xff]  ;;  %v460_v10 = vld [vmem:[#allocation10 + $0x140] sm:$0xff]  ;;  %s4898_s18 = smov 80   ;;  %s4899_s23 = smov 64  }
 0x11a   :  { %499 = vmatpush.msra.mxu2 %v466_v4  ;;  %v462_v6 = vld [vmem:[#allocation10 + $0x150] sm:$0xff]  ;;  %v463_v7 = vld [vmem:[#allocation10 + $0x158] sm:$0xff]  ;;  %409 = vmatpush.msra.mxu0 %v381_v1  ;;  %v461_v11 = vld [vmem:[#allocation10 + $0x148] sm:$0xff]  ;;  %s4900_s26 = smov 48   ;;  %s4901_s12 = smov 32  }
 0x11b   :  { %522 = vmatpush.msra.mxu3 %v467_v5  ;;  %v459_v9 = vld [vmem:[#allocation10 + $0x138] sm:$0xff]  ;;  %4028 = vmatmul.msk.f32.vlgmr.msra.gmra.mxu0 %vm387_vm0, %v379_v2  ;;  %v456_v12 = vld [vmem:[#allocation10 + $0x120] sm:$0xff]  ;;  %v457_v13 = vld [vmem:[#allocation10 + $0x128] sm:$0xff]  ;;  %s5783_s2 = sld [smem:[#allocation41_spill]]  ;;  %s3980_s1 = sshll.u32 %s5063_s25, 4  ;;  %s3981_s1 = int_to_ptr.hbm [resolvable:$true] %s3980_s1 }
 0x11c   :  { %477 = vmatpush.msra.mxu1 %v462_v6  ;;  %500 = vmatpush.msra.mxu2 %v463_v7  ;;  %v458_v14 = vld [vmem:[#allocation10 + $0x130] sm:$0xff]  ;;  %v453_v15 = vld [vmem:[#allocation10 + $0x108] sm:$0xff]  ;;  %v455_v17 = vld [vmem:[#allocation10 + $0x118] sm:$0xff]  ;;  %s5784_s14 = sld [smem:[#allocation42_spill]]  ;;  %s4811_s11 = sshra.s32 %s3981_s1, 4  ;;  %s4812_s11 = int_to_ptr.hbm [resolvable:$true] %s4811_s11 }
 0x11d   :  { %523 = vmatpush.msra.mxu3 %v464_v8  ;;  %v454_v16 = vld [vmem:[#allocation10 + $0x110] sm:$0xff]  ;;  %v380_v18 = vld [vmem:[#allocation2 + $0x8] sm:$0xff]  ;;  %v449_v24 = vld [vmem:[#allocation10 + $0xe8] sm:$0xff]  ;;  %s5785_s17 = sld [smem:[#allocation43_spill]]  ;;  %s4815_s7 = scalar_lea.hbm %s5063_s25, 4 }
 0x11e   :  { %478 = vmatpush.msra.mxu1 %v459_v9  ;;  %501 = vmatpush.msra.mxu2 %v460_v10  ;;  %v450_v19 = vld [vmem:[#allocation10 + $0xf0] sm:$0xff]  ;;  %v451_v20 = vld [vmem:[#allocation10 + $0xf8] sm:$0xff]  ;;  %v452_v21 = vld [vmem:[#allocation10 + $0x100] sm:$0xff]  ;;  %s5786_s19 = sld [smem:[#allocation45_spill]]  ;;  %p4816_p2 = scmp.lt.s32.totalorder %s4812_s11, %s5063_s25 }
 0x11f   :  { %524 = vmatpush.msra.mxu3 %v461_v11  ;;  %v447_v22 = vld [vmem:[#allocation10 + $0xd8] sm:$0xff]  ;;  %v448_v23 = vld [vmem:[#allocation10 + $0xe0] sm:$0xff]  ;;  %v445_v26 = vld [vmem:[#allocation10 + $0xc8] sm:$0xff]  ;;  %s5787_s9 = sld [smem:[#allocation46_spill]] }
 0x120   :  { %479 = vmatpush.msra.mxu1 %v456_v12  ;;  %502 = vmatpush.msra.mxu2 %v457_v13  ;;  %v444_v25 = vld [vmem:[#allocation10 + $0xc0] sm:$0xff]  ;;  %v446_v27 = vld [vmem:[#allocation10 + $0xd0] sm:$0xff]  ;;  %v441_v28 = vld [vmem:[#allocation10 + $0xa8] sm:$0xff]  ;;  %s5789_s29 = sld [smem:[#allocation48_spill]] }
 0x121   :  { %525 = vmatpush.msra.mxu3 %v458_v14  ;;  %v442_v29 = vld [vmem:[#allocation10 + $0xb0] sm:$0xff]  ;;  %v443_v30 = vld [vmem:[#allocation10 + $0xb8] sm:$0xff]  ;;  %v440_v33 = vld [vmem:[#allocation10 + $0xa0] sm:$0xff]  ;;  %s5790_s30 = sld [smem:[#allocation50_spill]] }
 0x122   :  { %480 = vmatpush.msra.mxu1 %v453_v15  ;;  %503 = vmatpush.msra.mxu2 %v454_v16  ;;  %v438_v31 = vld [vmem:[#allocation10 + $0x90] sm:$0xff]  ;;  %v439_v32 = vld [vmem:[#allocation10 + $0x98] sm:$0xff]  ;;  %v436_v35 = vld [vmem:[#allocation10 + $0x80] sm:$0xff]  ;;  %s5791_s21 = sld [smem:[#allocation51_spill]] }
 0x123   :  { %526 = vmatpush.msra.mxu3 %v455_v17  ;;  %4029 = vmatmul.msk.f32.gmra.mxu0 %vm387_vm0, %v380_v18  ;;  %v435_v34 = vld [vmem:[#allocation10 + $0x78] sm:$0xff]  ;;  %v437_v36 = vld [vmem:[#allocation10 + $0x88] sm:$0xff]  ;;  %v432_v37 = vld [vmem:[#allocation10 + $0x60] sm:$0xff]  ;;  %s5792_s24 = sld [smem:[#allocation52_spill]] }
 0x124   :  { %481 = vmatpush.msra.mxu1 %v450_v19  ;;  %504 = vmatpush.msra.mxu2 %v451_v20  ;;  %v433_v38 = vld [vmem:[#allocation10 + $0x68] sm:$0xff]  ;;  %v434_v39 = vld [vmem:[#allocation10 + $0x70] sm:$0xff]  ;;  %v431_v42 = vld [vmem:[#allocation10 + $0x58] sm:$0xff] }
 0x125   :  { %527 = vmatpush.msra.mxu3 %v452_v21  ;;  %v429_v40 = vld [vmem:[#allocation10 + $0x48] sm:$0xff]  ;;  %v430_v41 = vld [vmem:[#allocation10 + $0x50] sm:$0xff]  ;;  %v427_v44 = vld [vmem:[#allocation10 + $0x38] sm:$0xff] }
 0x126   :  { %482 = vmatpush.msra.mxu1 %v447_v22  ;;  %505 = vmatpush.msra.mxu2 %v448_v23  ;;  %v426_v43 = vld [vmem:[#allocation10 + $0x30] sm:$0xff]  ;;  %v428_v45 = vld [vmem:[#allocation10 + $0x40] sm:$0xff]  ;;  %v423_v46 = vld [vmem:[#allocation10 + $0x18] sm:$0xff] }
 0x127   :  { %528 = vmatpush.msra.mxu3 %v449_v24  ;;  %v424_v47 = vld [vmem:[#allocation10 + $0x20] sm:$0xff]  ;;  %v425_v48 = vld [vmem:[#allocation10 + $0x28] sm:$0xff]  ;;  %v422_v51 = vld [vmem:[#allocation10 + $0x10] sm:$0xff] }
 0x128   :  { %483 = vmatpush.msra.mxu1 %v444_v25  ;;  %506 = vmatpush.msra.mxu2 %v445_v26  ;;  %v420_v49 = vld [vmem:[#allocation10] sm:$0xff]  ;;  %v421_v50 = vld [vmem:[#allocation10 + $0x8] sm:$0xff]  ;;  %v4230_v52 = vld [vmem:[#allocation7] ss:$0 sm:$0xff] }
 0x129   :  { %529 = vmatpush.msra.mxu3 %v446_v27  ;;  %v417_v54 = vld [vmem:[#allocation8] sm:$0xff] }
 0x12a   :  { %484 = vmatpush.msra.mxu1 %v441_v28  ;;  %507 = vmatpush.msra.mxu2 %v442_v29  ;;  %v468_v60 = vld [vmem:[%s5782_s27] sm:$0x7] }
 0x12b   :  { %530 = vmatpush.msra.mxu3 %v443_v30  ;;  %v471_v61 = vperm.slane %v468_v60, 1  ;;  %v470_v63 = vperm.slane %v468_v60, 0  ;;  %v472_v4 = vperm.slane %v468_v60, 2  ;;  %v548_v60 = vld [vmem:[#allocation11 + $0x18] sm:$0xff] }
 0x12c   :  { %485 = vmatpush.msra.mxu1 %v438_v31  ;;  %508 = vmatpush.msra.mxu2 %v439_v32 }
 0x12d   :  { %531 = vmatpush.msra.mxu3 %v440_v33  ;;  %v546_v33 = vld [vmem:[#allocation11 + $0x8] sm:$0xff] }
 0x12e   :  { %486 = vmatpush.msra.mxu1 %v435_v34  ;;  %509 = vmatpush.msra.mxu2 %v436_v35  ;;  %v545_v34 = vld [vmem:[#allocation11] sm:$0xff] }
 0x12f   :  { %532 = vmatpush.msra.mxu3 %v437_v36 }
 0x130   :  { %487 = vmatpush.msra.mxu1 %v432_v37  ;;  %510 = vmatpush.msra.mxu2 %v433_v38 }
 0x131   :  { %533 = vmatpush.msra.mxu3 %v434_v39 }
 0x132   :  { %488 = vmatpush.msra.mxu1 %v429_v40  ;;  %511 = vmatpush.msra.mxu2 %v430_v41 }
 0x133   :  { %534 = vmatpush.msra.mxu3 %v431_v42 }
 0x134   :  { %489 = vmatpush.msra.mxu1 %v426_v43  ;;  %512 = vmatpush.msra.mxu2 %v427_v44 }
 0x135   :  { %535 = vmatpush.msra.mxu3 %v428_v45 }
 0x136   :  { %490 = vmatpush.msra.mxu1 %v423_v46  ;;  %513 = vmatpush.msra.mxu2 %v424_v47 }
 0x137   :  { %536 = vmatpush.msra.mxu3 %v425_v48 }
 0x138   :  { %491 = vmatpush.msra.mxu1 %v420_v49  ;;  %514 = vmatpush.msra.mxu2 %v421_v50 }
 0x139   :  { %537 = vmatpush.msra.mxu3 %v422_v51 }
 0x13a   :  { %867 = vmatpush.msrb.mxu2 %v546_v33 }
 0x13c   :  { %868 = vmatpush.msrb.mxu2 %v545_v34 }
 0x198   :  { %v411_v53 = vpop.f32.mrf.mxu0 }
 0x199   :  { %v412_v55 = vadd.f32 %v4230_v52, %v411_v53 }
 0x19b   :  { %v5187_v56 = vadd.f32 %v417_v54, %v412_v55 }
 0x19d   :  { %492 = vmatmul.f32.vlgmr.msra.gmra.mxu1 %v5187_v56  ;;  %515 = vmatmul.f32.vlgmr.msra.gmra.mxu2 %v5187_v56 }
 0x19e   :  { %538 = vmatmul.f32.vlgmr.msra.gmra.mxu3 %v5187_v56 }
 0x1a0   :  { %v414_v57 = vpop.f32.mrf.mxu0 }
 0x1a1   :  { %v415_v58 = vadd.f32 %v4230_v52, %v414_v57 }
 0x1a3   :  { %v5192_v59 = vadd.f32 %v417_v54, %v415_v58 }
 0x1a5   :  { %495 = vmatmul.f32.gmra.mxu1 %v5192_v59  ;;  %518 = vmatmul.f32.gmra.mxu2 %v5192_v59 }
 0x1a6   :  { %541 = vmatmul.f32.gmra.mxu3 %v5192_v59 }
 0x21a   :  { %v493_v62 = vpop.f32.mrf.mxu1 }
 0x21b   :  { %v5204_v3 = vadd.f32 %v493_v62, %v470_v63 }
 0x220   :  { %v516_v0 = vpop.f32.mrf.mxu2 }
 0x221   :  { %v5198_v1 = vadd.f32 %v516_v0, %v471_v61  ;;  %v539_v2 = vpop.f32.mrf.mxu3  ;;  %v547_v0 = vld [vmem:[#allocation11 + $0x10] sm:$0xff] }
 0x222   :  { %v496_v6 = vpop.f32.mrf.mxu1  ;;  %v5210_v8 = vadd.f32 %v539_v2, %v472_v4 }
 0x223   :  { %686 = vrot.lane.b32.xlu2 %v5198_v1, %s4896_s8  ;;  %4030 = vmatpush.xpose.msk.msrb.mxu0 %vm387_vm0, %v5198_v1  ;;  %v5216_v10 = vadd.f32 %v496_v6, %v470_v63 }
 0x226   :  { %4031 = vmatmul.msk.f32.vlgmr.msrb.gmra.mxu0 %vm387_vm0, %v5204_v3 }
 0x228   :  { %v519_v5 = vpop.f32.mrf.mxu2 }
 0x229   :  { %v5208_v7 = vadd.f32 %v519_v5, %v471_v61  ;;  %v542_v9 = vpop.f32.mrf.mxu3 }
 0x22a   :  { %v5219_v11 = vadd.f32 %v542_v9, %v472_v4 }
 0x22b   :  { %4032 = vmatpush.xpose.msk.msra.mxu0 %vm387_vm0, %v5208_v7  ;;  %684 = vrot.lane.b32.xlu2 %v5204_v3, %s4896_s8 }
 0x22e   :  { %4033 = vmatmul.msk.f32.vlgmr.msra.gmra.mxu0 %vm387_vm0, %v5216_v10 }
 0x22f   :  { %656 = vmatpush.msrb.mxu0 %v5210_v8 }
 0x231   :  { %679 = vmatpush.msra.mxu0 %v5219_v11 }
 0x27d   :  { %v687_v12 = vpop.permute.xlu2 %686 }
 0x27e   :  { %4036 = vmatpush.xpose.msk.msrb.mxu1 %vm387_vm0, %v687_v12 }
 0x282   :  { %838 = vmatpush.msra.mxu1 %v548_v60 }
 0x284   :  { %839 = vmatpush.msra.mxu1 %v547_v0 }
 0x285   :  { %v685_v13 = vpop.permute.xlu2 %684 }
 0x286   :  { %4037 = vmatmul.msk.f32.vlgmr.msrb.gmra.mxu1 %vm387_vm0, %v685_v13 }
 0x2a3   :  { %v584_v14 = vpop.f32.mrf.mxu0 }
 0x2a4   :  { %v613_v15 = vmul.f32 0.25, %v584_v14 }
 0x2a6   :  { %v616_v16 = vsel %vm615_vm1, %v613_v15, -inf }
 0x2a7   :  { %617 = vmax.xlane.f32.xlu0 %v616_v16 }
 0x2ab   :  { %v610_v17 = vpop.f32.mrf.mxu0 }
 0x2ac   :  { %v614_v18 = vmul.f32 0.25, %v610_v17 }
 0x2ae   :  { %v619_v19 = vsel %vm615_vm1, %v614_v18, -inf }
 0x2af   :  { %620 = vmax.xlane.f32.xlu0 %v619_v19 }
 0x2c3   :  { %714 = vrot.lane.b32.xlu0 %v5208_v7, %s4896_s8 }
 0x303   :  { %v709_v20 = vpop.f32.mrf.mxu1 }
 0x304   :  { %v740_v21 = vmul.f32 0.25, %v709_v20 }
 0x306   :  { %v742_v22 = vsel %vm615_vm1, %v740_v21, -inf }
 0x307   :  { %743 = vmax.xlane.f32.xlu2 %v742_v22 }
 0x31a   :  { %v618_v23 = vpop.xlane.xlu0 %617 }
 0x31b   :  { %v622_v24 = vsub.f32 %v613_v15, %v618_v23 }
 0x31d   :  { %v624_v25 = vmul.f32 1.442695, %v622_v24 }
 0x31f   :  { %4243 = vpow2.f32 %v624_v25  ;;  %765 = vrot.lane.b32.xlu2 %v5210_v8, %s4896_s8 }
 0x322   :  { %v621_v26 = vpop.xlane.xlu0 %620 }
 0x323   :  { %v623_v27 = vsub.f32 %v614_v18, %v621_v26 }
 0x325   :  { %v4244_v28 = vpop.eup %4243  ;;  %v626_v29 = vmul.f32 1.442695, %v623_v27 }
 0x326   :  { %v628_v30 = vsel %vm615_vm1, %v4244_v28, 0.0 }
 0x327   :  { %4245 = vpow2.f32 %v626_v29  ;;  %878 = vrot.lane.b32.xlu2 %v5198_v1, %s4897_s3  ;;  %629 = vadd.xlane.f32.xlu1 %v628_v30 }
 0x32d   :  { %v4246_v31 = vpop.eup %4245 }
 0x32e   :  { %v631_v32 = vsel %vm615_vm1, %v4246_v31, 0.0 }
 0x32f   :  { %906 = vrot.lane.b32.xlu2 %v5208_v7, %s4897_s3  ;;  %632 = vadd.xlane.f32.xlu1 %v631_v32 }
 0x335   :  { %v715_v48 = vpop.permute.xlu0 %714 }
 0x337   :  { %1041 = vrot.lane.b32.xlu2 %v5198_v1, %s4898_s18 }
 0x33f   :  { %904 = vrot.lane.b32.xlu2 %v5216_v10, %s4897_s3 }
 0x348   :  { %712 = vrot.lane.b32.xlu1 %v5216_v10, %s4896_s8 }
 0x37a   :  { %v744_v35 = vpop.xlane.xlu2 %743 }
 0x37b   :  { %v748_v36 = vsub.f32 %v740_v21, %v744_v35 }
 0x37d   :  { %v750_v37 = vmul.f32 1.442695, %v748_v36  ;;  %v4220_v36 = vpack.i.bf16 %v5219_v11, %v5210_v8 }
 0x37f   :  { %4247 = vpow2.f32 %v750_v37 }
 0x382   :  { %v766_v38 = vpop.permute.xlu2 %765 }
 0x383   :  { %786 = vmatpush.msrb.mxu3 %v766_v38 }
 0x385   :  { %v4248_v39 = vpop.eup %4247 }
 0x386   :  { %v754_v40 = vsel %vm615_vm1, %v4248_v39, 0.0 }
 0x387   :  { %755 = vadd.xlane.f32.xlu1 %v754_v40 }
 0x38a   :  { %v879_v41 = vpop.permute.xlu2 %878 }
 0x38b   :  { %4046 = vmatpush.xpose.msk.msra.mxu3 %vm387_vm0, %v879_v41 }
 0x392   :  { %v907_v42 = vpop.permute.xlu2 %906 }
 0x39a   :  { %v1042_v43 = vpop.permute.xlu2 %1041  ;;  %v630_v44 = vpop.xlane.xlu1 %629 }
 0x39b   :  { %4249 = vrcp.f32 %v630_v44  ;;  %4054 = vmatpush.xpose.msk.msra.mxu2 %vm387_vm0, %v1042_v43 }
 0x3a0   :  { %876 = vrot.lane.b32.xlu1 %v5204_v3, %s4897_s3 }
 0x3a1   :  { %v4250_v45 = vpop.eup %4249 }
 0x3a2   :  { %v636_v46 = vmul.f32 %v4250_v45, %v4244_v28  ;;  %v633_v47 = vpop.xlane.xlu1 %632  ;;  %v905_v25 = vpop.permute.xlu2 %904 }
 0x3a3   :  { %4251 = vrcp.f32 %v633_v47 }
 0x3a4   :  { %4034 = vmatmul.msk.f32.vlgmr.msrb.gmra.mxu0 %vm615_vm1, %v636_v46 }
 0x3a5   :  { %4038 = vmatpush.xpose.msk.msrb.mxu0 %vm387_vm0, %v715_v48 }
 0x3a9   :  { %v4252_v49 = vpop.eup %4251 }
 0x3aa   :  { %v637_v50 = vmul.f32 %v4252_v49, %v4246_v31 }
 0x3ac   :  { %4035 = vmatmul.msk.f32.vlgmr.msra.gmra.mxu0 %vm615_vm1, %v637_v50 }
 0x3ba   :  { %v713_v51 = vpop.permute.xlu1 %712 }
 0x3bb   :  { %4039 = vmatmul.msk.f32.vlgmr.msrb.gmra.mxu0 %vm387_vm0, %v713_v51 }
 0x3fa   :  { %v756_v52 = vpop.xlane.xlu1 %755 }
 0x3fb   :  { %4253 = vrcp.f32 %v756_v52 }
 0x401   :  { %v4254_v53 = vpop.eup %4253 }
 0x402   :  { %v762_v54 = vmul.f32 %v4254_v53, %v4248_v39 }
 0x404   :  { %4040 = vmatmul.msk.f32.vlgmr.msrb.gmra.mxu3 %vm615_vm1, %v762_v54 }
 0x412   :  { %v877_v55 = vpop.permute.xlu1 %876 }
 0x413   :  { %4047 = vmatmul.msk.f32.vlgmr.msra.gmra.mxu3 %vm387_vm0, %v877_v55  ;;  %v550_v55 = vld [vmem:[#allocation11 + $0x28] sm:$0xff] }
 0x414   :  { %1028 = vmatpush.msrb.mxu1 %v550_v55 }
 0x421   :  { %v658_v57 = vpop.f32.mrf.mxu0 }
 0x422   :  { %4044 = vmatmul.msk.f32.vlgmr.msrb.gmra.mxu2 %vm387_vm0, %v658_v57 }
 0x429   :  { %v681_v58 = vpop.f32.mrf.mxu0 }
 0x42a   :  { %4045 = vmatmul.msk.f32.gmra.mxu2 %vm387_vm0, %v681_v58  ;;  %v549_v58 = vld [vmem:[#allocation11 + $0x20] sm:$0xff] }
 0x42b   :  { %1029 = vmatpush.msrb.mxu1 %v549_v58 }
 0x438   :  { %v737_v61 = vpop.f32.mrf.mxu0 }
 0x439   :  { %v741_v62 = vmul.f32 0.25, %v737_v61 }
 0x43b   :  { %v745_v63 = vsel %vm615_vm1, %v741_v62, -inf }
 0x43c   :  { %746 = vmax.xlane.f32.xlu0 %v745_v63 }
 0x450   :  { %792 = vrot.lane.b32.xlu0 %v5219_v11, %s4896_s8 }
 0x487   :  { %v788_v2 = vpop.f32.mrf.mxu3 }
 0x488   :  { %4042 = vmatmul.msk.f32.vlgmr.msra.gmra.mxu1 %vm387_vm0, %v788_v2 }
 0x496   :  { %v901_v4 = vpop.f32.mrf.mxu3 }
 0x497   :  { %v932_v5 = vmul.f32 0.25, %v901_v4 }
 0x499   :  { %v934_v6 = vsel %vm615_vm1, %v932_v5, -inf }
 0x49a   :  { %935 = vmax.xlane.f32.xlu1 %v934_v6 }
 0x4a5   :  { %v5271_v27 = vpop.f32.mrf.mxu2 }
 0x4ad   :  { %v5274_v29 = vpop.f32.mrf.mxu2 }
 0x4af   :  { %v747_v9 = vpop.xlane.xlu0 %746 }
 0x4b0   :  { %v749_v12 = vsub.f32 %v741_v62, %v747_v9  ;;  %v552_v9 = vld [vmem:[#allocation11 + $0x38] sm:$0xff] }
 0x4b2   :  { %v752_v13 = vmul.f32 1.442695, %v749_v12  ;;  %v551_v12 = vld [vmem:[#allocation11 + $0x30] sm:$0xff] }
 0x4b4   :  { %4255 = vpow2.f32 %v752_v13 }
 0x4ba   :  { %v4256_v14 = vpop.eup %4255 }
 0x4bb   :  { %v757_v15 = vsel %vm615_vm1, %v4256_v14, 0.0 }
 0x4bc   :  { %758 = vadd.xlane.f32.xlu0 %v757_v15 }
 0x4c2   :  { %v793_v16 = vpop.permute.xlu0 %792 }
 0x4c3   :  { %813 = vmatpush.msra.mxu0 %v793_v16 }
 0x4c5   :  { %4048 = vmatpush.xpose.msk.msrb.mxu0 %vm387_vm0, %v907_v42 }
 0x4d0   :  { %1039 = vrot.lane.b32.xlu0 %v5204_v3, %s4898_s18 }
 0x50d   :  { %v936_v17 = vpop.xlane.xlu1 %935 }
 0x50e   :  { %v940_v18 = vsub.f32 %v932_v5, %v936_v17 }
 0x510   :  { %v942_v19 = vmul.f32 1.442695, %v940_v18 }
 0x512   :  { %4257 = vpow2.f32 %v942_v19 }
 0x518   :  { %v4258_v20 = vpop.eup %4257 }
 0x519   :  { %v946_v21 = vsel %vm615_vm1, %v4258_v20, 0.0 }
 0x51a   :  { %947 = vadd.xlane.f32.xlu1 %v946_v21 }
 0x52f   :  { %v759_v22 = vpop.xlane.xlu0 %758 }
 0x530   :  { %4259 = vrcp.f32 %v759_v22 }
 0x536   :  { %v4260_v23 = vpop.eup %4259 }
 0x537   :  { %v763_v24 = vmul.f32 %v4260_v23, %v4256_v14 }
 0x539   :  { %4041 = vmatmul.msk.f32.vlgmr.msra.gmra.mxu0 %vm615_vm1, %v763_v24 }
 0x541   :  { %4049 = vmatmul.msk.f32.vlgmr.msrb.gmra.mxu0 %vm387_vm0, %v905_v25 }
 0x542   :  { %v1040_v26 = vpop.permute.xlu0 %1039 }
 0x543   :  { %4055 = vmatmul.msk.f32.vlgmr.msra.gmra.mxu2 %vm387_vm0, %v1040_v26 }
 0x58d   :  { %v948_v45 = vpop.xlane.xlu1 %947 }
 0x5b6   :  { %v815_v28 = vpop.f32.mrf.mxu0 }
 0x5b7   :  { %4043 = vmatmul.msk.f32.gmra.mxu1 %vm387_vm0, %v815_v28 }
 0x5be   :  { %v929_v30 = vpop.f32.mrf.mxu0 }
 0x5bf   :  { %v933_v31 = vmul.f32 0.25, %v929_v30 }
 0x5c1   :  { %v937_v32 = vsel %vm615_vm1, %v933_v31, -inf }
 0x5c2   :  { %938 = vmax.xlane.f32.xlu2 %v937_v32 }
 0x5c6   :  { %v1064_v33 = vpop.f32.mrf.mxu2 }
 0x5c7   :  { %v1095_v34 = vmul.f32 0.25, %v1064_v33 }
 0x5c9   :  { %v1097_v35 = vsel %vm615_vm1, %v1095_v34, -inf }
 0x5ca   :  { %1098 = vmax.xlane.f32.xlu0 %v1097_v35 }
 0x5da   :  { %1069 = vrot.lane.b32.xlu2 %v5208_v7, %s4898_s18 }
 0x5de   :  { %4221 = vrot.lane.b32.xlu0 %v4220_v36, %s4897_s3 }
 0x5e6   :  { %1119 = vrot.lane.b32.xlu0 %v5210_v8, %s4898_s18 }
 0x5ee   :  { %1204 = vrot.lane.b32.xlu0 %v5198_v1, %s4899_s23 }
 0x635   :  { %v939_v37 = vpop.xlane.xlu2 %938 }
 0x636   :  { %v941_v38 = vsub.f32 %v933_v31, %v939_v37 }
 0x638   :  { %v944_v39 = vmul.f32 1.442695, %v941_v38 }
 0x63a   :  { %4261 = vpow2.f32 %v944_v39 }
 0x63d   :  { %v1099_v40 = vpop.xlane.xlu0 %1098  ;;  %v1070_v53 = vpop.permute.xlu2 %1069 }
 0x63e   :  { %v1103_v41 = vsub.f32 %v1095_v34, %v1099_v40 }
 0x640   :  { %v4262_v42 = vpop.eup %4261  ;;  %v1105_v43 = vmul.f32 1.442695, %v1103_v41 }
 0x641   :  { %v949_v44 = vsel %vm615_vm1, %v4262_v42, 0.0 }
 0x642   :  { %4263 = vpow2.f32 %v1105_v43  ;;  %950 = vadd.xlane.f32.xlu2 %v949_v44 }
 0x643   :  { %4265 = vrcp.f32 %v948_v45 }
 0x648   :  { %v4264_v46 = vpop.eup %4263 }
 0x649   :  { %v1109_v47 = vsel %vm615_vm1, %v4264_v46, 0.0  ;;  %v4266_v48 = vpop.eup %4265 }
 0x64a   :  { %1110 = vadd.xlane.f32.xlu1 %v1109_v47  ;;  %v954_v52 = vmul.f32 %v4266_v48, %v4258_v20  ;;  %v554_v47 = vld [vmem:[#allocation11 + $0x48] sm:$0xff]  ;;  %v553_v48 = vld [vmem:[#allocation11 + $0x40] sm:$0xff] }
 0x650   :  { %v4222_v49 = vpop.permute.xlu0 %4221 }
 0x651   :  { %v4224_v50 = vunpack.i.h.bf16 %v4222_v49  ;;  %v4223_v51 = vunpack.i.l.bf16 %v4222_v49 }
 0x653   :  { %977 = vmatpush.msrb.mxu3 %v4223_v51  ;;  %1003 = vmatpush.msra.mxu0 %v4224_v50 }
 0x654   :  { %4050 = vmatmul.msk.f32.vlgmr.msrb.gmra.mxu3 %vm615_vm1, %v954_v52 }
 0x655   :  { %4056 = vmatpush.xpose.msk.msra.mxu3 %vm387_vm0, %v1070_v53 }
 0x658   :  { %v1120_v54 = vpop.permute.xlu0 %1119 }
 0x659   :  { %1140 = vmatpush.msrb.mxu0 %v1120_v54  ;;  %1191 = vmatpush.msrb.mxu3 %v552_v9 }
 0x65a   :  { %1202 = vrot.lane.b32.xlu2 %v5204_v3, %s4899_s23 }
 0x65b   :  { %1192 = vmatpush.msrb.mxu3 %v551_v12 }
 0x660   :  { %v1205_v63 = vpop.permute.xlu0 %1204 }
 0x663   :  { %1067 = vrot.lane.b32.xlu1 %v5216_v10, %s4898_s18 }
 0x6b5   :  { %v951_v57 = vpop.xlane.xlu2 %950 }
 0x6b6   :  { %4267 = vrcp.f32 %v951_v57 }
 0x6bc   :  { %v4268_v60 = vpop.eup %4267 }
 0x6bd   :  { %v955_v61 = vmul.f32 %v4268_v60, %v4262_v42  ;;  %v1111_v62 = vpop.xlane.xlu1 %1110  ;;  %v1203_v4 = vpop.permute.xlu2 %1202 }
 0x6be   :  { %4269 = vrcp.f32 %v1111_v62 }
 0x6bf   :  { %4051 = vmatmul.msk.f32.vlgmr.msra.gmra.mxu0 %vm615_vm1, %v955_v61 }
 0x6c0   :  { %4062 = vmatpush.xpose.msk.msra.mxu0 %vm387_vm0, %v1205_v63 }
 0x6c4   :  { %v4270_v0 = vpop.eup %4269 }
 0x6c5   :  { %v1117_v2 = vmul.f32 %v4270_v0, %v4264_v46  ;;  %v5328_v46 = vpop.f32.mrf.mxu1 }
 0x6c7   :  { %4058 = vmatmul.msk.f32.vlgmr.msrb.gmra.mxu0 %vm615_vm1, %v1117_v2 }
 0x6cd   :  { %v5330_v49 = vpop.f32.mrf.mxu1 }
 0x6cf   :  { %4063 = vmatmul.msk.f32.vlgmr.msra.gmra.mxu0 %vm387_vm0, %v1203_v4 }
 0x6d5   :  { %v1068_v5 = vpop.permute.xlu1 %1067 }
 0x6d6   :  { %4057 = vmatmul.msk.f32.vlgmr.msra.gmra.mxu3 %vm387_vm0, %v1068_v5 }
 0x6d7   :  { %v979_v6 = vpop.f32.mrf.mxu3 }
 0x6d8   :  { %4052 = vmatmul.msk.f32.vlgmr.msrb.gmra.mxu1 %vm387_vm0, %v979_v6 }
 0x73c   :  { %v1005_v13 = vpop.f32.mrf.mxu0 }
 0x73d   :  { %4053 = vmatmul.msk.f32.gmra.mxu1 %vm387_vm0, %v1005_v13 }
 0x744   :  { %v1142_v14 = vpop.f32.mrf.mxu0 }
 0x745   :  { %4060 = vmatmul.msk.f32.vlgmr.msrb.gmra.mxu3 %vm387_vm0, %v1142_v14 }
 0x74c   :  { %v1227_v15 = vpop.f32.mrf.mxu0 }
 0x74d   :  { %v1258_v16 = vmul.f32 0.25, %v1227_v15 }
 0x74f   :  { %v1260_v17 = vsel %vm615_vm1, %v1258_v16, -inf }
 0x750   :  { %1261 = vmax.xlane.f32.xlu0 %v1260_v17 }
 0x755   :  { %v5332_v50 = vpop.f32.mrf.mxu1 }
 0x759   :  { %v1092_v18 = vpop.f32.mrf.mxu3 }
 0x75a   :  { %v1096_v19 = vmul.f32 0.25, %v1092_v18 }
 0x75c   :  { %v1100_v20 = vsel %vm615_vm1, %v1096_v19, -inf }
 0x75d   :  { %1101 = vmax.xlane.f32.xlu1 %v1100_v20 }
 0x764   :  { %1145 = vrot.lane.b32.xlu0 %v5219_v11, %s4898_s18 }
 0x76c   :  { %1367 = vrot.lane.b32.xlu0 %v5198_v1, %s4900_s26 }
 0x774   :  { %1365 = vrot.lane.b32.xlu0 %v5204_v3, %s4900_s26 }
 0x77c   :  { %1395 = vrot.lane.b32.xlu0 %v5208_v7, %s4900_s26 }
 0x7ba   :  { %v5334_v51 = vpop.f32.mrf.mxu1 }
 0x7c3   :  { %v1262_v21 = vpop.xlane.xlu0 %1261 }
 0x7c4   :  { %v1266_v22 = vsub.f32 %v1258_v16, %v1262_v21 }
 0x7c6   :  { %v1268_v23 = vmul.f32 1.442695, %v1266_v22 }
 0x7c8   :  { %4271 = vpow2.f32 %v1268_v23  ;;  %v5353_v16 = vpop.f32.mrf.mxu3 }
 0x7ce   :  { %v4272_v24 = vpop.eup %4271 }
 0x7cf   :  { %v1272_v25 = vsel %vm615_vm1, %v4272_v24, 0.0 }
 0x7d0   :  { %1273 = vadd.xlane.f32.xlu1 %v1272_v25  ;;  %v1102_v26 = vpop.xlane.xlu1 %1101 }
 0x7d1   :  { %v1104_v28 = vsub.f32 %v1096_v19, %v1102_v26 }
 0x7d3   :  { %v1107_v30 = vmul.f32 1.442695, %v1104_v28 }
 0x7d5   :  { %4273 = vpow2.f32 %v1107_v30 }
 0x7d6   :  { %v1146_v31 = vpop.permute.xlu0 %1145 }
 0x7d7   :  { %1166 = vmatpush.msrb.mxu2 %v1146_v31 }
 0x7db   :  { %v4274_v32 = vpop.eup %4273 }
 0x7dc   :  { %v1112_v33 = vsel %vm615_vm1, %v4274_v32, 0.0 }
 0x7dd   :  { %1113 = vadd.xlane.f32.xlu2 %v1112_v33  ;;  %v555_v33 = vld [vmem:[#allocation11 + $0x50] sm:$0xff] }
 0x7de   :  { %v1368_v34 = vpop.permute.xlu0 %1367 }
 0x7e6   :  { %v1366_v35 = vpop.permute.xlu0 %1365 }
 0x7e9   :  { %1232 = vrot.lane.b32.xlu1 %v5208_v7, %s4899_s23 }
 0x7ee   :  { %v1396_v36 = vpop.permute.xlu0 %1395 }
 0x7ef   :  { %4072 = vmatpush.xpose.msk.msra.mxu3 %vm387_vm0, %v1396_v36 }
 0x7f5   :  { %1282 = vrot.lane.b32.xlu2 %v5210_v8, %s4899_s23 }
 0x7fd   :  { %1230 = vrot.lane.b32.xlu2 %v5216_v10, %s4899_s23 }
 0x843   :  { %v1274_v38 = vpop.xlane.xlu1 %1273 }
 0x850   :  { %v1114_v37 = vpop.xlane.xlu2 %1113 }
 0x851   :  { %4275 = vrcp.f32 %v1114_v37 }
 0x852   :  { %4277 = vrcp.f32 %v1274_v38 }
 0x857   :  { %v4276_v39 = vpop.eup %4275 }
 0x858   :  { %v1118_v40 = vmul.f32 %v4276_v39, %v4274_v32  ;;  %v1283_v41 = vpop.permute.xlu2 %1282  ;;  %v4278_v43 = vpop.eup %4277  ;;  %v556_v32 = vld [vmem:[#allocation11 + $0x58] sm:$0xff] }
 0x859   :  { %1303 = vmatpush.msra.mxu2 %v1283_v41  ;;  %v1280_v44 = vmul.f32 %v4278_v43, %v4272_v24  ;;  %1517 = vmatpush.msrb.mxu3 %v556_v32 }
 0x85a   :  { %4059 = vmatmul.msk.f32.vlgmr.msrb.gmra.mxu2 %vm615_vm1, %v1118_v40 }
 0x85b   :  { %4070 = vmatpush.xpose.msk.msrb.mxu2 %vm387_vm0, %v1368_v34  ;;  %v1233_v42 = vpop.permute.xlu1 %1232  ;;  %1518 = vmatpush.msrb.mxu3 %v555_v33 }
 0x85c   :  { %4064 = vmatpush.xpose.msk.msra.mxu1 %vm387_vm0, %v1233_v42 }
 0x860   :  { %v1231_v45 = vpop.permute.xlu2 %1230  ;;  %1354 = vmatpush.msrb.mxu1 %v554_v47 }
 0x861   :  { %4065 = vmatmul.msk.f32.vlgmr.msra.gmra.mxu1 %vm387_vm0, %v1231_v45 }
 0x862   :  { %4066 = vmatmul.msk.f32.vlgmr.msra.gmra.mxu2 %vm615_vm1, %v1280_v44  ;;  %1355 = vmatpush.msrb.mxu1 %v553_v48 }
 0x86a   :  { %4071 = vmatmul.msk.f32.vlgmr.msrb.gmra.mxu2 %vm387_vm0, %v1366_v35 }
 0x8dd   :  { %v1168_v52 = vpop.f32.mrf.mxu2 }
 0x8de   :  { %4061 = vmatmul.msk.f32.gmra.mxu3 %vm387_vm0, %v1168_v52  ;;  %v1255_v53 = vpop.f32.mrf.mxu1 }
 0x8df   :  { %v1259_v54 = vmul.f32 0.25, %v1255_v53 }
 0x8e1   :  { %v1263_v55 = vsel %vm615_vm1, %v1259_v54, -inf }
 0x8e2   :  { %1264 = vmax.xlane.f32.xlu1 %v1263_v55 }
 0x8e5   :  { %v1305_v57 = vpop.f32.mrf.mxu2 }
 0x8e6   :  { %4068 = vmatmul.msk.f32.vlgmr.msrb.gmra.mxu1 %vm387_vm0, %v1305_v57 }
 0x8ed   :  { %v1390_v58 = vpop.f32.mrf.mxu2 }
 0x8ee   :  { %v1421_v60 = vmul.f32 0.25, %v1390_v58 }
 0x8f0   :  { %v1423_v61 = vsel %vm615_vm1, %v1421_v60, -inf }
 0x8f1   :  { %1424 = vmax.xlane.f32.xlu2 %v1423_v61 }
 0x8fb   :  { %1393 = vrot.lane.b32.xlu1 %v5216_v10, %s4900_s26 }
 0x903   :  { %1530 = vrot.lane.b32.xlu1 %v5198_v1, %s4901_s12 }
 0x955   :  { %v1265_v62 = vpop.xlane.xlu1 %1264 }
 0x956   :  { %v1267_v63 = vsub.f32 %v1259_v54, %v1265_v62 }
 0x958   :  { %v1270_v0 = vmul.f32 1.442695, %v1267_v63 }
 0x95a   :  { %4279 = vpow2.f32 %v1270_v0 }
 0x960   :  { %v4280_v2 = vpop.eup %4279 }
 0x961   :  { %v1275_v4 = vsel %vm615_vm1, %v4280_v2, 0.0  ;;  %v5355_v19 = vpop.f32.mrf.mxu3 }
 0x962   :  { %1276 = vadd.xlane.f32.xlu0 %v1275_v4  ;;  %v558_v4 = vld [vmem:[#allocation11 + $0x68] sm:$0xff] }
 0x964   :  { %v1425_v5 = vpop.xlane.xlu2 %1424 }
 0x965   :  { %v1429_v6 = vsub.f32 %v1421_v60, %v1425_v5  ;;  %v557_v5 = vld [vmem:[#allocation11 + $0x60] sm:$0xff] }
 0x967   :  { %v1431_v9 = vmul.f32 1.442695, %v1429_v6  ;;  %v5392_v6 = vpop.f32.mrf.mxu1 }
 0x969   :  { %4281 = vpow2.f32 %v1431_v9 }
 0x96d   :  { %v1394_v12 = vpop.permute.xlu1 %1393 }
 0x96e   :  { %4073 = vmatmul.msk.f32.vlgmr.msra.gmra.mxu3 %vm387_vm0, %v1394_v12 }
 0x96f   :  { %v4282_v13 = vpop.eup %4281 }
 0x970   :  { %v1435_v14 = vsel %vm615_vm1, %v4282_v13, 0.0 }
 0x971   :  { %1436 = vadd.xlane.f32.xlu2 %v1435_v14 }
 0x975   :  { %v1531_v23 = vpop.permute.xlu1 %1530 }
 0x976   :  { %1445 = vrot.lane.b32.xlu0 %v5210_v8, %s4900_s26 }
 0x97e   :  { %1528 = vrot.lane.b32.xlu0 %v5204_v3, %s4901_s12 }
 0x989   :  { %1308 = vrot.lane.b32.xlu2 %v5219_v11, %s4899_s23 }
 0x9d5   :  { %v1277_v15 = vpop.xlane.xlu0 %1276 }
 0x9d6   :  { %4283 = vrcp.f32 %v1277_v15 }
 0x9dc   :  { %v4284_v18 = vpop.eup %4283 }
 0x9dd   :  { %v1281_v20 = vmul.f32 %v4284_v18, %v4280_v2 }
 0x9e4   :  { %v1437_v17 = vpop.xlane.xlu2 %1436 }
 0x9e5   :  { %4285 = vrcp.f32 %v1437_v17 }
 0x9e8   :  { %v1446_v22 = vpop.permute.xlu0 %1445 }
 0x9eb   :  { %v4286_v24 = vpop.eup %4285 }
 0x9ec   :  { %v1309_v21 = vpop.permute.xlu2 %1308  ;;  %v1443_v28 = vmul.f32 %v4286_v24, %v4282_v13 }
 0x9ed   :  { %1329 = vmatpush.msrb.mxu0 %v1309_v21 }
 0x9ee   :  { %4067 = vmatmul.msk.f32.vlgmr.msrb.gmra.mxu0 %vm615_vm1, %v1281_v20 }
 0x9ef   :  { %1466 = vmatpush.msra.mxu0 %v1446_v22 }
 0x9f0   :  { %v1529_v31 = vpop.permute.xlu0 %1528 }
 0x9f1   :  { %4078 = vmatpush.xpose.msk.msrb.mxu0 %vm387_vm0, %v1531_v23  ;;  %v1418_v25 = vpop.f32.mrf.mxu3 }
 0x9f2   :  { %v1422_v26 = vmul.f32 0.25, %v1418_v25 }
 0x9f4   :  { %v1426_v30 = vsel %vm615_vm1, %v1422_v26, -inf }
 0x9f5   :  { %1427 = vmax.xlane.f32.xlu2 %v1426_v30 }
 0x9f6   :  { %4074 = vmatmul.msk.f32.vlgmr.msra.gmra.mxu0 %vm615_vm1, %v1443_v28 }
 0x9fe   :  { %4079 = vmatmul.msk.f32.vlgmr.msrb.gmra.mxu0 %vm387_vm0, %v1529_v31 }
 0xa0d   :  { %1471 = vrot.lane.b32.xlu2 %v5219_v11, %s4900_s26 }
 0xa15   :  { %1693 = vrot.lane.b32.xlu2 %v5198_v1, %s4881_s15 }
 0xa1d   :  { %1691 = vrot.lane.b32.xlu2 %v5204_v3, %s4881_s15 }
 0xa68   :  { %v1428_v34 = vpop.xlane.xlu2 %1427 }
 0xa69   :  { %v1430_v35 = vsub.f32 %v1422_v26, %v1428_v34 }
 0xa6b   :  { %v1433_v36 = vmul.f32 1.442695, %v1430_v35  ;;  %v1331_v37 = vpop.f32.mrf.mxu0 }
 0xa6c   :  { %4069 = vmatmul.msk.f32.gmra.mxu1 %vm387_vm0, %v1331_v37 }
 0xa6d   :  { %4287 = vpow2.f32 %v1433_v36 }
 0xa70   :  { %v1472_v38 = vpop.permute.xlu2 %1471 }
 0xa71   :  { %1492 = vmatpush.msra.mxu2 %v1472_v38 }
 0xa73   :  { %v4288_v39 = vpop.eup %4287  ;;  %v1468_v40 = vpop.f32.mrf.mxu0 }
 0xa74   :  { %4076 = vmatmul.msk.f32.vlgmr.msrb.gmra.mxu3 %vm387_vm0, %v1468_v40  ;;  %v1438_v1 = vsel %vm615_vm1, %v4288_v39, 0.0 }
 0xa75   :  { %1439 = vadd.xlane.f32.xlu0 %v1438_v1 }
 0xa78   :  { %v1694_v54 = vpop.permute.xlu2 %1693 }
 0xa7b   :  { %v1553_v3 = vpop.f32.mrf.mxu0 }
 0xa7c   :  { %v1584_v41 = vmul.f32 0.25, %v1553_v3 }
 0xa7e   :  { %v1586_v42 = vsel %vm615_vm1, %v1584_v41, -inf }
 0xa7f   :  { %1587 = vmax.xlane.f32.xlu1 %v1586_v42 }
 0xa80   :  { %v1692_v62 = vpop.permute.xlu2 %1691 }
 0xa89   :  { %1608 = vrot.lane.b32.xlu0 %v5210_v8, %s4901_s12 }
 0xa91   :  { %1556 = vrot.lane.b32.xlu0 %v5216_v10, %s4901_s12 }
 0xa99   :  { %1719 = vrot.lane.b32.xlu0 %v5216_v10, %s4881_s15 }
 0xae8   :  { %v1440_v43 = vpop.xlane.xlu0 %1439 }
 0xae9   :  { %4289 = vrcp.f32 %v1440_v43  ;;  %v5395_v12 = vpop.f32.mrf.mxu1 }
 0xaef   :  { %v4290_v44 = vpop.eup %4289 }
 0xaf0   :  { %v1444_v45 = vmul.f32 %v4290_v44, %v4288_v39 }
 0xaf2   :  { %4075 = vmatmul.msk.f32.vlgmr.msra.gmra.mxu2 %vm615_vm1, %v1444_v45  ;;  %v1588_v47 = vpop.xlane.xlu1 %1587 }
 0xaf3   :  { %v1592_v48 = vsub.f32 %v1584_v41, %v1588_v47 }
 0xaf5   :  { %v1594_v52 = vmul.f32 1.442695, %v1592_v48 }
 0xaf7   :  { %4291 = vpow2.f32 %v1594_v52  ;;  %v5401_v21 = vpop.f32.mrf.mxu3 }
 0xafb   :  { %v1609_v53 = vpop.permute.xlu0 %1608 }
 0xafc   :  { %1629 = vmatpush.msrb.mxu2 %v1609_v53  ;;  %v559_v53 = vld [vmem:[#allocation11 + $0x70] sm:$0xff] }
 0xafd   :  { %v4292_v55 = vpop.eup %4291 }
 0xafe   :  { %4086 = vmatpush.xpose.msk.msra.mxu2 %vm387_vm0, %v1694_v54  ;;  %v1598_v57 = vsel %vm615_vm1, %v4292_v55, 0.0 }
 0xaff   :  { %1599 = vadd.xlane.f32.xlu1 %v1598_v57 }
 0xb03   :  { %v1557_v0 = vpop.permute.xlu0 %1556 }
 0xb18   :  { %1558 = vrot.lane.b32.xlu1 %v5208_v7, %s4901_s12 }
 0xb20   :  { %1721 = vrot.lane.b32.xlu1 %v5208_v7, %s4881_s15  ;;  %v1720_v7 = vpop.permute.xlu0 %1719 }
 0xb72   :  { %v1600_v10 = vpop.xlane.xlu1 %1599 }
 0xb73   :  { %4293 = vrcp.f32 %v1600_v10 }
 0xb75   :  { %v1494_v58 = vpop.f32.mrf.mxu2 }
 0xb76   :  { %4077 = vmatmul.msk.f32.gmra.mxu3 %vm387_vm0, %v1494_v58 }
 0xb79   :  { %v4294_v60 = vpop.eup %4293 }
 0xb7a   :  { %v1606_v61 = vmul.f32 %v4294_v60, %v4292_v55 }
 0xb7c   :  { %4082 = vmatmul.msk.f32.vlgmr.msrb.gmra.mxu2 %vm615_vm1, %v1606_v61 }
 0xb84   :  { %4087 = vmatmul.msk.f32.vlgmr.msra.gmra.mxu2 %vm387_vm0, %v1692_v62 }
 0xb8a   :  { %v1559_v63 = vpop.permute.xlu1 %1558 }
 0xb8b   :  { %4080 = vmatpush.xpose.msk.msra.mxu1 %vm387_vm0, %v1559_v63 }
 0xb8e   :  { %4081 = vmatmul.msk.f32.vlgmr.msra.gmra.mxu1 %vm387_vm0, %v1557_v0 }
 0xb8f   :  { %1680 = vmatpush.msrb.mxu1 %v558_v4 }
 0xb91   :  { %1681 = vmatpush.msrb.mxu1 %v557_v5  ;;  %v4231_v5 = vld [vmem:[#allocation13] ss:$0 sm:$0xff] }
 0xb92   :  { %v1722_v2 = vpop.permute.xlu1 %1721 }
 0xb93   :  { %4088 = vmatpush.xpose.msk.msra.mxu3 %vm387_vm0, %v1722_v2 }
 0xb96   :  { %4089 = vmatmul.msk.f32.vlgmr.msra.gmra.mxu3 %vm387_vm0, %v1720_v7 }
 0xbf9   :  { %v5403_v26 = vpop.f32.mrf.mxu3 }
 0xbff   :  { %v1631_v9 = vpop.f32.mrf.mxu2 }
 0xc00   :  { %4084 = vmatmul.msk.f32.vlgmr.msrb.gmra.mxu1 %vm387_vm0, %v1631_v9 }
 0xc07   :  { %v1716_v13 = vpop.f32.mrf.mxu2 }
 0xc08   :  { %v1747_v14 = vmul.f32 0.25, %v1716_v13 }
 0xc0a   :  { %v1749_v15 = vsel %vm615_vm1, %v1747_v14, -inf }
 0xc0b   :  { %1750 = vmax.xlane.f32.xlu1 %v1749_v15  ;;  %v1581_v17 = vpop.f32.mrf.mxu1 }
 0xc0c   :  { %v1585_v18 = vmul.f32 0.25, %v1581_v17  ;;  %v1950_v17 = vld [vmem:[#allocation17 + $0xe8] sm:$0xff] }
 0xc0e   :  { %v1589_v20 = vsel %vm615_vm1, %v1585_v18, -inf }
 0xc0f   :  { %1590 = vmax.xlane.f32.xlu2 %v1589_v20 }
 0xc19   :  { %v1744_v33 = vpop.f32.mrf.mxu3 }
 0xc1a   :  { %v1748_v35 = vmul.f32 0.25, %v1744_v33 }
 0xc1c   :  { %v1752_v37 = vsel %vm615_vm1, %v1748_v35, -inf }
 0xc24   :  { %1634 = vrot.lane.b32.xlu1 %v5219_v11, %s4901_s12 }
 0xc7d   :  { %v1683_v2 = vpop.f32.mrf.mxu1 }
 0xc7e   :  { %v1751_v22 = vpop.xlane.xlu1 %1750 }
 0xc7f   :  { %v1755_v23 = vsub.f32 %v1747_v14, %v1751_v22  ;;  %v874_v22 = vadd.f32 %v5274_v29, %v5330_v49 }
 0xc81   :  { %v1757_v24 = vmul.f32 1.442695, %v1755_v23 }
 0xc82   :  { %v1591_v25 = vpop.xlane.xlu2 %1590 }
 0xc83   :  { %4295 = vpow2.f32 %v1757_v24  ;;  %v1593_v28 = vsub.f32 %v1585_v18, %v1591_v25 }
 0xc85   :  { %v1596_v30 = vmul.f32 1.442695, %v1593_v28 }
 0xc87   :  { %4297 = vpow2.f32 %v1596_v30 }
 0xc89   :  { %v4296_v31 = vpop.eup %4295 }
 0xc8a   :  { %v1761_v32 = vsel %vm615_vm1, %v4296_v31, 0.0 }
 0xc8b   :  { %1762 = vadd.xlane.f32.xlu2 %v1761_v32 }
 0xc8d   :  { %v4298_v34 = vpop.eup %4297 }
 0xc8e   :  { %v1601_v36 = vsel %vm615_vm1, %v4298_v34, 0.0 }
 0xc8f   :  { %1602 = vadd.xlane.f32.xlu0 %v1601_v36 }
 0xc93   :  { %1753 = vmax.xlane.f32.xlu2 %v1752_v37  ;;  %v1948_v37 = vld [vmem:[#allocation17 + $0xd8] sm:$0xff] }
 0xc96   :  { %v1635_v38 = vpop.permute.xlu1 %1634 }
 0xc97   :  { %1655 = vmatpush.msra.mxu0 %v1635_v38  ;;  %v1946_v38 = vld [vmem:[#allocation17 + $0xc8] sm:$0xff] }
 0xca3   :  { %1771 = vrot.lane.b32.xlu0 %v5210_v8, %s4881_s15  ;;  %v560_v8 = vld [vmem:[#allocation11 + $0x78] sm:$0xff] }
 0xca4   :  { %1843 = vmatpush.msrb.mxu3 %v560_v8  ;;  %v1932_v8 = vld [vmem:[#allocation17 + $0x58] sm:$0xff] }
 0xca6   :  { %1844 = vmatpush.msrb.mxu3 %v559_v53  ;;  %v1929_v53 = vld [vmem:[#allocation17 + $0x40] sm:$0xff] }
 0xcfe   :  { %v1763_v39 = vpop.xlane.xlu2 %1762 }
 0xd02   :  { %v1603_v40 = vpop.xlane.xlu0 %1602 }
 0xd03   :  { %4299 = vrcp.f32 %v1603_v40  ;;  %v1944_v40 = vld [vmem:[#allocation17 + $0xb8] sm:$0xff] }
 0xd06   :  { %v1754_v1 = vpop.xlane.xlu2 %1753 }
 0xd07   :  { %v1756_v3 = vsub.f32 %v1748_v35, %v1754_v1  ;;  %v1941_v1 = vld [vmem:[#allocation17 + $0xa0] sm:$0xff] }
 0xd09   :  { %v4300_v41 = vpop.eup %4299  ;;  %v1759_v42 = vmul.f32 1.442695, %v1756_v3  ;;  %v1942_v3 = vld [vmem:[#allocation17 + $0xa8] sm:$0xff] }
 0xd0a   :  { %v1607_v43 = vmul.f32 %v4300_v41, %v4298_v34  ;;  %v1940_v41 = vld [vmem:[#allocation17 + $0x98] sm:$0xff] }
 0xd0b   :  { %4301 = vpow2.f32 %v1759_v42  ;;  %v1937_v42 = vld [vmem:[#allocation17 + $0x80] sm:$0xff] }
 0xd0c   :  { %4303 = vrcp.f32 %v1763_v39  ;;  %4083 = vmatmul.msk.f32.vlgmr.msra.gmra.mxu0 %vm615_vm1, %v1607_v43  ;;  %v1943_v39 = vld [vmem:[#allocation17 + $0xb0] sm:$0xff]  ;;  %v1938_v43 = vld [vmem:[#allocation17 + $0x88] sm:$0xff] }
 0xd11   :  { %v4302_v44 = vpop.eup %4301 }
 0xd12   :  { %v4304_v45 = vpop.eup %4303  ;;  %v1764_v47 = vsel %vm615_vm1, %v4302_v44, 0.0 }
 0xd13   :  { %1765 = vadd.xlane.f32.xlu2 %v1764_v47  ;;  %v1769_v48 = vmul.f32 %v4304_v45, %v4296_v31  ;;  %v1936_v45 = vld [vmem:[#allocation17 + $0x78] sm:$0xff]  ;;  %v1933_v47 = vld [vmem:[#allocation17 + $0x60] sm:$0xff] }
 0xd15   :  { %v1772_v52 = vpop.permute.xlu0 %1771 }
 0xd16   :  { %1792 = vmatpush.msrb.mxu0 %v1772_v52  ;;  %v1931_v52 = vld [vmem:[#allocation17 + $0x50] sm:$0xff] }
 0xd17   :  { %4090 = vmatmul.msk.f32.vlgmr.msrb.gmra.mxu0 %vm615_vm1, %v1769_v48  ;;  %v1934_v48 = vld [vmem:[#allocation17 + $0x68] sm:$0xff] }
 0xd2b   :  { %1797 = vrot.lane.b32.xlu2 %v5219_v11, %s4881_s15  ;;  %v871_v11 = vadd.f32 %v5271_v27, %v5328_v46  ;;  %v4902_v27 = vmov 128.0  }
 0xd2d   :  { %v1037_v61 = vadd.f32 %v5332_v50, %v871_v11  ;;  %v1951_v50 = vld [vmem:[#allocation17 + $0xf0] sm:$0xff]  ;;  %v1924_v11 = vld [vmem:[#allocation17 + $0x18] sm:$0xff] }
 0xd2e   :  { %1959 = vmatpush.msra.mxu1 %v1951_v50 }
 0xd2f   :  { %v1200_v62 = vadd.f32 %v5353_v16, %v1037_v61  ;;  %v1952_v16 = vld [vmem:[#allocation17 + $0xf8] sm:$0xff]  ;;  %v1921_v61 = vld [vmem:[#allocation17] sm:$0xff] }
 0xd30   :  { %1982 = vmatpush.msra.mxu0 %v1952_v16  ;;  %v5450_v16 = vld [vmem:[#allocation14] ss:$0 sm:$0xff] }
 0xd31   :  { %v1363_v63 = vadd.f32 %v5392_v6, %v1200_v62  ;;  %v1949_v6 = vld [vmem:[#allocation17 + $0xe0] sm:$0xff]  ;;  %v1922_v62 = vld [vmem:[#allocation17 + $0x8] sm:$0xff] }
 0xd32   :  { %1960 = vmatpush.msra.mxu1 %v1949_v6  ;;  %1983 = vmatpush.msra.mxu0 %v1950_v17 }
 0xd33   :  { %v1526_v7 = vadd.f32 %v5401_v21, %v1363_v63 }
 0xd34   :  { %1984 = vmatpush.msra.mxu0 %v1948_v37  ;;  %v2032_v37 = vld [vmem:[#allocation19 + $0xb8] sm:$0xff] }
 0xd35   :  { %v1689_v4 = vadd.f32 %v1683_v2, %v1526_v7 }
 0xd36   :  { %1985 = vmatpush.msra.mxu0 %v1946_v38  ;;  %v2031_v38 = vld [vmem:[#allocation19 + $0xb0] sm:$0xff] }
 0xd38   :  { %1986 = vmatpush.msra.mxu0 %v1944_v40  ;;  %v2030_v40 = vld [vmem:[#allocation19 + $0xa8] sm:$0xff] }
 0xd3a   :  { %1987 = vmatpush.msra.mxu0 %v1942_v3  ;;  %v2029_v3 = vld [vmem:[#allocation19 + $0xa0] sm:$0xff] }
 0xd3c   :  { %1988 = vmatpush.msra.mxu0 %v1940_v41  ;;  %v2028_v41 = vld [vmem:[#allocation19 + $0x98] sm:$0xff] }
 0xd3e   :  { %1989 = vmatpush.msra.mxu0 %v1938_v43  ;;  %v2027_v43 = vld [vmem:[#allocation19 + $0x90] sm:$0xff] }
 0xd40   :  { %1990 = vmatpush.msra.mxu0 %v1936_v45  ;;  %v2026_v45 = vld [vmem:[#allocation19 + $0x88] sm:$0xff] }
 0xd42   :  { %1991 = vmatpush.msra.mxu0 %v1934_v48  ;;  %v2025_v48 = vld [vmem:[#allocation19 + $0x80] sm:$0xff] }
 0xd44   :  { %1992 = vmatpush.msra.mxu0 %v1932_v8 }
 0xd86   :  { %v1766_v54 = vpop.xlane.xlu2 %1765 }
 0xd87   :  { %4305 = vrcp.f32 %v1766_v54  ;;  %v1930_v54 = vld [vmem:[#allocation17 + $0x48] sm:$0xff] }
 0xd88   :  { %4307 = vrcp.f32 %v4902_v27  ;;  %1993 = vmatpush.msra.mxu0 %v1930_v54 }
 0xd89   :  { %v1657_v55 = vpop.f32.mrf.mxu0 }
 0xd8a   :  { %4085 = vmatmul.msk.f32.gmra.mxu1 %vm387_vm0, %v1657_v55  ;;  %v1927_v55 = vld [vmem:[#allocation17 + $0x30] sm:$0xff] }
 0xd8d   :  { %v4306_v57 = vpop.eup %4305 }
 0xd8e   :  { %v1770_v10 = vmul.f32 %v4306_v57, %v4302_v44  ;;  %v1798_v58 = vpop.permute.xlu2 %1797  ;;  %v4308_v46 = vpop.eup %4307  ;;  %v1935_v44 = vld [vmem:[#allocation17 + $0x70] sm:$0xff]  ;;  %v1928_v57 = vld [vmem:[#allocation17 + $0x38] sm:$0xff] }
 0xd8f   :  { %1818 = vmatpush.msrb.mxu2 %v1798_v58  ;;  %v1867_v18 = vmul.f32 128.0, %v4308_v46  ;;  %vm1871_vm2 = vweird.f32 %v4308_v46  ;;  %1994 = vmatpush.msra.mxu0 %v1928_v57  ;;  %v1926_v58 = vld [vmem:[#allocation17 + $0x28] sm:$0xff] }
 0xd90   :  { %4091 = vmatmul.msk.f32.vlgmr.msrb.gmra.mxu2 %vm615_vm1, %v1770_v10  ;;  %v1925_v10 = vld [vmem:[#allocation17 + $0x20] sm:$0xff] }
 0xd91   :  { %v1868_v20 = vsub.f32 1.0, %v1867_v18  ;;  %1995 = vmatpush.msra.mxu0 %v1926_v58  ;;  %v5453_v18 = vld [vmem:[#allocation16] ss:$0 sm:$0xff] }
 0xd93   :  { %v1869_v21 = vmul.f32 %v4308_v46, %v1868_v20  ;;  %1996 = vmatpush.msra.mxu0 %v1924_v11  ;;  %v1953_v11 = vld [vmem:[%s5783_s2] sm:$0x3] }
 0xd94   :  { %v1794_v60 = vpop.f32.mrf.mxu0 }
 0xd95   :  { %4092 = vmatmul.msk.f32.vlgmr.msrb.gmra.mxu3 %vm387_vm0, %v1794_v60  ;;  %v1870_v23 = vadd.f32 %v4308_v46, %v1869_v21  ;;  %v1923_v60 = vld [vmem:[#allocation17 + $0x10] sm:$0xff]  ;;  %1997 = vmatpush.msra.mxu0 %v1922_v62 }
 0xd97   :  { %v5430_v25 = vsel %vm1871_vm2, %v4308_v46, %v1870_v23  ;;  %v2040_v23 = vld [vmem:[#allocation19 + $0xf8] sm:$0xff] }
 0xd98   :  { %2068 = vmatpush.msra.mxu3 %v2040_v23 }
 0xe07   :  { %v1686_v31 = vpop.f32.mrf.mxu1 }
 0xe13   :  { %v1820_v0 = vpop.f32.mrf.mxu2 }
 0xe14   :  { %4093 = vmatmul.msk.f32.gmra.mxu3 %vm387_vm0, %v1820_v0 }
 0xe18   :  { %v1846_v9 = vpop.f32.mrf.mxu3 }
 0xe19   :  { %v1852_v13 = vadd.f32 %v1846_v9, %v1689_v4 }
 0xe1b   :  { %v1858_v14 = vadd.f32 %v4231_v5, %v1852_v13 }
 0xe1d   :  { %v1860_v15 = vadd.f32 %v1858_v14, %v5187_v56  ;;  %v1038_v56 = vadd.f32 %v5334_v51, %v874_v22  ;;  %v2024_v22 = vld [vmem:[#allocation19 + $0x78] sm:$0xff] }
 0xe1e   :  { %2045 = vmatpush.msra.mxu2 %v2024_v22 }
 0xe1f   :  { %1862 = vadd.xlane.f32.xlu0 %v1860_v15  ;;  %v1201_v24 = vadd.f32 %v5355_v19, %v1038_v56  ;;  %v2023_v56 = vld [vmem:[#allocation19 + $0x70] sm:$0xff] }
 0xe20   :  { %2046 = vmatpush.msra.mxu2 %v2023_v56 }
 0xe21   :  { %v1364_v28 = vadd.f32 %v5395_v12, %v1201_v24  ;;  %v1947_v12 = vld [vmem:[#allocation17 + $0xd0] sm:$0xff] }
 0xe22   :  { %1961 = vmatpush.msra.mxu1 %v1947_v12  ;;  %v2039_v24 = vld [vmem:[#allocation19 + $0xf0] sm:$0xff]  ;;  %v2016_v12 = vld [vmem:[#allocation19 + $0x38] sm:$0xff] }
 0xe23   :  { %v1527_v33 = vadd.f32 %v5403_v26, %v1364_v28  ;;  %v1945_v26 = vld [vmem:[#allocation17 + $0xc0] sm:$0xff]  ;;  %2069 = vmatpush.msra.mxu3 %v2039_v24  ;;  %v2022_v28 = vld [vmem:[#allocation19 + $0x68] sm:$0xff] }
 0xe24   :  { %1962 = vmatpush.msra.mxu1 %v1945_v26  ;;  %2047 = vmatpush.msra.mxu2 %v2022_v28  ;;  %v2015_v26 = vld [vmem:[#allocation19 + $0x30] sm:$0xff] }
 0xe25   :  { %v1690_v35 = vadd.f32 %v1686_v31, %v1527_v33  ;;  %v2021_v31 = vld [vmem:[#allocation19 + $0x60] sm:$0xff]  ;;  %v2020_v33 = vld [vmem:[#allocation19 + $0x58] sm:$0xff]  ;;  %v2190_v28 = vld [vmem:[#allocation22 + $0x168] sm:$0xff] }
 0xe26   :  { %1963 = vmatpush.msra.mxu1 %v1943_v39  ;;  %2048 = vmatpush.msra.mxu2 %v2021_v31  ;;  %v2014_v39 = vld [vmem:[#allocation19 + $0x28] sm:$0xff]  ;;  %v2192_v31 = vld [vmem:[#allocation22 + $0x178] sm:$0xff] }
 0xe28   :  { %1964 = vmatpush.msra.mxu1 %v1941_v1  ;;  %2049 = vmatpush.msra.mxu2 %v2020_v33  ;;  %v2013_v1 = vld [vmem:[#allocation19 + $0x20] sm:$0xff] }
 0xe29   :  { %v2188_v33 = vld [vmem:[#allocation22 + $0x158] sm:$0xff] }
 0xe92   :  { %v1863_v30 = vpop.xlane.xlu0 %1862 }
 0xe93   :  { %v1873_v32 = vmul.f32 %v5430_v25, %v1863_v30  ;;  %v2038_v30 = vld [vmem:[#allocation19 + $0xe8] sm:$0xff] }
 0xe94   :  { %2070 = vmatpush.msra.mxu3 %v2038_v30  ;;  %v2191_v30 = vld [vmem:[#allocation22 + $0x170] sm:$0xff] }
 0xe95   :  { %v5435_v34 = vsub.f32 %v1860_v15, %v1873_v32  ;;  %v2037_v32 = vld [vmem:[#allocation19 + $0xe0] sm:$0xff]  ;;  %2224 = vmatpush.msrb.mxu0 %v2191_v30 }
 0xe96   :  { %2071 = vmatpush.msra.mxu3 %v2037_v32  ;;  %v2187_v32 = vld [vmem:[#allocation22 + $0x150] sm:$0xff] }
 0xe97   :  { %v1849_v29 = vpop.f32.mrf.mxu3  ;;  %v1877_v49 = vmul.f32 %v5435_v34, %v5435_v34  ;;  %2225 = vmatpush.msrb.mxu0 %v2188_v33 }
 0xe98   :  { %v1853_v51 = vadd.f32 %v1849_v29, %v1690_v35  ;;  %v2019_v35 = vld [vmem:[#allocation19 + $0x50] sm:$0xff] }
 0xe99   :  { %1879 = vadd.xlane.f32.xlu1 %v1877_v49  ;;  %v2035_v29 = vld [vmem:[#allocation19 + $0xd0] sm:$0xff]  ;;  %2050 = vmatpush.msra.mxu2 %v2019_v35  ;;  %v2018_v49 = vld [vmem:[#allocation19 + $0x48] sm:$0xff] }
 0xe9a   :  { %v1859_v19 = vadd.f32 %v4231_v5, %v1853_v51  ;;  %v2034_v51 = vld [vmem:[#allocation19 + $0xc8] sm:$0xff] }
 0xe9b   :  { %2051 = vmatpush.msra.mxu2 %v2018_v49 }
 0xe9c   :  { %v5440_v36 = vadd.f32 %v1859_v19, %v5192_v59  ;;  %v1939_v59 = vld [vmem:[#allocation17 + $0x90] sm:$0xff]  ;;  %v2017_v19 = vld [vmem:[#allocation19 + $0x40] sm:$0xff] }
 0xe9d   :  { %1965 = vmatpush.msra.mxu1 %v1939_v59  ;;  %2052 = vmatpush.msra.mxu2 %v2017_v19  ;;  %v2012_v59 = vld [vmem:[#allocation19 + $0x18] sm:$0xff] }
 0xe9e   :  { %1864 = vadd.xlane.f32.xlu2 %v5440_v36 }
 0xe9f   :  { %1966 = vmatpush.msra.mxu1 %v1937_v42  ;;  %2053 = vmatpush.msra.mxu2 %v2016_v12  ;;  %v2011_v42 = vld [vmem:[#allocation19 + $0x10] sm:$0xff] }
 0xea1   :  { %1967 = vmatpush.msra.mxu1 %v1935_v44  ;;  %2054 = vmatpush.msra.mxu2 %v2015_v26  ;;  %v2010_v44 = vld [vmem:[#allocation19 + $0x8] sm:$0xff]  ;;  %v2184_v26 = vld [vmem:[#allocation22 + $0x138] sm:$0xff] }
 0xea3   :  { %1968 = vmatpush.msra.mxu1 %v1933_v47  ;;  %2055 = vmatpush.msra.mxu2 %v2014_v39  ;;  %v2009_v47 = vld [vmem:[#allocation19] sm:$0xff]  ;;  %v2186_v39 = vld [vmem:[#allocation22 + $0x148] sm:$0xff] }
 0xea5   :  { %1969 = vmatpush.msra.mxu1 %v1931_v52  ;;  %2056 = vmatpush.msra.mxu2 %v2013_v1  ;;  %v2182_v1 = vld [vmem:[#allocation22 + $0x128] sm:$0xff] }
 0xea7   :  { %1970 = vmatpush.msra.mxu1 %v1929_v53  ;;  %2057 = vmatpush.msra.mxu2 %v2012_v59  ;;  %v2178_v59 = vld [vmem:[#allocation22 + $0x108] sm:$0xff] }
 0xea9   :  { %1971 = vmatpush.msra.mxu1 %v1927_v55  ;;  %2058 = vmatpush.msra.mxu2 %v2011_v42  ;;  %v2180_v42 = vld [vmem:[#allocation22 + $0x118] sm:$0xff] }
 0xeab   :  { %1972 = vmatpush.msra.mxu1 %v1925_v10  ;;  %2059 = vmatpush.msra.mxu2 %v2010_v44  ;;  %v2176_v44 = vld [vmem:[#allocation22 + $0xf8] sm:$0xff] }
 0xead   :  { %1973 = vmatpush.msra.mxu1 %v1923_v60  ;;  %2060 = vmatpush.msra.mxu2 %v2009_v47  ;;  %v2172_v47 = vld [vmem:[#allocation22 + $0xd8] sm:$0xff] }
 0xeaf   :  { %1974 = vmatpush.msra.mxu1 %v1921_v61  ;;  %2247 = vmatpush.msrb.mxu2 %v2192_v31 }
 0xeb1   :  { %2201 = vmatpush.msrb.mxu1 %v2190_v28 }
 0xeb3   :  { %2202 = vmatpush.msrb.mxu1 %v2187_v32 }
 0xeb5   :  { %2203 = vmatpush.msrb.mxu1 %v2184_v26 }
 0xf0c   :  { %v1880_v63 = vpop.xlane.xlu1 %1879 }
 0xf0d   :  { %v1883_v0 = vmul.f32 %v1880_v63, %v5430_v25  ;;  %v1955_v63 = vperm.slane %v1953_v11, 0 }
 0xf0f   :  { %v1885_v2 = vadd.f32 1e-05, %v1883_v0  ;;  %v1956_v0 = vperm.slane %v1953_v11, 1  ;;  %v2165_v11 = vld [vmem:[#allocation22 + $0xa0] sm:$0xff] }
 0xf11   :  { %4309 = vrsqrt.f32 %v1885_v2  ;;  %v1865_v7 = vpop.xlane.xlu2 %1864  ;;  %vm1893_vm4 = vweird.f32 %v1885_v2 }
 0xf12   :  { %v1874_v4 = vmul.f32 %v5430_v25, %v1865_v7 }
 0xf14   :  { %v5446_v5 = vsub.f32 %v5440_v36, %v1874_v4  ;;  %v2033_v36 = vld [vmem:[#allocation19 + $0xc0] sm:$0xff] }
 0xf16   :  { %v1878_v9 = vmul.f32 %v5446_v5, %v5446_v5 }
 0xf17   :  { %v4310_v13 = vpop.eup %4309 }
 0xf18   :  { %v1888_v14 = vmul.f32 %v4310_v13, %v1885_v2  ;;  %1881 = vadd.xlane.f32.xlu0 %v1878_v9  ;;  %vm1894_vm3 = vweird.f32 %v4310_v13 }
 0xf19   :  { %vm1895_vm5 = vmor %vm1893_vm4, %vm1894_vm3 }
 0xf1a   :  { %v1889_v15 = vmul.f32 %v4310_v13, %v1888_v14 }
 0xf1c   :  { %v1890_v27 = vmul.f32 0.5, %v1889_v15 }
 0xf1e   :  { %v1891_v46 = vsub.f32 1.5, %v1890_v27 }
 0xf20   :  { %v1892_v50 = vmul.f32 %v4310_v13, %v1891_v46 }
 0xf22   :  { %v1896_v6 = vsel %vm1895_vm5, %v4310_v13, %v1892_v50 }
 0xf23   :  { %v1907_v17 = vmul.f32 %v1896_v6, %v5435_v34  ;;  %v2036_v34 = vld [vmem:[#allocation19 + $0xd8] sm:$0xff] }
 0xf24   :  { %2072 = vmatpush.msra.mxu3 %v2036_v34  ;;  %v2189_v34 = vld [vmem:[#allocation22 + $0x160] sm:$0xff] }
 0xf25   :  { %v1913_v20 = vmul.f32 %v5450_v16, %v1907_v17  ;;  %2248 = vmatpush.msrb.mxu2 %v2189_v34 }
 0xf26   :  { %2073 = vmatpush.msra.mxu3 %v2035_v29 }
 0xf27   :  { %v5457_v21 = vadd.f32 %v5453_v18, %v1913_v20  ;;  %2249 = vmatpush.msrb.mxu2 %v2186_v39 }
 0xf28   :  { %2074 = vmatpush.msra.mxu3 %v2034_v51 }
 0xf29   :  { %1975 = vmatmul.f32.vlgmr.msra.gmra.mxu1 %v5457_v21  ;;  %1998 = vmatmul.f32.vlgmr.msra.gmra.mxu0 %v5457_v21 }
 0xf2a   :  { %2075 = vmatpush.msra.mxu3 %v2033_v36 }
 0xf2c   :  { %2076 = vmatpush.msra.mxu3 %v2032_v37 }
 0xf2e   :  { %2077 = vmatpush.msra.mxu3 %v2031_v38  ;;  %v2185_v38 = vld [vmem:[#allocation22 + $0x140] sm:$0xff] }
 0xf2f   :  { %2226 = vmatpush.msrb.mxu0 %v2185_v38 }
 0xf30   :  { %2078 = vmatpush.msra.mxu3 %v2030_v40  ;;  %v2181_v40 = vld [vmem:[#allocation22 + $0x120] sm:$0xff] }
 0xf31   :  { %2204 = vmatpush.msrb.mxu1 %v2181_v40  ;;  %2227 = vmatpush.msrb.mxu0 %v2182_v1 }
 0xf32   :  { %2079 = vmatpush.msra.mxu3 %v2029_v3  ;;  %v2183_v3 = vld [vmem:[#allocation22 + $0x130] sm:$0xff] }
 0xf33   :  { %2250 = vmatpush.msrb.mxu2 %v2183_v3  ;;  %2205 = vmatpush.msrb.mxu1 %v2178_v59 }
 0xf34   :  { %2080 = vmatpush.msra.mxu3 %v2028_v41  ;;  %v2179_v41 = vld [vmem:[#allocation22 + $0x110] sm:$0xff] }
 0xf35   :  { %2228 = vmatpush.msrb.mxu0 %v2179_v41  ;;  %2251 = vmatpush.msrb.mxu2 %v2180_v42  ;;  %v2193_v41 = vld [vmem:[%s5786_s19] sm:$0x7] }
 0xf36   :  { %2081 = vmatpush.msra.mxu3 %v2027_v43  ;;  %v2175_v43 = vld [vmem:[#allocation22 + $0xf0] sm:$0xff] }
 0xf37   :  { %2206 = vmatpush.msrb.mxu1 %v2175_v43  ;;  %2229 = vmatpush.msrb.mxu0 %v2176_v44  ;;  %v2196_v44 = vperm.slane %v2193_v41, 1 }
 0xf38   :  { %2082 = vmatpush.msra.mxu3 %v2026_v45  ;;  %v2177_v45 = vld [vmem:[#allocation22 + $0x100] sm:$0xff] }
 0xf39   :  { %2252 = vmatpush.msrb.mxu2 %v2177_v45  ;;  %2207 = vmatpush.msrb.mxu1 %v2172_v47  ;;  %v2195_v47 = vperm.slane %v2193_v41, 0 }
 0xf3a   :  { %2083 = vmatpush.msra.mxu3 %v2025_v48  ;;  %v2173_v48 = vld [vmem:[#allocation22 + $0xe0] sm:$0xff] }
 0xf3b   :  { %2230 = vmatpush.msrb.mxu0 %v2173_v48 }
 0xf8b   :  { %v1882_v52 = vpop.xlane.xlu0 %1881 }
 0xf8c   :  { %v1884_v8 = vmul.f32 %v1882_v52, %v5430_v25  ;;  %v2174_v52 = vld [vmem:[#allocation22 + $0xe8] sm:$0xff] }
 0xf8d   :  { %2253 = vmatpush.msrb.mxu2 %v2174_v52 }
 0xf8e   :  { %v1886_v53 = vadd.f32 1e-05, %v1884_v8  ;;  %v2169_v8 = vld [vmem:[#allocation22 + $0xc0] sm:$0xff] }
 0xf8f   :  { %2208 = vmatpush.msrb.mxu1 %v2169_v8 }
 0xf90   :  { %4311 = vrsqrt.f32 %v1886_v53  ;;  %vm1903_vm7 = vweird.f32 %v1886_v53 }
 0xf96   :  { %v4312_v54 = vpop.eup %4311 }
 0xf97   :  { %v1898_v55 = vmul.f32 %v4312_v54, %v1886_v53  ;;  %vm1904_vm6 = vweird.f32 %v4312_v54  ;;  %v2170_v53 = vld [vmem:[#allocation22 + $0xc8] sm:$0xff] }
 0xf98   :  { %vm1905_vm8 = vmor %vm1903_vm7, %vm1904_vm6  ;;  %2231 = vmatpush.msrb.mxu0 %v2170_v53 }
 0xf99   :  { %v1899_v57 = vmul.f32 %v4312_v54, %v1898_v55  ;;  %v2166_v55 = vld [vmem:[#allocation22 + $0xa8] sm:$0xff] }
 0xf9a   :  { %2209 = vmatpush.msrb.mxu1 %v2166_v55  ;;  %v2197_v55 = vperm.slane %v2193_v41, 2 }
 0xf9b   :  { %v1900_v10 = vmul.f32 0.5, %v1899_v57  ;;  %v2167_v57 = vld [vmem:[#allocation22 + $0xb0] sm:$0xff] }
 0xf9c   :  { %2232 = vmatpush.msrb.mxu0 %v2167_v57 }
 0xf9d   :  { %v1901_v58 = vsub.f32 1.5, %v1900_v10  ;;  %v2168_v10 = vld [vmem:[#allocation22 + $0xb8] sm:$0xff] }
 0xf9f   :  { %v1902_v60 = vmul.f32 %v4312_v54, %v1901_v58  ;;  %v2163_v58 = vld [vmem:[#allocation22 + $0x90] sm:$0xff] }
 0xfa0   :  { %2210 = vmatpush.msrb.mxu1 %v2163_v58 }
 0xfa1   :  { %v1906_v61 = vsel %vm1905_vm8, %v4312_v54, %v1902_v60  ;;  %v2171_v54 = vld [vmem:[#allocation22 + $0xd0] sm:$0xff]  ;;  %v2164_v60 = vld [vmem:[#allocation22 + $0x98] sm:$0xff] }
 0xfa2   :  { %v1908_v62 = vmul.f32 %v1906_v61, %v5446_v5  ;;  %2254 = vmatpush.msrb.mxu2 %v2171_v54  ;;  %2233 = vmatpush.msrb.mxu0 %v2164_v60  ;;  %v2160_v61 = vld [vmem:[#allocation22 + $0x78] sm:$0xff] }
 0xfa3   :  { %2211 = vmatpush.msrb.mxu1 %v2160_v61 }
 0xfa4   :  { %v1914_v2 = vmul.f32 %v5450_v16, %v1908_v62  ;;  %v4234_v16 = vld [vmem:[#allocation20] ss:$0 sm:$0xff]  ;;  %2255 = vmatpush.msrb.mxu2 %v2168_v10  ;;  %v2161_v62 = vld [vmem:[#allocation22 + $0x80] sm:$0xff] }
 0xfa5   :  { %2234 = vmatpush.msrb.mxu0 %v2161_v62 }
 0xfa6   :  { %v1976_v7 = vpop.f32.mrf.mxu1  ;;  %v1999_v4 = vpop.f32.mrf.mxu0  ;;  %v1920_v9 = vadd.f32 %v5453_v18, %v1914_v2  ;;  %2256 = vmatpush.msrb.mxu2 %v2165_v11  ;;  %v2158_v2 = vld [vmem:[#allocation22 + $0x68] sm:$0xff] }
 0xfa7   :  { %v1977_v13 = vadd.f32 %v1976_v7, %v1955_v63  ;;  %v2000_v14 = vadd.f32 %v1999_v4, %v1956_v0  ;;  %v2159_v7 = vld [vmem:[#allocation22 + $0x70] sm:$0xff]  ;;  %2235 = vmatpush.msrb.mxu0 %v2158_v2  ;;  %v2154_v4 = vld [vmem:[#allocation22 + $0x48] sm:$0xff] }
 0xfa8   :  { %1978 = vmatmul.f32.gmra.mxu1 %v1920_v9  ;;  %2001 = vmatmul.f32.gmra.mxu0 %v1920_v9 }
 0xfa9   :  { %v2005_v15 = vmax.f32 %v1977_v13, 0.0  ;;  %v2006_v27 = vmax.f32 %v2000_v14, 0.0  ;;  %v2156_v13 = vld [vmem:[#allocation22 + $0x58] sm:$0xff]  ;;  %v2151_v14 = vld [vmem:[#allocation22 + $0x30] sm:$0xff] }
 0xfab   :  { %2061 = vmatmul.f32.vlgmr.msra.gmra.mxu2 %v2005_v15  ;;  %2084 = vmatmul.f32.vlgmr.msra.gmra.mxu3 %v2006_v27  ;;  %v2152_v15 = vld [vmem:[#allocation22 + $0x38] sm:$0xff]  ;;  %v2153_v27 = vld [vmem:[#allocation22 + $0x40] sm:$0xff] }
0x1025   :  { %v1979_v46 = vpop.f32.mrf.mxu1  ;;  %v2002_v50 = vpop.f32.mrf.mxu0 }
0x1026   :  { %v1980_v6 = vadd.f32 %v1979_v46, %v1955_v63  ;;  %v2003_v5 = vadd.f32 %v2002_v50, %v1956_v0  ;;  %v2162_v63 = vld [vmem:[#allocation22 + $0x88] sm:$0xff]  ;;  %v2157_v0 = vld [vmem:[#allocation22 + $0x60] sm:$0xff]  ;;  %v2148_v46 = vld [vmem:[#allocation22 + $0x18] sm:$0xff] }
0x1027   :  { %2257 = vmatpush.msrb.mxu2 %v2162_v63  ;;  %2212 = vmatpush.msrb.mxu1 %v2157_v0  ;;  %v2149_v50 = vld [vmem:[#allocation22 + $0x20] sm:$0xff] }
0x1028   :  { %v2007_v17 = vmax.f32 %v1980_v6, 0.0  ;;  %v2008_v20 = vmax.f32 %v2003_v5, 0.0  ;;  %v2150_v6 = vld [vmem:[#allocation22 + $0x28] sm:$0xff]  ;;  %v2145_v5 = vld [vmem:[#allocation22] sm:$0xff] }
0x1029   :  { %2258 = vmatpush.msrb.mxu2 %v2159_v7  ;;  %2213 = vmatpush.msrb.mxu1 %v2154_v4 }
0x102a   :  { %2064 = vmatmul.f32.gmra.mxu2 %v2007_v17  ;;  %2087 = vmatmul.f32.gmra.mxu3 %v2008_v20  ;;  %v2146_v17 = vld [vmem:[#allocation22 + $0x8] sm:$0xff]  ;;  %v2147_v20 = vld [vmem:[#allocation22 + $0x10] sm:$0xff] }
0x102b   :  { %2259 = vmatpush.msrb.mxu2 %v2156_v13  ;;  %2214 = vmatpush.msrb.mxu1 %v2151_v14 }
0x102d   :  { %2260 = vmatpush.msrb.mxu2 %v2153_v27  ;;  %2215 = vmatpush.msrb.mxu1 %v2148_v46 }
0x102e   :  { %v2062_v22 = vpop.f32.mrf.mxu2  ;;  %v2085_v18 = vpop.f32.mrf.mxu3 }
0x102f   :  { %v2063_v23 = vadd.f32 %v4234_v16, %v2062_v22  ;;  %2261 = vmatpush.msrb.mxu2 %v2150_v6  ;;  %2216 = vmatpush.msrb.mxu1 %v2145_v5 }
0x1031   :  { %v2086_v56 = vadd.f32 %v2085_v18, %v2063_v23  ;;  %2262 = vmatpush.msrb.mxu2 %v2147_v20 }
0x1033   :  { %v2091_v24 = vadd.f32 %v2086_v56, %v5457_v21 }
0x1035   :  { %2093 = vadd.xlane.f32.xlu1 %v2091_v24 }
0x10a8   :  { %v2094_v35 = vpop.xlane.xlu1 %2093 }
0x10a9   :  { %v2097_v29 = vmul.f32 %v2094_v35, %v5430_v25 }
0x10ab   :  { %v5468_v49 = vsub.f32 %v2091_v24, %v2097_v29  ;;  %v4235_v29 = vld [vmem:[%s5784_s14] ss:$0 sm:$0xff] }
0x10ad   :  { %v2065_v51 = vpop.f32.mrf.mxu2  ;;  %v2101_v21 = vmul.f32 %v5468_v49, %v5468_v49  ;;  %v2088_v36 = vpop.f32.mrf.mxu3 }
0x10ae   :  { %v2066_v19 = vadd.f32 %v4234_v16, %v2065_v51 }
0x10af   :  { %2103 = vadd.xlane.f32.xlu0 %v2101_v21 }
0x10b0   :  { %v2089_v12 = vadd.f32 %v2088_v36, %v2066_v19  ;;  %v4236_v19 = vld [vmem:[%s5785_s17] ss:$0 sm:$0xff] }
0x10b2   :  { %v5472_v37 = vadd.f32 %v2089_v12, %v1920_v9  ;;  %v2155_v9 = vld [vmem:[#allocation22 + $0x50] sm:$0xff] }
0x10b3   :  { %2236 = vmatpush.msrb.mxu0 %v2155_v9 }
0x10b4   :  { %2095 = vadd.xlane.f32.xlu1 %v5472_v37 }
0x10b5   :  { %2237 = vmatpush.msrb.mxu0 %v2152_v15 }
0x10b7   :  { %2238 = vmatpush.msrb.mxu0 %v2149_v50 }
0x10b9   :  { %2239 = vmatpush.msrb.mxu0 %v2146_v17 }
0x1122   :  { %v2104_v16 = vpop.xlane.xlu0 %2103 }
0x1123   :  { %v2107_v22 = vmul.f32 %v2104_v16, %v5430_v25 }
0x1125   :  { %v2109_v23 = vadd.f32 1e-05, %v2107_v22 }
0x1127   :  { %4313 = vrsqrt.f32 %v2109_v23  ;;  %v2096_v18 = vpop.xlane.xlu1 %2095  ;;  %vm2117_vm10 = vweird.f32 %v2109_v23 }
0x1128   :  { %v2098_v56 = vmul.f32 %v2096_v18, %v5430_v25 }
0x112a   :  { %v2100_v24 = vsub.f32 %v5472_v37, %v2098_v56 }
0x112c   :  { %v2102_v28 = vmul.f32 %v2100_v24, %v2100_v24 }
0x112d   :  { %v4314_v30 = vpop.eup %4313 }
0x112e   :  { %v2112_v31 = vmul.f32 %v4314_v30, %v2109_v23  ;;  %2105 = vadd.xlane.f32.xlu0 %v2102_v28  ;;  %vm2118_vm9 = vweird.f32 %v4314_v30 }
0x112f   :  { %vm2119_vm11 = vmor %vm2117_vm10, %vm2118_vm9 }
0x1130   :  { %v2113_v32 = vmul.f32 %v4314_v30, %v2112_v31 }
0x1132   :  { %v2114_v33 = vmul.f32 0.5, %v2113_v32 }
0x1134   :  { %v2115_v34 = vsub.f32 1.5, %v2114_v33 }
0x1136   :  { %v2116_v35 = vmul.f32 %v4314_v30, %v2115_v34  ;;  %v2271_v34 = vld [vmem:[#allocation23 + $0x8] sm:$0xff] }
0x1138   :  { %v2120_v51 = vsel %vm2119_vm11, %v4314_v30, %v2116_v35  ;;  %v2270_v35 = vld [vmem:[#allocation23] sm:$0xff] }
0x1139   :  { %v2131_v21 = vmul.f32 %v2120_v51, %v5468_v49 }
0x113b   :  { %v2137_v36 = vmul.f32 %v4235_v29, %v2131_v21 }
0x113d   :  { %v5481_v12 = vadd.f32 %v4236_v19, %v2137_v36 }
0x113f   :  { %2217 = vmatmul.f32.vlgmr.msrb.gmra.mxu1 %v5481_v12  ;;  %2240 = vmatmul.f32.vlgmr.msrb.gmra.mxu0 %v5481_v12 }
0x1140   :  { %2263 = vmatmul.f32.vlgmr.msrb.gmra.mxu2 %v5481_v12 }
0x11a1   :  { %v2106_v37 = vpop.xlane.xlu0 %2105 }
0x11a2   :  { %v2108_v26 = vmul.f32 %v2106_v37, %v5430_v25 }
0x11a4   :  { %v2110_v38 = vadd.f32 1e-05, %v2108_v26 }
0x11a6   :  { %4315 = vrsqrt.f32 %v2110_v38  ;;  %vm2127_vm13 = vweird.f32 %v2110_v38 }
0x11ac   :  { %v4316_v39 = vpop.eup %4315 }
0x11ad   :  { %v2122_v40 = vmul.f32 %v4316_v39, %v2110_v38  ;;  %vm2128_vm12 = vweird.f32 %v4316_v39 }
0x11ae   :  { %vm2129_vm14 = vmor %vm2127_vm13, %vm2128_vm12  ;;  %vm3923_vm12 = vcmask 1041409   ;;  %vm3969_vm13 = vcmask 1041408  }
0x11af   :  { %v2123_v1 = vmul.f32 %v4316_v39, %v2122_v40 }
0x11b1   :  { %v2124_v49 = vmul.f32 0.5, %v2123_v1 }
0x11b3   :  { %v2125_v3 = vsub.f32 1.5, %v2124_v49 }
0x11b5   :  { %v2126_v59 = vmul.f32 %v4316_v39, %v2125_v3 }
0x11b7   :  { %v2130_v42 = vsel %vm2129_vm14, %v4316_v39, %v2126_v59 }
0x11b8   :  { %v2132_v43 = vmul.f32 %v2130_v42, %v2100_v24 }
0x11ba   :  { %v2138_v45 = vmul.f32 %v4235_v29, %v2132_v43 }
0x11bc   :  { %v2241_v48 = vpop.f32.mrf.mxu0  ;;  %v5488_v52 = vadd.f32 %v4236_v19, %v2138_v45  ;;  %v2218_v8 = vpop.f32.mrf.mxu1 }
0x11bd   :  { %v5490_v53 = vadd.f32 %v2241_v48, %v2196_v44  ;;  %v5497_v54 = vadd.f32 %v2218_v8, %v2195_v47 }
0x11be   :  { %2220 = vmatmul.f32.gmra.mxu1 %v5488_v52  ;;  %2243 = vmatmul.f32.gmra.mxu0 %v5488_v52 }
0x11bf   :  { %2266 = vmatmul.f32.gmra.mxu2 %v5488_v52  ;;  %4094 = vmatpush.xpose.msk.msrb.mxu3 %vm387_vm0, %v5490_v53 }
0x11c2   :  { %4095 = vmatmul.msk.f32.vlgmr.msrb.gmra.mxu3 %vm387_vm0, %v5497_v54 }
0x11c3   :  { %v2264_v57 = vpop.f32.mrf.mxu2 }
0x11c4   :  { %v5503_v11 = vadd.f32 %v2264_v57, %v2197_v55 }
0x123b   :  { %v2244_v10 = vpop.f32.mrf.mxu0  ;;  %v2221_v58 = vpop.f32.mrf.mxu1 }
0x123c   :  { %v5501_v60 = vadd.f32 %v2244_v10, %v2196_v44  ;;  %v5509_v61 = vadd.f32 %v2221_v58, %v2195_v47 }
0x123e   :  { %2438 = vrot.lane.b32.xlu0 %v5501_v60, %s4896_s8  ;;  %4096 = vmatpush.xpose.msk.msra.mxu3 %vm387_vm0, %v5501_v60 }
0x1241   :  { %4097 = vmatmul.msk.f32.vlgmr.msra.gmra.mxu3 %vm387_vm0, %v5509_v61 }
0x1242   :  { %2380 = vmatpush.msrb.mxu3 %v5503_v11  ;;  %v2267_v62 = vpop.f32.mrf.mxu2 }
0x1243   :  { %v5514_v63 = vadd.f32 %v2267_v62, %v2197_v55 }
0x1245   :  { %2403 = vmatpush.msra.mxu1 %v5514_v63  ;;  %v2309_v0 = vpop.f32.mrf.mxu3 }
0x1246   :  { %v2338_v2 = vmul.f32 0.25, %v2309_v0  ;;  %2408 = vrot.lane.b32.xlu0 %v5497_v54, %s4896_s8 }
0x1248   :  { %v2340_v7 = vsel %vm615_vm1, %v2338_v2, -inf }
0x1249   :  { %2341 = vmax.xlane.f32.xlu1 %v2340_v7 }
0x1262   :  { %2436 = vrot.lane.b32.xlu1 %v5509_v61, %s4896_s8 }
0x12b0   :  { %v2439_v4 = vpop.permute.xlu0 %2438 }
0x12b1   :  { %4102 = vmatpush.xpose.msk.msra.mxu0 %vm387_vm0, %v2439_v4 }
0x12b5   :  { %2591 = vmatpush.msrb.mxu0 %v2271_v34 }
0x12b7   :  { %2592 = vmatpush.msrb.mxu0 %v2270_v35 }
0x12b8   :  { %v2409_v17 = vpop.permute.xlu0 %2408 }
0x12bc   :  { %v2342_v9 = vpop.xlane.xlu1 %2341 }
0x12bd   :  { %v2346_v13 = vsub.f32 %v2338_v2, %v2342_v9 }
0x12bf   :  { %v2348_v14 = vmul.f32 1.442695, %v2346_v13 }
0x12c1   :  { %4317 = vpow2.f32 %v2348_v14 }
0x12c4   :  { %v2335_v15 = vpop.f32.mrf.mxu3 }
0x12c5   :  { %v2339_v27 = vmul.f32 0.25, %v2335_v15 }
0x12c7   :  { %v4318_v46 = vpop.eup %4317  ;;  %v2343_v50 = vsel %vm615_vm1, %v2339_v27, -inf }
0x12c8   :  { %2344 = vmax.xlane.f32.xlu0 %v2343_v50  ;;  %v2352_v6 = vsel %vm615_vm1, %v4318_v46, 0.0 }
0x12c9   :  { %2353 = vadd.xlane.f32.xlu2 %v2352_v6 }
0x12d4   :  { %v2437_v5 = vpop.permute.xlu1 %2436 }
0x12d5   :  { %4103 = vmatmul.msk.f32.vlgmr.msra.gmra.mxu0 %vm387_vm0, %v2437_v5 }
0x12e1   :  { %2410 = vrot.lane.b32.xlu2 %v5490_v53, %s4896_s8 }
0x133b   :  { %v2345_v20 = vpop.xlane.xlu0 %2344 }
0x133c   :  { %v2347_v16 = vsub.f32 %v2339_v27, %v2345_v20  ;;  %v2354_v22 = vpop.xlane.xlu2 %2353  ;;  %v2273_v27 = vld [vmem:[#allocation23 + $0x18] sm:$0xff] }
0x133d   :  { %4319 = vrcp.f32 %v2354_v22  ;;  %v2272_v22 = vld [vmem:[#allocation23 + $0x10] sm:$0xff] }
0x133e   :  { %v2350_v23 = vmul.f32 1.442695, %v2347_v16  ;;  %v4225_v16 = vpack.i.bf16 %v5503_v11, %v5514_v63 }
0x1340   :  { %4321 = vpow2.f32 %v2350_v23 }
0x1343   :  { %v4320_v18 = vpop.eup %4319 }
0x1344   :  { %v2360_v56 = vmul.f32 %v4320_v18, %v4318_v46  ;;  %v2411_v24 = vpop.permute.xlu2 %2410 }
0x1345   :  { %4100 = vmatpush.xpose.msk.msra.mxu3 %vm387_vm0, %v2411_v24 }
0x1346   :  { %v4322_v28 = vpop.eup %4321  ;;  %4098 = vmatmul.msk.f32.vlgmr.msrb.gmra.mxu3 %vm615_vm1, %v2360_v56 }
0x1347   :  { %v2355_v30 = vsel %vm615_vm1, %v4322_v28, 0.0 }
0x1348   :  { %2356 = vadd.xlane.f32.xlu1 %v2355_v30 }
0x1349   :  { %2562 = vmatpush.msrb.mxu3 %v2273_v27 }
0x134b   :  { %2563 = vmatpush.msrb.mxu3 %v2272_v22 }
0x134e   :  { %4101 = vmatmul.msk.f32.vlgmr.msra.gmra.mxu3 %vm387_vm0, %v2409_v17 }
0x1352   :  { %v2461_v31 = vpop.f32.mrf.mxu0 }
0x1353   :  { %v2465_v32 = vmul.f32 0.25, %v2461_v31 }
0x1355   :  { %v2469_v33 = vsel %vm615_vm1, %v2465_v32, -inf }
0x1356   :  { %2470 = vmax.xlane.f32.xlu2 %v2469_v33 }
0x1361   :  { %2630 = vrot.lane.b32.xlu1 %v5501_v60, %s4897_s3 }
0x136e   :  { %2516 = vrot.lane.b32.xlu2 %v5514_v63, %s4896_s8 }
0x1376   :  { %2489 = vrot.lane.b32.xlu2 %v5503_v11, %s4896_s8 }
0x137e   :  { %2602 = vrot.lane.b32.xlu2 %v5490_v53, %s4897_s3 }
0x1386   :  { %2763 = vrot.lane.b32.xlu2 %v5497_v54, %s4898_s18 }
0x13bb   :  { %v2357_v29 = vpop.xlane.xlu1 %2356 }
0x13bc   :  { %4323 = vrcp.f32 %v2357_v29 }
0x13c2   :  { %v4324_v51 = vpop.eup %4323 }
0x13c3   :  { %v2361_v21 = vmul.f32 %v4324_v51, %v4322_v28 }
0x13c5   :  { %4099 = vmatmul.msk.f32.vlgmr.msra.gmra.mxu1 %vm615_vm1, %v2361_v21 }
0x13c9   :  { %v2471_v19 = vpop.xlane.xlu2 %2470  ;;  %v2382_v36 = vpop.f32.mrf.mxu3 }
0x13ca   :  { %v2473_v37 = vsub.f32 %v2465_v32, %v2471_v19  ;;  %4108 = vmatmul.msk.f32.vlgmr.msrb.gmra.mxu0 %vm387_vm0, %v2382_v36 }
0x13cc   :  { %v2476_v26 = vmul.f32 1.442695, %v2473_v37 }
0x13ce   :  { %4325 = vpow2.f32 %v2476_v26  ;;  %v2275_v26 = vld [vmem:[#allocation23 + $0x28] sm:$0xff] }
0x13cf   :  { %2752 = vmatpush.msra.mxu3 %v2275_v26 }
0x13d1   :  { %v2517_v38 = vpop.permute.xlu2 %2516  ;;  %v2433_v39 = vpop.f32.mrf.mxu3 }
0x13d2   :  { %v2464_v40 = vmul.f32 0.25, %v2433_v39  ;;  %2537 = vmatpush.msra.mxu2 %v2517_v38  ;;  %v2274_v38 = vld [vmem:[#allocation23 + $0x20] sm:$0xff] }
0x13d3   :  { %v2631_v1 = vpop.permute.xlu1 %2630  ;;  %2753 = vmatpush.msra.mxu3 %v2274_v38 }
0x13d4   :  { %v4326_v49 = vpop.eup %4325  ;;  %4112 = vmatpush.xpose.msk.msrb.mxu2 %vm387_vm0, %v2631_v1  ;;  %v2466_v3 = vsel %vm615_vm1, %v2464_v40, -inf }
0x13d5   :  { %2467 = vmax.xlane.f32.xlu0 %v2466_v3  ;;  %v2481_v59 = vsel %vm615_vm1, %v4326_v49, 0.0 }
0x13d6   :  { %2482 = vadd.xlane.f32.xlu1 %v2481_v59 }
0x13d9   :  { %v2490_v41 = vpop.permute.xlu2 %2489 }
0x13da   :  { %2510 = vmatpush.msrb.mxu1 %v2490_v41 }
0x13e1   :  { %v2603_v42 = vpop.permute.xlu2 %2602 }
0x13e2   :  { %4110 = vmatpush.xpose.msk.msra.mxu1 %vm387_vm0, %v2603_v42 }
0x13e9   :  { %2628 = vrot.lane.b32.xlu0 %v5509_v61, %s4897_s3  ;;  %v2764_v0 = vpop.permute.xlu2 %2763 }
0x13ef   :  { %2765 = vrot.lane.b32.xlu1 %v5490_v53, %s4898_s18 }
0x1442   :  { %v2405_v43 = vpop.f32.mrf.mxu1 }
0x1443   :  { %4109 = vmatmul.msk.f32.gmra.mxu0 %vm387_vm0, %v2405_v43 }
0x1447   :  { %v5561_v9 = vpop.f32.mrf.mxu0 }
0x1448   :  { %v2468_v44 = vpop.xlane.xlu0 %2467 }
0x1449   :  { %v2472_v45 = vsub.f32 %v2464_v40, %v2468_v44  ;;  %v2483_v47 = vpop.xlane.xlu1 %2482 }
0x144a   :  { %4327 = vrcp.f32 %v2483_v47 }
0x144b   :  { %v2474_v48 = vmul.f32 1.442695, %v2472_v45 }
0x144d   :  { %4329 = vpow2.f32 %v2474_v48 }
0x1450   :  { %v4328_v8 = vpop.eup %4327 }
0x1451   :  { %v2487_v55 = vmul.f32 %v4328_v8, %v4326_v49 }
0x1453   :  { %v4330_v57 = vpop.eup %4329  ;;  %4105 = vmatmul.msk.f32.vlgmr.msra.gmra.mxu2 %vm615_vm1, %v2487_v55 }
0x1454   :  { %v2478_v10 = vsel %vm615_vm1, %v4330_v57, 0.0 }
0x1455   :  { %2479 = vadd.xlane.f32.xlu0 %v2478_v10 }
0x145b   :  { %v2629_v58 = vpop.permute.xlu0 %2628 }
0x145c   :  { %4113 = vmatmul.msk.f32.vlgmr.msrb.gmra.mxu2 %vm387_vm0, %v2629_v58 }
0x1461   :  { %v2766_v62 = vpop.permute.xlu1 %2765 }
0x1462   :  { %4118 = vmatpush.xpose.msk.msra.mxu0 %vm387_vm0, %v2766_v62  ;;  %v2277_v62 = vld [vmem:[#allocation23 + $0x38] sm:$0xff] }
0x1465   :  { %4119 = vmatmul.msk.f32.vlgmr.msra.gmra.mxu0 %vm387_vm0, %v2764_v0  ;;  %v2276_v0 = vld [vmem:[#allocation23 + $0x30] sm:$0xff] }
0x1469   :  { %2600 = vrot.lane.b32.xlu0 %v5497_v54, %s4897_s3 }
0x14c0   :  { %v5564_v14 = vpop.f32.mrf.mxu0 }
0x14c8   :  { %v2480_v2 = vpop.xlane.xlu0 %2479 }
0x14c9   :  { %4331 = vrcp.f32 %v2480_v2 }
0x14cf   :  { %v4332_v7 = vpop.eup %4331 }
0x14d0   :  { %v2486_v4 = vmul.f32 %v4332_v7, %v4330_v57 }
0x14d2   :  { %4104 = vmatmul.msk.f32.vlgmr.msrb.gmra.mxu1 %vm615_vm1, %v2486_v4 }
0x14d6   :  { %v2539_v13 = vpop.f32.mrf.mxu2 }
0x14db   :  { %v2601_v15 = vpop.permute.xlu0 %2600 }
0x14dc   :  { %4111 = vmatmul.msk.f32.vlgmr.msra.gmra.mxu1 %vm387_vm0, %v2601_v15 }
0x14df   :  { %v2653_v46 = vpop.f32.mrf.mxu2 }
0x14e0   :  { %v2657_v50 = vmul.f32 0.25, %v2653_v46 }
0x14e2   :  { %v2788_v6 = vpop.f32.mrf.mxu0  ;;  %v2661_v5 = vsel %vm615_vm1, %v2657_v50, -inf }
0x14e3   :  { %v2819_v17 = vmul.f32 0.25, %v2788_v6  ;;  %2662 = vmax.xlane.f32.xlu1 %v2661_v5 }
0x14e5   :  { %v2821_v20 = vsel %vm615_vm1, %v2819_v17, -inf }
0x14e6   :  { %2822 = vmax.xlane.f32.xlu2 %v2821_v20 }
0x14fc   :  { %4226 = vrot.lane.b32.xlu1 %v4225_v16, %s4897_s3 }
0x154f   :  { %v2512_v23 = vpop.f32.mrf.mxu1 }
0x1550   :  { %4106 = vmatmul.msk.f32.vlgmr.msrb.gmra.mxu3 %vm387_vm0, %v2512_v23 }
0x1556   :  { %v2663_v18 = vpop.xlane.xlu1 %2662 }
0x1557   :  { %v2665_v56 = vsub.f32 %v2657_v50, %v2663_v18 }
0x1558   :  { %4107 = vmatmul.msk.f32.gmra.mxu3 %vm387_vm0, %v2539_v13 }
0x1559   :  { %v2668_v24 = vmul.f32 1.442695, %v2665_v56  ;;  %v2823_v28 = vpop.xlane.xlu2 %2822  ;;  %v2625_v30 = vpop.f32.mrf.mxu1 }
0x155a   :  { %v2827_v31 = vsub.f32 %v2819_v17, %v2823_v28  ;;  %v2656_v32 = vmul.f32 0.25, %v2625_v30 }
0x155b   :  { %4333 = vpow2.f32 %v2668_v24 }
0x155c   :  { %v2829_v33 = vmul.f32 1.442695, %v2827_v31  ;;  %v2658_v34 = vsel %vm615_vm1, %v2656_v32, -inf }
0x155d   :  { %2659 = vmax.xlane.f32.xlu0 %v2658_v34 }
0x155e   :  { %4335 = vpow2.f32 %v2829_v33 }
0x1561   :  { %v4334_v35 = vpop.eup %4333 }
0x1562   :  { %v2673_v29 = vsel %vm615_vm1, %v4334_v35, 0.0 }
0x1563   :  { %2674 = vadd.xlane.f32.xlu1 %v2673_v29 }
0x1564   :  { %v4336_v51 = vpop.eup %4335 }
0x1565   :  { %v2833_v21 = vsel %vm615_vm1, %v4336_v51, 0.0 }
0x1566   :  { %2834 = vadd.xlane.f32.xlu2 %v2833_v21 }
0x156e   :  { %v4227_v19 = vpop.permute.xlu1 %4226 }
0x156f   :  { %v4229_v36 = vunpack.i.h.bf16 %v4227_v19  ;;  %v4228_v37 = vunpack.i.l.bf16 %v4227_v19 }
0x1571   :  { %2701 = vmatpush.msrb.mxu1 %v4229_v36  ;;  %2727 = vmatpush.msra.mxu2 %v4228_v37 }
0x1572   :  { %2843 = vrot.lane.b32.xlu0 %v5503_v11, %s4898_s18 }
0x157c   :  { %2791 = vrot.lane.b32.xlu1 %v5509_v61, %s4898_s18 }
0x157e   :  { %2793 = vrot.lane.b32.xlu2 %v5501_v60, %s4898_s18 }
0x1586   :  { %2926 = vrot.lane.b32.xlu2 %v5497_v54, %s4899_s23 }
0x158e   :  { %2956 = vrot.lane.b32.xlu2 %v5501_v60, %s4899_s23 }
0x15d0   :  { %v2660_v39 = vpop.xlane.xlu0 %2659 }
0x15d1   :  { %v2664_v40 = vsub.f32 %v2656_v32, %v2660_v39 }
0x15d3   :  { %v2666_v1 = vmul.f32 1.442695, %v2664_v40  ;;  %v2565_v20 = vpop.f32.mrf.mxu3 }
0x15d4   :  { %v2595_v56 = vadd.f32 %v5561_v9, %v2565_v20 }
0x15d5   :  { %4337 = vpow2.f32 %v2666_v1 }
0x15d6   :  { %v2675_v49 = vpop.xlane.xlu1 %2674 }
0x15d7   :  { %4339 = vrcp.f32 %v2675_v49 }
0x15d9   :  { %v2835_v3 = vpop.xlane.xlu2 %2834 }
0x15da   :  { %4341 = vrcp.f32 %v2835_v3  ;;  %v2279_v3 = vld [vmem:[#allocation23 + $0x48] sm:$0xff] }
0x15db   :  { %v4338_v59 = vpop.eup %4337  ;;  %v5609_v16 = vpop.f32.mrf.mxu3 }
0x15dc   :  { %v2670_v41 = vsel %vm615_vm1, %v4338_v59, 0.0 }
0x15dd   :  { %v4340_v42 = vpop.eup %4339  ;;  %2671 = vadd.xlane.f32.xlu0 %v2670_v41 }
0x15de   :  { %v2679_v43 = vmul.f32 %v4340_v42, %v4334_v35 }
0x15e0   :  { %4115 = vmatmul.msk.f32.vlgmr.msra.gmra.mxu2 %vm615_vm1, %v2679_v43  ;;  %v4342_v45 = vpop.eup %4341 }
0x15e1   :  { %v2794_v44 = vpop.permute.xlu2 %2793  ;;  %v2841_v48 = vmul.f32 %v4342_v45, %v4336_v51 }
0x15e2   :  { %4120 = vmatpush.xpose.msk.msra.mxu1 %vm387_vm0, %v2794_v44 }
0x15e4   :  { %v2844_v47 = vpop.permute.xlu0 %2843 }
0x15e5   :  { %2864 = vmatpush.msrb.mxu2 %v2844_v47 }
0x15e8   :  { %4122 = vmatmul.msk.f32.vlgmr.msrb.gmra.mxu2 %vm615_vm1, %v2841_v48 }
0x15e9   :  { %v2927_v8 = vpop.permute.xlu2 %2926 }
0x15ee   :  { %v2792_v2 = vpop.permute.xlu1 %2791 }
0x15f1   :  { %v2957_v55 = vpop.permute.xlu2 %2956  ;;  %2928 = vrot.lane.b32.xlu0 %v5490_v53, %s4899_s23 }
0x15f2   :  { %4128 = vmatpush.xpose.msk.msrb.mxu3 %vm387_vm0, %v2957_v55 }
0x1650   :  { %v2672_v57 = vpop.xlane.xlu0 %2671 }
0x1651   :  { %4343 = vrcp.f32 %v2672_v57 }
0x1657   :  { %v4344_v10 = vpop.eup %4343 }
0x1658   :  { %v2678_v58 = vmul.f32 %v4344_v10, %v4338_v59  ;;  %v2278_v59 = vld [vmem:[#allocation23 + $0x40] sm:$0xff] }
0x165a   :  { %4114 = vmatmul.msk.f32.vlgmr.msrb.gmra.mxu1 %vm615_vm1, %v2678_v58 }
0x165b   :  { %2915 = vmatpush.msrb.mxu1 %v2277_v62 }
0x165d   :  { %2916 = vmatpush.msrb.mxu1 %v2276_v0 }
0x1662   :  { %4121 = vmatmul.msk.f32.vlgmr.msra.gmra.mxu1 %vm387_vm0, %v2792_v2 }
0x1663   :  { %v2729_v7 = vpop.f32.mrf.mxu2  ;;  %v2929_v4 = vpop.permute.xlu0 %2928 }
0x1664   :  { %4126 = vmatpush.xpose.msk.msra.mxu2 %vm387_vm0, %v2929_v4 }
0x1667   :  { %4127 = vmatmul.msk.f32.vlgmr.msra.gmra.mxu2 %vm387_vm0, %v2927_v8 }
0x166b   :  { %v2866_v13 = vpop.f32.mrf.mxu2 }
0x166c   :  { %4124 = vmatmul.msk.f32.vlgmr.msrb.gmra.mxu1 %vm387_vm0, %v2866_v13 }
0x16d7   :  { %v2703_v15 = vpop.f32.mrf.mxu1 }
0x16d8   :  { %4116 = vmatmul.msk.f32.vlgmr.msra.gmra.mxu3 %vm387_vm0, %v2703_v15 }
0x16d9   :  { %3078 = vmatpush.msra.mxu3 %v2279_v3 }
0x16db   :  { %3079 = vmatpush.msra.mxu3 %v2278_v59 }
0x16df   :  { %v2816_v27 = vpop.f32.mrf.mxu1 }
0x16e0   :  { %v2820_v46 = vmul.f32 0.25, %v2816_v27  ;;  %4117 = vmatmul.msk.f32.gmra.mxu3 %vm387_vm0, %v2729_v7 }
0x16e2   :  { %v2824_v50 = vsel %vm615_vm1, %v2820_v46, -inf }
0x16e3   :  { %2825 = vmax.xlane.f32.xlu0 %v2824_v50 }
0x16e9   :  { %v5639_v10 = vpop.f32.mrf.mxu1 }
0x16ea   :  { %v2951_v6 = vpop.f32.mrf.mxu2 }
0x16eb   :  { %v2982_v5 = vmul.f32 0.25, %v2951_v6 }
0x16ed   :  { %v2984_v17 = vsel %vm615_vm1, %v2982_v5, -inf }
0x16ee   :  { %2985 = vmax.xlane.f32.xlu1 %v2984_v17 }
0x1707   :  { %2869 = vrot.lane.b32.xlu1 %v5514_v63, %s4898_s18 }
0x170f   :  { %3006 = vrot.lane.b32.xlu1 %v5503_v11, %s4899_s23 }
0x1717   :  { %3119 = vrot.lane.b32.xlu1 %v5501_v60, %s4900_s26 }
0x1756   :  { %v2826_v22 = vpop.xlane.xlu0 %2825 }
0x1757   :  { %v2828_v23 = vsub.f32 %v2820_v46, %v2826_v22 }
0x1759   :  { %v2831_v18 = vmul.f32 1.442695, %v2828_v23 }
0x175b   :  { %4345 = vpow2.f32 %v2831_v18  ;;  %v2755_v24 = vpop.f32.mrf.mxu3 }
0x175c   :  { %v5612_v28 = vadd.f32 %v2755_v24, %v2595_v56 }
0x1761   :  { %v4346_v30 = vpop.eup %4345  ;;  %v2986_v31 = vpop.xlane.xlu1 %2985 }
0x1762   :  { %v2990_v32 = vsub.f32 %v2982_v5, %v2986_v31  ;;  %v2836_v33 = vsel %vm615_vm1, %v4346_v30, 0.0 }
0x1763   :  { %2837 = vadd.xlane.f32.xlu2 %v2836_v33  ;;  %v5633_v44 = vpop.f32.mrf.mxu3 }
0x1764   :  { %v2992_v34 = vmul.f32 1.442695, %v2990_v32 }
0x1766   :  { %4347 = vpow2.f32 %v2992_v34 }
0x176c   :  { %v4348_v35 = vpop.eup %4347 }
0x176d   :  { %v2996_v29 = vsel %vm615_vm1, %v4348_v35, 0.0 }
0x176e   :  { %2997 = vadd.xlane.f32.xlu0 %v2996_v29 }
0x1779   :  { %v2870_v51 = vpop.permute.xlu1 %2869 }
0x177a   :  { %2890 = vmatpush.msrb.mxu0 %v2870_v51 }
0x177b   :  { %3089 = vrot.lane.b32.xlu2 %v5497_v54, %s4900_s26 }
0x1781   :  { %v3007_v9 = vpop.permute.xlu1 %3006 }
0x1782   :  { %2954 = vrot.lane.b32.xlu0 %v5509_v61, %s4899_s23  ;;  %3027 = vmatpush.msra.mxu0 %v3007_v9 }
0x1789   :  { %v3120_v21 = vpop.permute.xlu1 %3119 }
0x178a   :  { %3091 = vrot.lane.b32.xlu0 %v5490_v53, %s4900_s26  ;;  %4136 = vmatpush.xpose.msk.msra.mxu1 %vm387_vm0, %v3120_v21 }
0x1792   :  { %3117 = vrot.lane.b32.xlu0 %v5509_v61, %s4900_s26 }
0x17d6   :  { %v2838_v19 = vpop.xlane.xlu2 %2837 }
0x17d7   :  { %4349 = vrcp.f32 %v2838_v19  ;;  %v2281_v19 = vld [vmem:[#allocation23 + $0x58] sm:$0xff] }
0x17d8   :  { %3241 = vmatpush.msrb.mxu1 %v2281_v19 }
0x17dd   :  { %v4350_v36 = vpop.eup %4349 }
0x17de   :  { %v2842_v37 = vmul.f32 %v4350_v36, %v4346_v30  ;;  %v3090_v49 = vpop.permute.xlu2 %3089  ;;  %v2280_v36 = vld [vmem:[#allocation23 + $0x50] sm:$0xff] }
0x17df   :  { %3242 = vmatpush.msrb.mxu1 %v2280_v36 }
0x17e0   :  { %4123 = vmatmul.msk.f32.vlgmr.msrb.gmra.mxu0 %vm615_vm1, %v2842_v37 }
0x17e1   :  { %v2998_v26 = vpop.xlane.xlu0 %2997 }
0x17e2   :  { %4351 = vrcp.f32 %v2998_v26 }
0x17e8   :  { %v4352_v38 = vpop.eup %4351 }
0x17e9   :  { %v3004_v39 = vmul.f32 %v4352_v38, %v4348_v35 }
0x17eb   :  { %4130 = vmatmul.msk.f32.vlgmr.msra.gmra.mxu0 %vm615_vm1, %v3004_v39 }
0x17f4   :  { %v2955_v40 = vpop.permute.xlu0 %2954 }
0x17f5   :  { %4129 = vmatmul.msk.f32.vlgmr.msrb.gmra.mxu3 %vm387_vm0, %v2955_v40 }
0x17fc   :  { %v3092_v1 = vpop.permute.xlu0 %3091 }
0x17fd   :  { %4134 = vmatpush.xpose.msk.msrb.mxu0 %vm387_vm0, %v3092_v1 }
0x1800   :  { %4135 = vmatmul.msk.f32.vlgmr.msrb.gmra.mxu0 %vm387_vm0, %v3090_v49 }
0x1804   :  { %v3118_v42 = vpop.permute.xlu0 %3117 }
0x185d   :  { %v2892_v41 = vpop.f32.mrf.mxu0 }
0x185e   :  { %4125 = vmatmul.msk.f32.gmra.mxu1 %vm387_vm0, %v2892_v41 }
0x1866   :  { %4137 = vmatmul.msk.f32.vlgmr.msra.gmra.mxu1 %vm387_vm0, %v3118_v42 }
0x1868   :  { %v3029_v43 = vpop.f32.mrf.mxu0 }
0x1869   :  { %4132 = vmatmul.msk.f32.vlgmr.msra.gmra.mxu3 %vm387_vm0, %v3029_v43 }
0x1878   :  { %v2979_v45 = vpop.f32.mrf.mxu3 }
0x1879   :  { %v2983_v47 = vmul.f32 0.25, %v2979_v45  ;;  %v2598_v45 = vadd.f32 %v5564_v14, %v5609_v16  ;;  %v2283_v16 = vld [vmem:[#allocation23 + $0x68] sm:$0xff] }
0x187b   :  { %v2987_v48 = vsel %vm615_vm1, %v2983_v47, -inf }
0x187c   :  { %2988 = vmax.xlane.f32.xlu2 %v2987_v48 }
0x187d   :  { %v3114_v8 = vpop.f32.mrf.mxu0 }
0x187e   :  { %v3145_v55 = vmul.f32 0.25, %v3114_v8 }
0x1880   :  { %v3147_v57 = vsel %vm615_vm1, %v3145_v55, -inf }
0x1881   :  { %3148 = vmax.xlane.f32.xlu1 %v3147_v57 }
0x189a   :  { %3032 = vrot.lane.b32.xlu1 %v5514_v63, %s4899_s23 }
0x18db   :  { %v5641_v58 = vpop.f32.mrf.mxu1 }
0x18e3   :  { %v3142_v62 = vpop.f32.mrf.mxu1 }
0x18e4   :  { %v3146_v0 = vmul.f32 0.25, %v3142_v62 }
0x18e6   :  { %v3150_v2 = vsel %vm615_vm1, %v3146_v0, -inf }
0x18e7   :  { %3151 = vmax.xlane.f32.xlu1 %v3150_v2 }
0x18ec   :  { %v5679_v43 = vpop.f32.mrf.mxu3 }
0x18ef   :  { %v2989_v7 = vpop.xlane.xlu2 %2988 }
0x18f0   :  { %v2991_v4 = vsub.f32 %v2983_v47, %v2989_v7  ;;  %v2762_v47 = vadd.f32 %v5633_v44, %v2598_v45 }
0x18f2   :  { %v2994_v13 = vmul.f32 1.442695, %v2991_v4  ;;  %v2925_v48 = vadd.f32 %v5641_v58, %v2762_v47 }
0x18f4   :  { %4353 = vpow2.f32 %v2994_v13  ;;  %v3149_v15 = vpop.xlane.xlu1 %3148 }
0x18f5   :  { %v3153_v27 = vsub.f32 %v3145_v55, %v3149_v15 }
0x18f7   :  { %v3155_v46 = vmul.f32 1.442695, %v3153_v27 }
0x18f9   :  { %4355 = vpow2.f32 %v3155_v46 }
0x18fa   :  { %v4354_v50 = vpop.eup %4353 }
0x18fb   :  { %v2999_v6 = vsel %vm615_vm1, %v4354_v50, 0.0 }
0x18fc   :  { %3000 = vadd.xlane.f32.xlu0 %v2999_v6 }
0x18ff   :  { %v4356_v5 = vpop.eup %4355 }
0x1900   :  { %3280 = vrot.lane.b32.xlu1 %v5509_v61, %s4901_s12  ;;  %v3159_v17 = vsel %vm615_vm1, %v4356_v5, 0.0 }
0x1901   :  { %3160 = vadd.xlane.f32.xlu2 %v3159_v17 }
0x190c   :  { %v3033_v20 = vpop.permute.xlu1 %3032 }
0x190d   :  { %3053 = vmatpush.msrb.mxu2 %v3033_v20 }
0x1910   :  { %3169 = vrot.lane.b32.xlu0 %v5503_v11, %s4900_s26 }
0x1918   :  { %3252 = vrot.lane.b32.xlu0 %v5497_v54, %s4901_s12 }
0x1919   :  { %3254 = vrot.lane.b32.xlu2 %v5490_v53, %s4901_s12 }
0x1920   :  { %3195 = vrot.lane.b32.xlu0 %v5514_v63, %s4900_s26 }
0x195a   :  { %v3152_v22 = vpop.xlane.xlu1 %3151 }
0x195b   :  { %v3154_v23 = vsub.f32 %v3146_v0, %v3152_v22 }
0x195d   :  { %v3157_v18 = vmul.f32 1.442695, %v3154_v23 }
0x195f   :  { %4357 = vpow2.f32 %v3157_v18 }
0x1965   :  { %v4358_v56 = vpop.eup %4357 }
0x1966   :  { %v3162_v24 = vsel %vm615_vm1, %v4358_v56, 0.0 }
0x1967   :  { %3163 = vadd.xlane.f32.xlu2 %v3162_v24 }
0x196f   :  { %v3001_v30 = vpop.xlane.xlu0 %3000 }
0x1970   :  { %4359 = vrcp.f32 %v3001_v30 }
0x1972   :  { %v3281_v1 = vpop.permute.xlu1 %3280 }
0x1974   :  { %v3161_v32 = vpop.xlane.xlu2 %3160 }
0x1975   :  { %4361 = vrcp.f32 %v3161_v32 }
0x1976   :  { %v4360_v31 = vpop.eup %4359 }
0x1977   :  { %v3005_v33 = vmul.f32 %v4360_v31, %v4354_v50  ;;  %v2282_v50 = vld [vmem:[#allocation23 + $0x60] sm:$0xff] }
0x1979   :  { %4131 = vmatmul.msk.f32.vlgmr.msrb.gmra.mxu2 %vm615_vm1, %v3005_v33 }
0x197b   :  { %v4362_v34 = vpop.eup %4361 }
0x197c   :  { %v3167_v35 = vmul.f32 %v4362_v34, %v4356_v5  ;;  %v3255_v51 = vpop.permute.xlu2 %3254 }
0x197f   :  { %3282 = vrot.lane.b32.xlu2 %v5501_v60, %s4901_s12 }
0x1982   :  { %v3170_v29 = vpop.permute.xlu0 %3169 }
0x1983   :  { %3190 = vmatpush.msra.mxu2 %v3170_v29 }
0x1984   :  { %4138 = vmatmul.msk.f32.vlgmr.msra.gmra.mxu2 %vm615_vm1, %v3167_v35 }
0x1985   :  { %4142 = vmatpush.xpose.msk.msrb.mxu2 %vm387_vm0, %v3255_v51 }
0x1987   :  { %3417 = vrot.lane.b32.xlu2 %v5490_v53, %s4881_s15 }
0x198a   :  { %v3253_v9 = vpop.permute.xlu0 %3252 }
0x198c   :  { %4143 = vmatmul.msk.f32.vlgmr.msrb.gmra.mxu2 %vm387_vm0, %v3253_v9 }
0x198f   :  { %3445 = vrot.lane.b32.xlu2 %v5501_v60, %s4881_s15 }
0x1992   :  { %v3196_v21 = vpop.permute.xlu0 %3195 }
0x1993   :  { %3216 = vmatpush.msra.mxu0 %v3196_v21 }
0x19da   :  { %v3164_v37 = vpop.xlane.xlu2 %3163 }
0x19db   :  { %4363 = vrcp.f32 %v3164_v37 }
0x19e1   :  { %v4364_v26 = vpop.eup %4363 }
0x19e2   :  { %v3168_v38 = vmul.f32 %v4364_v26, %v4358_v56  ;;  %v3283_v39 = vpop.permute.xlu2 %3282 }
0x19e3   :  { %4144 = vmatpush.xpose.msk.msrb.mxu3 %vm387_vm0, %v3283_v39 }
0x19e4   :  { %4139 = vmatmul.msk.f32.vlgmr.msra.gmra.mxu0 %vm615_vm1, %v3168_v38 }
0x19e7   :  { %3404 = vmatpush.msra.mxu3 %v2283_v16 }
0x19e9   :  { %3405 = vmatpush.msra.mxu3 %v2282_v50  ;;  %v3669_v50 = vld [vmem:[#allocation25 + $0xf8] sm:$0xff] }
0x19ea   :  { %v3418_v53 = vpop.permute.xlu2 %3417 }
0x19f2   :  { %v3446_v40 = vpop.permute.xlu2 %3445 }
0x19f3   :  { %4152 = vmatpush.xpose.msk.msra.mxu1 %vm387_vm0, %v3446_v40 }
0x19fc   :  { %v3055_v60 = vpop.f32.mrf.mxu2 }
0x19fd   :  { %4133 = vmatmul.msk.f32.gmra.mxu3 %vm387_vm0, %v3055_v60  ;;  %v2285_v60 = vld [vmem:[#allocation23 + $0x78] sm:$0xff] }
0x1a05   :  { %4145 = vmatmul.msk.f32.vlgmr.msrb.gmra.mxu3 %vm387_vm0, %v3281_v1 }
0x1a07   :  { %v3192_v49 = vpop.f32.mrf.mxu2 }
0x1a08   :  { %4140 = vmatmul.msk.f32.vlgmr.msrb.gmra.mxu1 %vm387_vm0, %v3192_v49 }
0x1a09   :  { %3567 = vmatpush.msrb.mxu1 %v2285_v60  ;;  %v3642_v60 = vld [vmem:[#allocation25 + $0x20] sm:$0xff] }
0x1a0f   :  { %v3277_v3 = vpop.f32.mrf.mxu2 }
0x1a10   :  { %v3308_v59 = vmul.f32 0.25, %v3277_v3 }
0x1a12   :  { %v3310_v41 = vsel %vm615_vm1, %v3308_v59, -inf }
0x1a13   :  { %3311 = vmax.xlane.f32.xlu0 %v3310_v41 }
0x1a27   :  { %3332 = vrot.lane.b32.xlu0 %v5503_v11, %s4901_s12 }
0x1a2f   :  { %3415 = vrot.lane.b32.xlu0 %v5497_v54, %s4881_s15 }
0x1a61   :  { %v3218_v42 = vpop.f32.mrf.mxu0 }
0x1a62   :  { %4141 = vmatmul.msk.f32.gmra.mxu1 %vm387_vm0, %v3218_v42 }
0x1a80   :  { %v3084_v8 = vpop.f32.mrf.mxu3 }
0x1a81   :  { %v5685_v55 = vadd.f32 %v3084_v8, %v2925_v48 }
0x1a85   :  { %v5695_v6 = vpop.f32.mrf.mxu1 }
0x1a86   :  { %v3312_v57 = vpop.xlane.xlu0 %3311 }
0x1a87   :  { %v3316_v62 = vsub.f32 %v3308_v59, %v3312_v57  ;;  %v2924_v57 = vadd.f32 %v5639_v10, %v5612_v28 }
0x1a88   :  { %v3305_v0 = vpop.f32.mrf.mxu3 }
0x1a89   :  { %v3318_v2 = vmul.f32 1.442695, %v3316_v62  ;;  %v3309_v54 = vmul.f32 0.25, %v3305_v0  ;;  %v3087_v62 = vadd.f32 %v5679_v43, %v2924_v57  ;;  %v3756_v57 = vld [vmem:[#allocation26 + $0xf0] sm:$0xff] }
0x1a8b   :  { %4365 = vpow2.f32 %v3318_v2  ;;  %v3313_v7 = vsel %vm615_vm1, %v3309_v54, -inf  ;;  %v3250_v2 = vadd.f32 %v5695_v6, %v3087_v62  ;;  %v3666_v6 = vld [vmem:[#allocation25 + $0xe0] sm:$0xff]  ;;  %v3739_v62 = vld [vmem:[#allocation26 + $0x68] sm:$0xff] }
0x1a8c   :  { %3314 = vmax.xlane.f32.xlu0 %v3313_v7  ;;  %v4237_v7 = vld [vmem:[%s5787_s9] ss:$0 sm:$0xff] }
0x1a91   :  { %v4366_v4 = vpop.eup %4365 }
0x1a92   :  { %v3322_v13 = vsel %vm615_vm1, %v4366_v4, 0.0 }
0x1a93   :  { %3323 = vadd.xlane.f32.xlu1 %v3322_v13 }
0x1a99   :  { %v3333_v14 = vpop.permute.xlu0 %3332 }
0x1a9a   :  { %3353 = vmatpush.msrb.mxu0 %v3333_v14 }
0x1a9c   :  { %4150 = vmatpush.xpose.msk.msra.mxu0 %vm387_vm0, %v3418_v53 }
0x1aa1   :  { %v3416_v27 = vpop.permute.xlu0 %3415 }
0x1aac   :  { %3443 = vrot.lane.b32.xlu1 %v5509_v61, %s4881_s15 }
0x1adf   :  { %v5698_v22 = vpop.f32.mrf.mxu1 }
0x1aff   :  { %v3315_v5 = vpop.xlane.xlu0 %3314 }
0x1b00   :  { %v3317_v17 = vsub.f32 %v3309_v54, %v3315_v5  ;;  %v3667_v5 = vld [vmem:[#allocation25 + $0xe8] sm:$0xff] }
0x1b02   :  { %v3320_v20 = vmul.f32 1.442695, %v3317_v17 }
0x1b06   :  { %v3324_v44 = vpop.xlane.xlu1 %3323 }
0x1b07   :  { %4367 = vrcp.f32 %v3324_v44  ;;  %v3251_v44 = vadd.f32 %v5698_v22, %v5685_v55 }
0x1b08   :  { %4369 = vpow2.f32 %v3320_v20 }
0x1b0d   :  { %v4368_v58 = vpop.eup %4367 }
0x1b0e   :  { %v3330_v15 = vmul.f32 %v4368_v58, %v4366_v4  ;;  %v4370_v30 = vpop.eup %4369 }
0x1b0f   :  { %v3325_v33 = vsel %vm615_vm1, %v4370_v30, 0.0 }
0x1b10   :  { %4146 = vmatmul.msk.f32.vlgmr.msrb.gmra.mxu0 %vm615_vm1, %v3330_v15 }
0x1b18   :  { %4151 = vmatmul.msk.f32.vlgmr.msra.gmra.mxu0 %vm387_vm0, %v3416_v27 }
0x1b1e   :  { %v3444_v46 = vpop.permute.xlu1 %3443 }
0x1b1f   :  { %4153 = vmatmul.msk.f32.vlgmr.msra.gmra.mxu1 %vm387_vm0, %v3444_v46  ;;  %v3668_v46 = vld [vmem:[#allocation25 + $0xf0] sm:$0xff] }
0x1b20   :  { %3676 = vmatpush.msrb.mxu3 %v3668_v46 }
0x1b22   :  { %3677 = vmatpush.msrb.mxu3 %v3666_v6  ;;  %v3750_v6 = vld [vmem:[#allocation26 + $0xc0] sm:$0xff] }
0x1b8d   :  { %v3355_v61 = vpop.f32.mrf.mxu0 }
0x1b8e   :  { %4148 = vmatmul.msk.f32.vlgmr.msra.gmra.mxu3 %vm387_vm0, %v3355_v61 }
0x1b95   :  { %v3440_v23 = vpop.f32.mrf.mxu0 }
0x1b96   :  { %v3471_v18 = vmul.f32 0.25, %v3440_v23 }
0x1b98   :  { %v3473_v56 = vsel %vm615_vm1, %v3471_v18, -inf }
0x1b99   :  { %3474 = vmax.xlane.f32.xlu2 %v3473_v56  ;;  %v3665_v56 = vld [vmem:[#allocation25 + $0xd8] sm:$0xff] }
0x1b9c   :  { %v3468_v24 = vpop.f32.mrf.mxu1 }
0x1b9d   :  { %v3472_v31 = vmul.f32 0.25, %v3468_v24  ;;  %v3662_v24 = vld [vmem:[#allocation25 + $0xc0] sm:$0xff] }
0x1b9f   :  { %v3476_v32 = vsel %vm615_vm1, %v3472_v31, -inf }
0x1ba0   :  { %3477 = vmax.xlane.f32.xlu1 %v3476_v32  ;;  %v3661_v32 = vld [vmem:[#allocation25 + $0xb8] sm:$0xff] }
0x1ba1   :  { %3326 = vadd.xlane.f32.xlu2 %v3325_v33  ;;  %v3658_v33 = vld [vmem:[#allocation25 + $0xa0] sm:$0xff] }
0x1bb9   :  { %3358 = vrot.lane.b32.xlu1 %v5514_v63, %s4901_s12  ;;  %3495 = vrot.lane.b32.xlu2 %v5503_v11, %s4881_s15 }
0x1c0c   :  { %v3475_v34 = vpop.xlane.xlu2 %3474 }
0x1c0d   :  { %v3479_v51 = vsub.f32 %v3471_v18, %v3475_v34  ;;  %v3664_v18 = vld [vmem:[#allocation25 + $0xd0] sm:$0xff]  ;;  %v3659_v34 = vld [vmem:[#allocation25 + $0xa8] sm:$0xff] }
0x1c0e   :  { %3678 = vmatpush.msrb.mxu3 %v3664_v18  ;;  %v3732_v18 = vld [vmem:[#allocation26 + $0x30] sm:$0xff] }
0x1c0f   :  { %v3481_v21 = vmul.f32 1.442695, %v3479_v51  ;;  %v3654_v51 = vld [vmem:[#allocation25 + $0x80] sm:$0xff] }
0x1c10   :  { %3679 = vmatpush.msrb.mxu3 %v3662_v24 }
0x1c11   :  { %v3407_v0 = vpop.f32.mrf.mxu3 }
0x1c12   :  { %v3413_v54 = vadd.f32 %v3407_v0, %v3250_v2  ;;  %v3755_v0 = vld [vmem:[#allocation26 + $0xe8] sm:$0xff] }
0x1c13   :  { %v3478_v35 = vpop.xlane.xlu1 %3477 }
0x1c14   :  { %v3480_v29 = vsub.f32 %v3472_v31, %v3478_v35  ;;  %v3327_v36 = vpop.xlane.xlu2 %3326  ;;  %v3660_v31 = vld [vmem:[#allocation25 + $0xb0] sm:$0xff] }
0x1c15   :  { %3680 = vmatpush.msrb.mxu3 %v3660_v31  ;;  %v3656_v35 = vld [vmem:[#allocation25 + $0x90] sm:$0xff] }
0x1c16   :  { %v3483_v9 = vmul.f32 1.442695, %v3480_v29  ;;  %v3657_v29 = vld [vmem:[#allocation25 + $0x98] sm:$0xff] }
0x1c17   :  { %3681 = vmatpush.msrb.mxu3 %v3658_v33  ;;  %v3731_v33 = vld [vmem:[#allocation26 + $0x28] sm:$0xff] }
0x1c18   :  { %4371 = vpow2.f32 %v3483_v9  ;;  %v3655_v9 = vld [vmem:[#allocation25 + $0x88] sm:$0xff] }
0x1c19   :  { %4373 = vpow2.f32 %v3481_v21  ;;  %3682 = vmatpush.msrb.mxu3 %v3656_v35  ;;  %v3652_v21 = vld [vmem:[#allocation25 + $0x70] sm:$0xff] }
0x1c1a   :  { %4375 = vrcp.f32 %v3327_v36  ;;  %v3650_v36 = vld [vmem:[#allocation25 + $0x60] sm:$0xff] }
0x1c1b   :  { %3683 = vmatpush.msrb.mxu3 %v3654_v51  ;;  %v3730_v51 = vld [vmem:[#allocation26 + $0x20] sm:$0xff] }
0x1c1c   :  { %v3496_v40 = vpop.permute.xlu2 %3495 }
0x1c1d   :  { %3684 = vmatpush.msrb.mxu3 %v3652_v21 }
0x1c1e   :  { %v4372_v19 = vpop.eup %4371 }
0x1c1f   :  { %v3488_v37 = vsel %vm615_vm1, %v4372_v19, 0.0  ;;  %v4374_v26 = vpop.eup %4373  ;;  %3685 = vmatpush.msrb.mxu3 %v3650_v36  ;;  %v3729_v36 = vld [vmem:[#allocation26 + $0x18] sm:$0xff] }
0x1c20   :  { %3489 = vadd.xlane.f32.xlu0 %v3488_v37  ;;  %v3485_v38 = vsel %vm615_vm1, %v4374_v26, 0.0  ;;  %v4376_v39 = vpop.eup %4375  ;;  %v3651_v37 = vld [vmem:[#allocation25 + $0x68] sm:$0xff] }
0x1c21   :  { %v3331_v11 = vmul.f32 %v4376_v39, %v4370_v30  ;;  %v3663_v30 = vld [vmem:[#allocation25 + $0xc8] sm:$0xff]  ;;  %v3646_v39 = vld [vmem:[#allocation25 + $0x40] sm:$0xff] }
0x1c28   :  { %3486 = vadd.xlane.f32.xlu0 %v3485_v38  ;;  %v3649_v38 = vld [vmem:[#allocation25 + $0x58] sm:$0xff] }
0x1c2b   :  { %v3359_v53 = vpop.permute.xlu1 %3358 }
0x1c2c   :  { %3379 = vmatpush.msra.mxu2 %v3359_v53  ;;  %v3644_v53 = vld [vmem:[#allocation25 + $0x30] sm:$0xff] }
0x1c2d   :  { %4147 = vmatmul.msk.f32.vlgmr.msra.gmra.mxu2 %vm615_vm1, %v3331_v11  ;;  %v3647_v11 = vld [vmem:[#allocation25 + $0x48] sm:$0xff] }
0x1c2e   :  { %3516 = vmatpush.msrb.mxu2 %v3496_v40  ;;  %v3645_v40 = vld [vmem:[#allocation25 + $0x38] sm:$0xff] }
0x1c30   :  { %3699 = vmatpush.msra.mxu2 %v3669_v50  ;;  %v3734_v50 = vld [vmem:[#allocation26 + $0x40] sm:$0xff] }
0x1c32   :  { %3700 = vmatpush.msra.mxu2 %v3667_v5 }
0x1c34   :  { %3701 = vmatpush.msra.mxu2 %v3665_v56  ;;  %v3748_v56 = vld [vmem:[#allocation26 + $0xb0] sm:$0xff] }
0x1c36   :  { %3702 = vmatpush.msra.mxu2 %v3663_v30 }
0x1c38   :  { %3703 = vmatpush.msra.mxu2 %v3661_v32  ;;  %v4239_v32 = vld [vmem:[%s5789_s29] ss:$0 sm:$0xff] }
0x1c3a   :  { %3704 = vmatpush.msra.mxu2 %v3659_v34  ;;  %v3747_v34 = vld [vmem:[#allocation26 + $0xa8] sm:$0xff] }
0x1c3c   :  { %3521 = vrot.lane.b32.xlu0 %v5514_v63, %s4881_s15  ;;  %v2284_v63 = vld [vmem:[#allocation23 + $0x70] sm:$0xff]  ;;  %3705 = vmatpush.msra.mxu2 %v3657_v29  ;;  %s5788_s15 = sld [smem:[#allocation47_spill]] }
0x1c3d   :  { %3568 = vmatpush.msrb.mxu1 %v2284_v63  ;;  %v3741_v63 = vld [vmem:[#allocation26 + $0x78] sm:$0xff] }
0x1c3e   :  { %3706 = vmatpush.msra.mxu2 %v3655_v9  ;;  %v3746_v9 = vld [vmem:[#allocation26 + $0xa0] sm:$0xff] }
0x1c93   :  { %v3490_v1 = vpop.xlane.xlu0 %3489 }
0x1c9b   :  { %v3487_v49 = vpop.xlane.xlu0 %3486 }
0x1c9c   :  { %4377 = vrcp.f32 %v3487_v49  ;;  %v3640_v49 = vld [vmem:[#allocation25 + $0x10] sm:$0xff] }
0x1c9d   :  { %4379 = vrcp.f32 %v3490_v1  ;;  %v3643_v1 = vld [vmem:[#allocation25 + $0x28] sm:$0xff] }
0x1ca2   :  { %v4378_v3 = vpop.eup %4377 }
0x1ca3   :  { %v3493_v59 = vmul.f32 %v4378_v3, %v4374_v26  ;;  %v4380_v41 = vpop.eup %4379  ;;  %v3648_v26 = vld [vmem:[#allocation25 + $0x50] sm:$0xff]  ;;  %v3641_v3 = vld [vmem:[#allocation25 + $0x18] sm:$0xff] }
0x1ca4   :  { %v3494_v42 = vmul.f32 %v4380_v41, %v4372_v19  ;;  %v3653_v19 = vld [vmem:[#allocation25 + $0x78] sm:$0xff]  ;;  %3686 = vmatpush.msrb.mxu3 %v3648_v26  ;;  %v3639_v41 = vld [vmem:[#allocation25 + $0x8] sm:$0xff] }
0x1ca5   :  { %4154 = vmatmul.msk.f32.vlgmr.msrb.gmra.mxu2 %vm615_vm1, %v3493_v59  ;;  %v3638_v59 = vld [vmem:[#allocation25] sm:$0xff] }
0x1ca6   :  { %3707 = vmatpush.msra.mxu2 %v3653_v19  ;;  %3687 = vmatpush.msrb.mxu3 %v3646_v39 }
0x1ca8   :  { %3708 = vmatpush.msra.mxu2 %v3651_v37  ;;  %3688 = vmatpush.msrb.mxu3 %v3644_v53  ;;  %v3745_v37 = vld [vmem:[#allocation26 + $0x98] sm:$0xff]  ;;  %v3728_v53 = vld [vmem:[#allocation26 + $0x10] sm:$0xff] }
0x1caa   :  { %3709 = vmatpush.msra.mxu2 %v3649_v38  ;;  %3689 = vmatpush.msrb.mxu3 %v3642_v60  ;;  %v3727_v60 = vld [vmem:[#allocation26 + $0x8] sm:$0xff] }
0x1cac   :  { %3710 = vmatpush.msra.mxu2 %v3647_v11  ;;  %3690 = vmatpush.msrb.mxu3 %v3640_v49  ;;  %v3726_v49 = vld [vmem:[#allocation26] sm:$0xff] }
0x1cae   :  { %v3522_v45 = vpop.permute.xlu0 %3521  ;;  %3711 = vmatpush.msra.mxu2 %v3645_v40  ;;  %3691 = vmatpush.msrb.mxu3 %v3638_v59  ;;  %v3744_v40 = vld [vmem:[#allocation26 + $0x90] sm:$0xff]  ;;  %v3670_v59 = vld [vmem:[%s5790_s30] sm:$0x3] }
0x1caf   :  { %3542 = vmatpush.msrb.mxu0 %v3522_v45 }
0x1cb0   :  { %v3381_v47 = vpop.f32.mrf.mxu2  ;;  %4155 = vmatmul.msk.f32.vlgmr.msrb.gmra.mxu0 %vm615_vm1, %v3494_v42  ;;  %3712 = vmatpush.msra.mxu2 %v3643_v1  ;;  %v3743_v1 = vld [vmem:[#allocation26 + $0x88] sm:$0xff] }
0x1cb1   :  { %4149 = vmatmul.msk.f32.gmra.mxu3 %vm387_vm0, %v3381_v47  ;;  %3762 = vmatpush.msra.mxu0 %v3741_v63 }
0x1cb2   :  { %3713 = vmatpush.msra.mxu2 %v3641_v3  ;;  %v3742_v3 = vld [vmem:[#allocation26 + $0x80] sm:$0xff] }
0x1cb4   :  { %3714 = vmatpush.msra.mxu2 %v3639_v41  ;;  %v3672_v41 = vperm.slane %v3670_v59, 0 }
0x1d28   :  { %v3518_v48 = vpop.f32.mrf.mxu2 }
0x1d29   :  { %4156 = vmatmul.msk.f32.vlgmr.msrb.gmra.mxu1 %vm387_vm0, %v3518_v48  ;;  %v3757_v48 = vld [vmem:[#allocation26 + $0xf8] sm:$0xff] }
0x1d2a   :  { %3785 = vmatpush.msra.mxu1 %v3757_v48 }
0x1d2c   :  { %3786 = vmatpush.msra.mxu1 %v3756_v57 }
0x1d2d   :  { %v3544_v8 = vpop.f32.mrf.mxu0 }
0x1d2e   :  { %3787 = vmatpush.msra.mxu1 %v3755_v0 }
0x1d31   :  { %4157 = vmatmul.msk.f32.gmra.mxu1 %vm387_vm0, %v3544_v8  ;;  %v3740_v8 = vld [vmem:[#allocation26 + $0x70] sm:$0xff] }
0x1d32   :  { %3763 = vmatpush.msra.mxu0 %v3740_v8 }
0x1d34   :  { %v3410_v16 = vpop.f32.mrf.mxu3  ;;  %3764 = vmatpush.msra.mxu0 %v3739_v62 }
0x1d35   :  { %v3414_v15 = vadd.f32 %v3410_v16, %v3251_v44  ;;  %v3737_v16 = vld [vmem:[#allocation26 + $0x58] sm:$0xff] }
0x1d36   :  { %v3753_v44 = vld [vmem:[#allocation26 + $0xd8] sm:$0xff] }
0x1da6   :  { %v3570_v4 = vpop.f32.mrf.mxu1 }
0x1da7   :  { %v3576_v13 = vadd.f32 %v3570_v4, %v3413_v54  ;;  %v3754_v4 = vld [vmem:[#allocation26 + $0xe0] sm:$0xff] }
0x1da8   :  { %3788 = vmatpush.msra.mxu1 %v3754_v4  ;;  %v4240_v4 = vld [vmem:[%s5791_s21] ss:$0 sm:$0xff] }
0x1da9   :  { %v3582_v14 = vadd.f32 %v4237_v7, %v3576_v13 }
0x1daa   :  { %3789 = vmatpush.msra.mxu1 %v3753_v44 }
0x1dab   :  { %v3584_v58 = vadd.f32 %v3582_v14, %v5481_v12 }
0x1dad   :  { %3586 = vadd.xlane.f32.xlu1 %v3584_v58 }
0x1dae   :  { %v3573_v27 = vpop.f32.mrf.mxu1 }
0x1daf   :  { %v3577_v28 = vadd.f32 %v3573_v27, %v3414_v15  ;;  %v3736_v15 = vld [vmem:[#allocation26 + $0x50] sm:$0xff] }
0x1db0   :  { %v3752_v27 = vld [vmem:[#allocation26 + $0xd0] sm:$0xff] }
0x1db1   :  { %v3583_v10 = vadd.f32 %v4237_v7, %v3577_v28  ;;  %v3738_v7 = vld [vmem:[#allocation26 + $0x60] sm:$0xff]  ;;  %3790 = vmatpush.msra.mxu1 %v3752_v27 }
0x1db2   :  { %3765 = vmatpush.msra.mxu0 %v3738_v7 }
0x1db3   :  { %v3585_v43 = vadd.f32 %v3583_v10, %v5488_v52  ;;  %v3735_v10 = vld [vmem:[#allocation26 + $0x48] sm:$0xff] }
0x1db4   :  { %3766 = vmatpush.msra.mxu0 %v3737_v16 }
0x1db5   :  { %3588 = vadd.xlane.f32.xlu2 %v3585_v43 }
0x1db6   :  { %3767 = vmatpush.msra.mxu0 %v3736_v15 }
0x1db8   :  { %3768 = vmatpush.msra.mxu0 %v3735_v10 }
0x1dba   :  { %3769 = vmatpush.msra.mxu0 %v3734_v50 }
0x1e20   :  { %v3587_v61 = vpop.xlane.xlu1 %3586 }
0x1e21   :  { %v3590_v55 = vmul.f32 %v3587_v61, %v5430_v25 }
0x1e23   :  { %v5727_v12 = vsub.f32 %v3584_v58, %v3590_v55  ;;  %v3733_v55 = vld [vmem:[#allocation26 + $0x38] sm:$0xff] }
0x1e24   :  { %3770 = vmatpush.msra.mxu0 %v3733_v55 }
0x1e25   :  { %v3594_v17 = vmul.f32 %v5727_v12, %v5727_v12 }
0x1e26   :  { %3771 = vmatpush.msra.mxu0 %v3732_v18  ;;  %v3911_v18 = vld [vmem:[#allocation28 + $0xe0] sm:$0xff] }
0x1e27   :  { %3596 = vadd.xlane.f32.xlu0 %v3594_v17  ;;  %v3749_v17 = vld [vmem:[#allocation26 + $0xb8] sm:$0xff] }
0x1e28   :  { %v3589_v20 = vpop.xlane.xlu2 %3588  ;;  %3772 = vmatpush.msra.mxu0 %v3731_v33  ;;  %v3905_v33 = vld [vmem:[#allocation28 + $0xb0] sm:$0xff] }
0x1e29   :  { %v3591_v52 = vmul.f32 %v3589_v20, %v5430_v25  ;;  %v4238_v20 = vld [vmem:[%s5788_s15] ss:$0 sm:$0xff] }
0x1e2a   :  { %3773 = vmatpush.msra.mxu0 %v3730_v51 }
0x1e2b   :  { %v5732_v22 = vsub.f32 %v3585_v43, %v3591_v52  ;;  %v3751_v43 = vld [vmem:[#allocation26 + $0xc8] sm:$0xff] }
0x1e2c   :  { %3791 = vmatpush.msra.mxu1 %v3751_v43  ;;  %3774 = vmatpush.msra.mxu0 %v3729_v36 }
0x1e2d   :  { %v3595_v23 = vmul.f32 %v5732_v22, %v5732_v22 }
0x1e2e   :  { %3792 = vmatpush.msra.mxu1 %v3750_v6  ;;  %3775 = vmatpush.msra.mxu0 %v3728_v53  ;;  %v3893_v53 = vld [vmem:[#allocation28 + $0x50] sm:$0xff] }
0x1e2f   :  { %3598 = vadd.xlane.f32.xlu1 %v3595_v23 }
0x1e30   :  { %3793 = vmatpush.msra.mxu1 %v3749_v17  ;;  %3776 = vmatpush.msra.mxu0 %v3727_v60  ;;  %v3894_v60 = vld [vmem:[#allocation28 + $0x58] sm:$0xff] }
0x1e32   :  { %3794 = vmatpush.msra.mxu1 %v3748_v56  ;;  %3777 = vmatpush.msra.mxu0 %v3726_v49  ;;  %v3912_v56 = vld [vmem:[#allocation28 + $0xe8] sm:$0xff]  ;;  %v3891_v49 = vld [vmem:[#allocation28 + $0x40] sm:$0xff] }
0x1e34   :  { %3795 = vmatpush.msra.mxu1 %v3747_v34  ;;  %v3906_v34 = vld [vmem:[#allocation28 + $0xb8] sm:$0xff] }
0x1e36   :  { %3796 = vmatpush.msra.mxu1 %v3746_v9 }
0x1e38   :  { %3797 = vmatpush.msra.mxu1 %v3745_v37  ;;  %v3899_v37 = vld [vmem:[#allocation28 + $0x80] sm:$0xff] }
0x1e3a   :  { %3798 = vmatpush.msra.mxu1 %v3744_v40 }
0x1e3c   :  { %3799 = vmatpush.msra.mxu1 %v3743_v1 }
0x1e3e   :  { %3800 = vmatpush.msra.mxu1 %v3742_v3  ;;  %v3892_v3 = vld [vmem:[#allocation28 + $0x48] sm:$0xff] }
0x1e9a   :  { %v3597_v42 = vpop.xlane.xlu0 %3596 }
0x1e9b   :  { %v3600_v45 = vmul.f32 %v3597_v42, %v5430_v25 }
0x1e9d   :  { %v3602_v47 = vadd.f32 1e-05, %v3600_v45 }
0x1e9f   :  { %4381 = vrsqrt.f32 %v3602_v47  ;;  %vm3610_vm0 = vweird.f32 %v3602_v47 }
0x1ea2   :  { %v3599_v2 = vpop.xlane.xlu1 %3598 }
0x1ea3   :  { %v3601_v54 = vmul.f32 %v3599_v2, %v5430_v25 }
0x1ea5   :  { %v4382_v13 = vpop.eup %4381  ;;  %v3603_v14 = vadd.f32 1e-05, %v3601_v54 }
0x1ea6   :  { %v3605_v58 = vmul.f32 %v4382_v13, %v3602_v47  ;;  %vm3611_vm15 = vweird.f32 %v4382_v13 }
0x1ea7   :  { %4383 = vrsqrt.f32 %v3603_v14  ;;  %vm3612_vm1 = vmor %vm3610_vm0, %vm3611_vm15  ;;  %vm3620_vm3 = vweird.f32 %v3603_v14 }
0x1ea8   :  { %v3606_v28 = vmul.f32 %v4382_v13, %v3605_v58 }
0x1eaa   :  { %v3607_v46 = vmul.f32 0.5, %v3606_v28 }
0x1eac   :  { %v3608_v5 = vsub.f32 1.5, %v3607_v46 }
0x1ead   :  { %v4384_v61 = vpop.eup %4383 }
0x1eae   :  { %v3609_v52 = vmul.f32 %v4382_v13, %v3608_v5  ;;  %v3615_v23 = vmul.f32 %v4384_v61, %v3603_v14  ;;  %vm3621_vm2 = vweird.f32 %v4384_v61 }
0x1eaf   :  { %vm3622_vm4 = vmor %vm3620_vm3, %vm3621_vm2 }
0x1eb0   :  { %v3613_v24 = vsel %vm3612_vm1, %v4382_v13, %v3609_v52  ;;  %v3616_v30 = vmul.f32 %v4384_v61, %v3615_v23  ;;  %v3913_v52 = vld [vmem:[#allocation28 + $0xf0] sm:$0xff]  ;;  %v3914_v23 = vld [vmem:[#allocation28 + $0xf8] sm:$0xff] }
0x1eb1   :  { %v3624_v31 = vmul.f32 %v3613_v24, %v5727_v12  ;;  %3926 = vmatpush.msra.mxu3 %v3913_v52  ;;  %3946 = vmatpush.msrb.mxu2 %v3914_v23  ;;  %v3909_v24 = vld [vmem:[#allocation28 + $0xd0] sm:$0xff] }
0x1eb2   :  { %v3617_v35 = vmul.f32 0.5, %v3616_v30  ;;  %v3910_v30 = vld [vmem:[#allocation28 + $0xd8] sm:$0xff] }
0x1eb3   :  { %v3630_v29 = vmul.f32 %v4238_v20, %v3624_v31  ;;  %3927 = vmatpush.msra.mxu3 %v3911_v18  ;;  %3947 = vmatpush.msrb.mxu2 %v3912_v56  ;;  %v3907_v31 = vld [vmem:[#allocation28 + $0xc0] sm:$0xff] }
0x1eb4   :  { %v3618_v21 = vsub.f32 1.5, %v3617_v35  ;;  %v3903_v35 = vld [vmem:[#allocation28 + $0xa0] sm:$0xff] }
0x1eb5   :  { %v3636_v19 = vadd.f32 %v4239_v32, %v3630_v29  ;;  %3928 = vmatpush.msra.mxu3 %v3909_v24  ;;  %3948 = vmatpush.msrb.mxu2 %v3910_v30  ;;  %v3904_v29 = vld [vmem:[#allocation28 + $0xa8] sm:$0xff] }
0x1eb6   :  { %v3619_v26 = vmul.f32 %v4384_v61, %v3618_v21  ;;  %v3901_v21 = vld [vmem:[#allocation28 + $0x90] sm:$0xff] }
0x1eb7   :  { %3692 = vmatmul.f32.vlgmr.msrb.gmra.mxu3 %v3636_v19  ;;  %3715 = vmatmul.f32.vlgmr.msra.gmra.mxu2 %v3636_v19 }
0x1eb8   :  { %v3623_v12 = vsel %vm3622_vm4, %v4384_v61, %v3619_v26  ;;  %3929 = vmatpush.msra.mxu3 %v3907_v31  ;;  %v3900_v26 = vld [vmem:[#allocation28 + $0x88] sm:$0xff] }
0x1eb9   :  { %v3625_v38 = vmul.f32 %v3623_v12, %v5732_v22  ;;  %v3673_v22 = vperm.slane %v3670_v59, 1  ;;  %v3897_v12 = vld [vmem:[#allocation28 + $0x70] sm:$0xff] }
0x1eba   :  { %3930 = vmatpush.msra.mxu3 %v3905_v33 }
0x1ebb   :  { %v3631_v39 = vmul.f32 %v4238_v20, %v3625_v38  ;;  %v3898_v38 = vld [vmem:[#allocation28 + $0x78] sm:$0xff] }
0x1ebc   :  { %3931 = vmatpush.msra.mxu3 %v3903_v35 }
0x1ebd   :  { %v3637_v11 = vadd.f32 %v4239_v32, %v3631_v39  ;;  %v3908_v32 = vld [vmem:[#allocation28 + $0xc8] sm:$0xff]  ;;  %v3895_v39 = vld [vmem:[#allocation28 + $0x60] sm:$0xff] }
0x1ebe   :  { %3949 = vmatpush.msrb.mxu2 %v3908_v32  ;;  %3932 = vmatpush.msra.mxu3 %v3901_v21 }
0x1ebf   :  { %3695 = vmatmul.f32.gmra.mxu3 %v3637_v11  ;;  %3718 = vmatmul.f32.gmra.mxu2 %v3637_v11 }
0x1ec0   :  { %3950 = vmatpush.msrb.mxu2 %v3906_v34  ;;  %3933 = vmatpush.msra.mxu3 %v3899_v37 }
0x1ec2   :  { %3951 = vmatpush.msrb.mxu2 %v3904_v29  ;;  %3934 = vmatpush.msra.mxu3 %v3897_v12 }
0x1ec4   :  { %3935 = vmatpush.msra.mxu3 %v3895_v39 }
0x1ec6   :  { %3936 = vmatpush.msra.mxu3 %v3893_v53 }
0x1ec8   :  { %3937 = vmatpush.msra.mxu3 %v3891_v49 }
0x1f3a   :  { %v3693_v42 = vpop.f32.mrf.mxu3  ;;  %v3716_v45 = vpop.f32.mrf.mxu2 }
0x1f3b   :  { %v3694_v47 = vadd.f32 %v3693_v42, %v3672_v41  ;;  %v3717_v63 = vadd.f32 %v3716_v45, %v3673_v22  ;;  %v3890_v42 = vld [vmem:[#allocation28 + $0x38] sm:$0xff] }
0x1f3d   :  { %v3722_v48 = vmax.f32 %v3694_v47, 0.0  ;;  %v3723_v8 = vmax.f32 %v3717_v63, 0.0  ;;  %v3887_v47 = vld [vmem:[#allocation28 + $0x20] sm:$0xff]  ;;  %v3888_v63 = vld [vmem:[#allocation28 + $0x28] sm:$0xff] }
0x1f3f   :  { %3778 = vmatmul.f32.vlgmr.msra.gmra.mxu0 %v3722_v48  ;;  %3801 = vmatmul.f32.vlgmr.msra.gmra.mxu1 %v3723_v8  ;;  %v3885_v8 = vld [vmem:[#allocation28 + $0x10] sm:$0xff] }
0x1f42   :  { %v3696_v57 = vpop.f32.mrf.mxu3  ;;  %v3719_v62 = vpop.f32.mrf.mxu2 }
0x1f43   :  { %v3697_v0 = vadd.f32 %v3696_v57, %v3672_v41  ;;  %v3720_v2 = vadd.f32 %v3719_v62, %v3673_v22  ;;  %v3889_v22 = vld [vmem:[#allocation28 + $0x30] sm:$0xff]  ;;  %v3886_v57 = vld [vmem:[#allocation28 + $0x18] sm:$0xff]  ;;  %v3883_v62 = vld [vmem:[#allocation28] sm:$0xff] }
0x1f44   :  { %3938 = vmatpush.msra.mxu3 %v3889_v22 }
0x1f45   :  { %v3724_v54 = vmax.f32 %v3697_v0, 0.0  ;;  %v3725_v7 = vmax.f32 %v3720_v2, 0.0  ;;  %v3884_v0 = vld [vmem:[#allocation28 + $0x8] sm:$0xff] }
0x1f46   :  { %3939 = vmatpush.msra.mxu3 %v3887_v47 }
0x1f47   :  { %3781 = vmatmul.f32.gmra.mxu0 %v3724_v54  ;;  %3804 = vmatmul.f32.gmra.mxu1 %v3725_v7 }
0x1f48   :  { %3940 = vmatpush.msra.mxu3 %v3885_v8 }
0x1f4a   :  { %3941 = vmatpush.msra.mxu3 %v3883_v62 }
0x1fbc   :  { %v3779_v13 = vpop.f32.mrf.mxu0  ;;  %v3802_v14 = vpop.f32.mrf.mxu1 }
0x1fbd   :  { %v3780_v16 = vadd.f32 %v4240_v4, %v3779_v13  ;;  %v4241_v13 = vld [vmem:[%s5792_s24] ss:$0 sm:$0xff] }
0x1fbf   :  { %v3803_v44 = vadd.f32 %v3802_v14, %v3780_v16  ;;  %v4903_v14 = vmov 8.0  }
0x1fc1   :  { %v3808_v58 = vadd.f32 %v3803_v44, %v3636_v19  ;;  %v3902_v19 = vld [vmem:[#allocation28 + $0x98] sm:$0xff] }
0x1fc2   :  { %3952 = vmatpush.msrb.mxu2 %v3902_v19 }
0x1fc3   :  { %3810 = vadd.xlane.f32.xlu2 %v3808_v58 }
0x1fc4   :  { %v3782_v15 = vpop.f32.mrf.mxu0  ;;  %v3805_v28 = vpop.f32.mrf.mxu1  ;;  %3953 = vmatpush.msrb.mxu2 %v3900_v26  ;;  %v3915_v26 = vld [vmem:[%s5058_s4] sm:$0x3]  ;;  %s4813_s4 = scalar_lea.hbm %s4812_s11, 4 }
0x1fc5   :  { %v3783_v27 = vadd.f32 %v4240_v4, %v3782_v15  ;;  %v3918_v12 = vperm.slane %v3915_v26, 1  ;;  %p4814_p1 = scmp.ne.s32.totalorder %s4812_s11, %s4813_s4  ;;  %p4817_p3 = scmp.lt.s32.totalorder %s4815_s7, %s4813_s4 }
0x1fc6   :  { %3954 = vmatpush.msrb.mxu2 %v3898_v38  ;;  %v3917_v38 = vperm.slane %v3915_v26, 0 }
0x1fc7   :  { %v3806_v10 = vadd.f32 %v3805_v28, %v3783_v27  ;;  %p4818_p4 = por %p4817_p3, %p4816_p2 }
0x1fc9   :  { %v3809_v43 = vadd.f32 %v3806_v10, %v3637_v11  ;;  %v3896_v11 = vld [vmem:[#allocation28 + $0x68] sm:$0xff]  ;;  %p4819_p5 = pnand %p4818_p4, %p4814_p1 }
0x1fca   :  { %3955 = vmatpush.msrb.mxu2 %v3896_v11 }
0x1fcb   :  { %3812 = vadd.xlane.f32.xlu1 %v3809_v43 }
0x1fcc   :  { %3956 = vmatpush.msrb.mxu2 %v3894_v60 }
0x1fce   :  { %3957 = vmatpush.msrb.mxu2 %v3892_v3 }
0x1fd0   :  { %3958 = vmatpush.msrb.mxu2 %v3890_v42 }
0x1fd2   :  { %3959 = vmatpush.msrb.mxu2 %v3888_v63 }
0x1fd4   :  { %3960 = vmatpush.msrb.mxu2 %v3886_v57 }
0x1fd6   :  { %3961 = vmatpush.msrb.mxu2 %v3884_v0 }
0x2036   :  { %v3811_v46 = vpop.xlane.xlu2 %3810 }
0x2037   :  { %v3814_v50 = vmul.f32 %v3811_v46, %v5430_v25 }
0x2039   :  { %v5745_v6 = vsub.f32 %v3808_v58, %v3814_v50  ;;  %v4242_v58 = vld [vmem:[%s5048_s20] ss:$0 sm:$0xff]  ;;  %s4904_s20 = smov [#allocation29]  }
0x203a   :  { %s3978_s28 = sshll.u32 %s4904_s20, 4  ;;  %s3979_s28 = int_to_ptr.vmem [resolvable:$true] %s3978_s28 }
0x203b   :  { %v3818_v5 = vmul.f32 %v5745_v6, %v5745_v6 }
0x203d   :  { %3820 = vadd.xlane.f32.xlu0 %v3818_v5 }
0x203e   :  { %v3813_v61 = vpop.xlane.xlu1 %3812 }
0x203f   :  { %v3815_v55 = vmul.f32 %v3813_v61, %v5430_v25 }
0x2041   :  { %v5750_v17 = vsub.f32 %v3809_v43, %v3815_v55 }
0x2043   :  { %v3819_v20 = vmul.f32 %v5750_v17, %v5750_v17 }
0x2045   :  { %3822 = vadd.xlane.f32.xlu2 %v3819_v20 }
0x20b0   :  { %v3821_v51 = vpop.xlane.xlu0 %3820 }
0x20b1   :  { %v3824_v9 = vmul.f32 %v3821_v51, %v5430_v25 }
0x20b3   :  { %v3826_v36 = vadd.f32 1e-05, %v3824_v9 }
0x20b5   :  { %4385 = vrsqrt.f32 %v3826_v36  ;;  %vm3834_vm6 = vweird.f32 %v3826_v36 }
0x20b8   :  { %v3823_v40 = vpop.xlane.xlu2 %3822 }
0x20b9   :  { %v3825_v1 = vmul.f32 %v3823_v40, %v5430_v25 }
0x20bb   :  { %v4386_v59 = vpop.eup %4385  ;;  %v3827_v41 = vadd.f32 1e-05, %v3825_v1 }
0x20bc   :  { %v3829_v45 = vmul.f32 %v4386_v59, %v3826_v36  ;;  %vm3835_vm5 = vweird.f32 %v4386_v59 }
0x20bd   :  { %4387 = vrsqrt.f32 %v3827_v41  ;;  %vm3836_vm7 = vmor %vm3834_vm6, %vm3835_vm5  ;;  %vm3844_vm9 = vweird.f32 %v3827_v41 }
0x20be   :  { %v3830_v48 = vmul.f32 %v4386_v59, %v3829_v45  ;;  %4389 = vrcp.f32 %v4903_v14 }
0x20c0   :  { %v3831_v25 = vmul.f32 0.5, %v3830_v48 }
0x20c2   :  { %v3832_v2 = vsub.f32 1.5, %v3831_v25 }
0x20c3   :  { %v4388_v54 = vpop.eup %4387 }
0x20c4   :  { %v3833_v7 = vmul.f32 %v4386_v59, %v3832_v2  ;;  %v3839_v4 = vmul.f32 %v4388_v54, %v3827_v41  ;;  %vm3845_vm8 = vweird.f32 %v4388_v54  ;;  %v4390_v43 = vpop.eup %4389 }
0x20c5   :  { %vm3846_vm10 = vmor %vm3844_vm9, %vm3845_vm8  ;;  %v3875_v55 = vmul.f32 8.0, %v4390_v43  ;;  %vm3879_vm11 = vweird.f32 %v4390_v43 }
0x20c6   :  { %v3837_v16 = vsel %vm3836_vm7, %v4386_v59, %v3833_v7  ;;  %v3840_v44 = vmul.f32 %v4388_v54, %v3839_v4 }
0x20c7   :  { %v3848_v15 = vmul.f32 %v3837_v16, %v5745_v6  ;;  %v3876_v56 = vsub.f32 1.0, %v3875_v55 }
0x20c8   :  { %v3841_v27 = vmul.f32 0.5, %v3840_v44 }
0x20c9   :  { %v3854_v28 = vmul.f32 %v4241_v13, %v3848_v15  ;;  %v3877_v31 = vmul.f32 %v4390_v43, %v3876_v56 }
0x20ca   :  { %v3842_v10 = vsub.f32 1.5, %v3841_v27 }
0x20cb   :  { %v3860_v46 = vadd.f32 %v4242_v58, %v3854_v28  ;;  %v3878_v35 = vadd.f32 %v4390_v43, %v3877_v31 }
0x20cc   :  { %v3843_v50 = vmul.f32 %v4388_v54, %v3842_v10 }
0x20cd   :  { %v3862_v5 = vrot.slane %v3860_v46, 4  ;;  %v3880_v21 = vsel %vm3879_vm11, %v4390_v43, %v3878_v35 }
0x20ce   :  { %v3847_v61 = vsel %vm3846_vm10, %v4388_v54, %v3843_v50 }
0x20cf   :  { %v3863_v20 = vadd.f32 %v3862_v5, %v3860_v46  ;;  %v3849_v52 = vmul.f32 %v3847_v61, %v5750_v17 }
0x20d1   :  { %v3855_v23 = vmul.f32 %v4241_v13, %v3849_v52  ;;  %v3864_v18 = vrot.slane %v3863_v20, 2 }
0x20d3   :  { %v3861_v24 = vadd.f32 %v4242_v58, %v3855_v23  ;;  %v3865_v30 = vadd.f32 %v3864_v18, %v3863_v20 }
0x20d5   :  { %v3868_v6 = vrot.slane %v3861_v24, 4  ;;  %v3866_v33 = vrot.slane %v3865_v30, 1 }
0x20d7   :  { %v3869_v32 = vadd.f32 %v3868_v6, %v3861_v24  ;;  %v3867_v51 = vadd.f32 %v3866_v33, %v3865_v30 }
0x20d9   :  { %v3870_v34 = vrot.slane %v3869_v32, 2  ;;  %v3881_v17 = vmul.f32 %v3880_v21, %v3867_v51 }
0x20db   :  { %v3871_v29 = vadd.f32 %v3870_v34, %v3869_v32 }
0x20dd   :  { %v3872_v9 = vrot.slane %v3871_v29, 1 }
0x20df   :  { %v3873_v19 = vadd.f32 %v3872_v9, %v3871_v29 }
0x20e1   :  { %v3882_v36 = vmul.f32 %v3880_v21, %v3873_v19 }
0x20e3   :  { %v3924_v37 = vsel %vm3923_vm12, %v3882_v36, %v3881_v17 }
0x20e4   :  { %3942 = vmatmul.f32.vlgmr.msra.gmra.mxu3 %v3924_v37  ;;  %3962 = vmatmul.f32.vlgmr.msrb.gmra.mxu2 %v3924_v37 }
0x2167   :  { %v3943_v39 = vpop.f32.mrf.mxu3  ;;  %v3963_v11 = vpop.f32.mrf.mxu2 }
0x2168   :  { %v3964_v53 = vadd.f32 %v3963_v11, %v3918_v12  ;;  %v3944_v40 = vadd.f32 %v3943_v39, %v3917_v38 }
0x216a   :  { %v3968_v60 = vrot.slane %v3964_v53, 6 }
0x216c   :  { %v3970_v1 = vsel %vm3969_vm13, %v3944_v40, %v3968_v60 }
0x216d   :  { %3972 = vst [vmem:[#allocation29] sm:$0xf] %v3970_v1 }
0x216e   :  { %4822 = shalt.err (!%p4819_p5)
}
0x216f   :  { %3983 = dma.vmem_to_hbm [thread:$0]  %s3979_s28, 64, %s3981_s1, [#allocation4]  }
0x2170   :  { %4841 = dma.done.wait [#allocation4], 64  }
0x2171   :  { %4842 = vsyncadd [#allocation4], 4294967232 }
0x2172   :  { %3988 = vsyncpa [#allocation3], 1 }
0x2173   :  { %3989 = vsyncpa [#allocation6], 1 }
0x2174   :  { %3990 = vsyncpa [#allocation9], 1 }
0x2175   :  { %3991 = vsyncpa [#allocation12], 1 }
0x2176   :  { %3992 = vsyncpa [#allocation15], 1 }
0x2177   :  { %3993 = vsyncpa [#allocation18], 1 }
0x2178   :  { %3994 = vsyncpa [#allocation21], 1 }
0x2179   :  { %3995 = vsyncpa [#allocation24], 1 }
0x217a   :  { %3996 = vsyncpa [#allocation27], 1 }
0x217b   :  { %3997 = vsyncpa [#allocation4], 1 }

</bundles_post_ra>
